<compile_context>
chip_gen: v7x
topology: tpu7x:2x2x1
jax: 0.10.0
libtpu: 0.0.40
codegen_flags: <defaults>
</compile_context>

<pallas_src>
import functools

import jax
import jax.numpy as jnp
from jax.experimental import pallas as pl
from jax.experimental.pallas import tpu as pltpu


def _pick_row_tile(oh: int, ow: int, target_m: int = 512) -> int:
    """Output-row tile TOH.

    Full image when M = OH*OW is modest (amortizes the ~0.35us/step overhead);
    otherwise the largest divisor of OH with TOH*OW a multiple of 128 so the
    flattened-spatial output block stays lane-aligned and legal.
    """
    if oh * ow <= target_m:
        return oh
    for t in range(oh - 1, 0, -1):
        if oh % t == 0 and t * ow <= target_m and (t * ow) % 128 == 0:
            return t
    return oh  # no aligned divisor: fall back to the whole image (still legal)


def _vmem_block_bytes(shape, dtype) -> int:
    """VMEM bytes of one block, last two dims padded to (8/16, 128) tiles."""
    itemsize = jnp.dtype(dtype).itemsize
    shape = tuple(int(d) for d in shape)
    if len(shape) < 2:
        shape = (1,) * (2 - len(shape)) + shape
    *lead, s, l = shape
    sub = 8 if itemsize >= 4 else 8 * (4 // itemsize)  # packed dtypes: taller tiles
    padded = (-(-s // sub) * sub) * (-(-l // 128) * 128)
    for d in lead:
        padded *= d
    return padded * itemsize


def conv_relu_kernel(x_ref, w_ref, b_ref, o_ref, *,
                     ksize_h: int, ksize_w: int, stride: int, toh: int, ow: int):
    """One (sample, output-row-block) tile of relu(conv2d(x) + b), channel-major.

    x_ref: (Hp, Wp, Cin)        padded NHWC sample (VMEM)
    w_ref: (Cout, K)            K = KH*KW*Cin, (kh, kw, ci)-major columns
    b_ref: (Cout, 1)            bias (f32)
    o_ref: (Cout, TOH*OW)       channel-major output block (lane dim = spatial)
    """
    cin = x_ref.shape[-1]
    j = pl.program_id(1)                     # output-row block index
    row0 = j * (toh * stride)

    # --- im2col as a value: lane-concat the KH*KW taps (no VMEM scratch,
    #     no masked column stores), then ONE spatial-merge reshape. ---
    taps = []
    for dh in range(ksize_h):
        for dw in range(ksize_w):
            if stride == 1:
                tap = x_ref[pl.ds(row0 + dh, toh), pl.ds(dw, ow), :]
            else:
                tap = x_ref[pl.ds(row0 + dh, toh, stride=stride),
                            pl.ds(dw, ow, stride=stride), :]
            taps.append(tap)                                   # (toh, ow, cin)
    patch = jnp.concatenate(taps, axis=-1)                     # (toh, ow, K)
    patch = patch.reshape(toh * ow, ksize_h * ksize_w * cin)   # (M, K) - single relayout

    # --- single fused MXU contraction over K, channel-major result (Cout, M) ---
    y = jax.lax.dot_general(
        w_ref[...], patch,
        dimension_numbers=(((1,), (1,)), ((), ())),            # contract K on both
        preferred_element_type=jnp.float32)                    # (Cout, M) f32 acc
    y = jnp.maximum(y + b_ref[...], 0.0)                       # f32 bias + ReLU (v5e safe)
    o_ref[...] = y.astype(o_ref.dtype)                         # lane-dense spatial store


def convolve_forward(x_nchw, w_oihw, bias, *, stride=1, padding=0, use_bf16=False):
    """relu(conv2d(x)) matching torch.nn.Conv2d semantics (NCHW in / NCHW out)."""
    N, Cin, _, _ = x_nchw.shape
    Cout, _, KH, KW = w_oihw.shape

    # --- wrapper glue: NCHW -> NHWC + spatial padding (see TODOs above) ---
    x = jnp.transpose(x_nchw, (0, 2, 3, 1))
    if padding > 0:
        x = jnp.pad(x, ((0, 0), (padding, padding), (padding, padding), (0, 0)))
    _, Hp, Wp, _ = x.shape
    OH = (Hp - KH) // stride + 1
    OW = (Wp - KW) // stride + 1
    KKC = KH * KW * Cin

    # Weights: OIHW -> (Cout, K) with K in (kh, kw, ci)-major order (matches patch).
    w_t = jnp.transpose(w_oihw, (0, 2, 3, 1)).reshape(Cout, KKC)
    b_col = bias.reshape(Cout, 1).astype(jnp.float32)

    # Optional bf16 MXU inputs (v6e/v7x); accumulation + epilogue stay f32.
    compute_dtype = jnp.bfloat16 if use_bf16 else x.dtype
    x_k = x.astype(compute_dtype)
    w_k = w_t.astype(compute_dtype)
    out_dtype = x_nchw.dtype

    TOH = _pick_row_tile(OH, OW)
    grid = (N, OH // TOH)

    # VMEM budget: double-buffered x/out blocks, single-buffered consts, patch value.
    x_blk = _vmem_block_bytes((Hp, Wp, Cin), compute_dtype)
    o_blk = _vmem_block_bytes((Cout, TOH * OW), out_dtype)
    w_blk = _vmem_block_bytes((Cout, KKC), compute_dtype)
    b_blk = _vmem_block_bytes((Cout, 1), jnp.float32)
    patch_blk = _vmem_block_bytes((TOH * OW, KKC), jnp.float32)
    est = 2 * x_blk + 2 * o_blk + w_blk + b_blk + 2 * patch_blk + (2 << 20)
    try:
        vmem_cap = int(pltpu.get_tpu_info().vmem_capacity_bytes)
    except Exception:
        vmem_cap = 64 << 20                        # conservative (v7x per-TC size)
    vmem_limit = int(min(max(est, 32 << 20), int(0.8 * vmem_cap)))

    cost = pl.CostEstimate(
        flops=2 * N * OH * OW * KKC * Cout,
        transcendentals=0,
        bytes_accessed=int(
            x_k.size * jnp.dtype(compute_dtype).itemsize
            + w_k.size * jnp.dtype(compute_dtype).itemsize
            + b_col.size * 4
            + N * Cout * OH * OW * jnp.dtype(out_dtype).itemsize))

    kernel = functools.partial(conv_relu_kernel, ksize_h=KH, ksize_w=KW,
                               stride=stride, toh=TOH, ow=OW)

    def _build_and_run(single_buffer_consts: bool):
        const_kw = dict(pipeline_mode=pl.Buffered(1)) if single_buffer_consts else {}
        in_specs = [
            # Whole padded sample; index map ignores j so it is fetched once per
            # sample and reused across the row-block axis.
            pl.BlockSpec((None, Hp, Wp, Cin), lambda n, j: (n, 0, 0, 0)),
            # Constant-index weights / bias: single-buffered (never re-DMA'd).
            pl.BlockSpec((Cout, KKC), lambda n, j: (0, 0), **const_kw),
            pl.BlockSpec((Cout, 1), lambda n, j: (0, 0), **const_kw),
        ]
        return pl.pallas_call(
            kernel,
            out_shape=jax.ShapeDtypeStruct((N, Cout, OH * OW), out_dtype),
            grid=grid,
            in_specs=in_specs,
            out_specs=pl.BlockSpec((None, Cout, TOH * OW), lambda n, j: (n, 0, j)),
            compiler_params=pltpu.CompilerParams(
                # Disjoint outputs, no cross-step carry: both axes parallel so
                # v7x's two TensorCores get work even when N == 1.
                dimension_semantics=("parallel", "parallel"),
                vmem_limit_bytes=vmem_limit),
            cost_estimate=cost,
        )(x_k, w_k, b_col)

    try:
        out_flat = _build_and_run(True)
    except Exception:
        # Fallback for jax versions that reject pipeline_mode=pl.Buffered(1).
        out_flat = _build_and_run(False)

    # (N, Cout, OH*OW) is already channel-major NCHW; trailing reshape is free.
    return out_flat.reshape(N, Cout, OH, OW)


if __name__ == "__main__":
    # Module config: Convolve(in_maps=4, out_maps=8, ker_size=3, stride=1, mode='none')
    in_maps, out_maps, ker_size, stride, padding = 4, 8, 3, 1, 0

    key = jax.random.PRNGKey(0)
    kx, kw_key, kb = jax.random.split(key, 3)

    # Deterministic parameter init (Conv2d-shaped: OIHW weight, (O,) bias).
    fan_in = in_maps * ker_size * ker_size
    bound = 1.0 / fan_in ** 0.5
    weight = jax.random.uniform(kw_key, (out_maps, in_maps, ker_size, ker_size),
                                jnp.float32, minval=-bound, maxval=bound)
    bias = jax.random.uniform(kb, (out_maps,), jnp.float32,
                              minval=-bound, maxval=bound)

    # Input in PyTorch NCHW convention.
    x = jax.random.normal(kx, (2, in_maps, 16, 16), jnp.float32)

    out = convolve_forward(x, weight, bias, stride=stride, padding=padding)
    out = jax.block_until_ready(out)

    # Reference check against XLA's conv (same semantics as torch Conv2d + ReLU).
    ref = jax.lax.conv_general_dilated(
        x, weight, window_strides=(stride, stride),
        padding=[(padding, padding)] * 2,
        dimension_numbers=("NCHW", "OIHW", "NCHW"))
    ref = jnp.maximum(ref + bias.reshape(1, out_maps, 1, 1), 0.0)
    assert out.shape == ref.shape == (2, out_maps, 14, 14), out.shape
    assert jnp.allclose(out, ref, rtol=1e-4, atol=1e-5), "mismatch vs reference conv"

    print("KERNEL_OK")
</pallas_src>

<mosaic_0001>
module attributes {stable_mosaic.version = 11 : i64} {
  func.func @conv_relu_kernel(%arg0: i32, %arg1: i32, %arg2: memref<1x16x16x4xf32, #tpu.memory_space<vmem>>, %arg3: memref<8x36xf32, #tpu.memory_space<vmem>>, %arg4: memref<8x1xf32, #tpu.memory_space<vmem>>, %arg5: memref<1x8x196xf32, #tpu.memory_space<vmem>>) attributes {dimension_semantics = [#tpu.dimension_semantics<parallel>, #tpu.dimension_semantics<parallel>], iteration_bounds = array<i64: 2, 1>, scalar_prefetch = 0 : i64, scratch_operands = 0 : i64, tpu.core_type = #tpu.core_type<tc>, window_params = [{transform_indices = @transform_0, window_bounds = array<i64: 1, 16, 16, 4>}, {pipeline_mode = #tpu.pipeline_mode<synchronous>, transform_indices = @transform_1, window_bounds = array<i64: 8, 36>}, {pipeline_mode = #tpu.pipeline_mode<synchronous>, transform_indices = @transform_2, window_bounds = array<i64: 8, 1>}, {transform_indices = @transform_3, window_bounds = array<i64: 1, 8, 196>}]} {
    %c14_i32 = arith.constant 14 : i32
    %0 = arith.muli %arg1, %c14_i32 : i32
    %c0_i32 = arith.constant 0 : i32
    %1 = arith.addi %0, %c0_i32 : i32
    %c0 = arith.constant 0 : index
    %2 = arith.index_cast %1 : i32 to index
    %c0_0 = arith.constant 0 : index
    %c0_1 = arith.constant 0 : index
    %3 = vector.load %arg2[%c0, %2, %c0_0, %c0_1] : memref<1x16x16x4xf32, #tpu.memory_space<vmem>>, vector<1x14x14x4xf32>
    %4 = vector.shape_cast %3 : vector<1x14x14x4xf32> to vector<14x14x4xf32>
    %c0_i32_2 = arith.constant 0 : i32
    %5 = arith.addi %0, %c0_i32_2 : i32
    %c0_3 = arith.constant 0 : index
    %6 = arith.index_cast %5 : i32 to index
    %c1 = arith.constant 1 : index
    %c0_4 = arith.constant 0 : index
    %7 = vector.load %arg2[%c0_3, %6, %c1, %c0_4] : memref<1x16x16x4xf32, #tpu.memory_space<vmem>>, vector<1x14x14x4xf32>
    %8 = vector.shape_cast %7 : vector<1x14x14x4xf32> to vector<14x14x4xf32>
    %c0_i32_5 = arith.constant 0 : i32
    %9 = arith.addi %0, %c0_i32_5 : i32
    %c0_6 = arith.constant 0 : index
    %10 = arith.index_cast %9 : i32 to index
    %c2 = arith.constant 2 : index
    %c0_7 = arith.constant 0 : index
    %11 = vector.load %arg2[%c0_6, %10, %c2, %c0_7] : memref<1x16x16x4xf32, #tpu.memory_space<vmem>>, vector<1x14x14x4xf32>
    %12 = vector.shape_cast %11 : vector<1x14x14x4xf32> to vector<14x14x4xf32>
    %c1_i32 = arith.constant 1 : i32
    %13 = arith.addi %0, %c1_i32 : i32
    %c0_8 = arith.constant 0 : index
    %14 = arith.index_cast %13 : i32 to index
    %c0_9 = arith.constant 0 : index
    %c0_10 = arith.constant 0 : index
    %15 = vector.load %arg2[%c0_8, %14, %c0_9, %c0_10] : memref<1x16x16x4xf32, #tpu.memory_space<vmem>>, vector<1x14x14x4xf32>
    %16 = vector.shape_cast %15 : vector<1x14x14x4xf32> to vector<14x14x4xf32>
    %c1_i32_11 = arith.constant 1 : i32
    %17 = arith.addi %0, %c1_i32_11 : i32
    %c0_12 = arith.constant 0 : index
    %18 = arith.index_cast %17 : i32 to index
    %c1_13 = arith.constant 1 : index
    %c0_14 = arith.constant 0 : index
    %19 = vector.load %arg2[%c0_12, %18, %c1_13, %c0_14] : memref<1x16x16x4xf32, #tpu.memory_space<vmem>>, vector<1x14x14x4xf32>
    %20 = vector.shape_cast %19 : vector<1x14x14x4xf32> to vector<14x14x4xf32>
    %c1_i32_15 = arith.constant 1 : i32
    %21 = arith.addi %0, %c1_i32_15 : i32
    %c0_16 = arith.constant 0 : index
    %22 = arith.index_cast %21 : i32 to index
    %c2_17 = arith.constant 2 : index
    %c0_18 = arith.constant 0 : index
    %23 = vector.load %arg2[%c0_16, %22, %c2_17, %c0_18] : memref<1x16x16x4xf32, #tpu.memory_space<vmem>>, vector<1x14x14x4xf32>
    %24 = vector.shape_cast %23 : vector<1x14x14x4xf32> to vector<14x14x4xf32>
    %c2_i32 = arith.constant 2 : i32
    %25 = arith.addi %0, %c2_i32 : i32
    %c0_19 = arith.constant 0 : index
    %26 = arith.index_cast %25 : i32 to index
    %c0_20 = arith.constant 0 : index
    %c0_21 = arith.constant 0 : index
    %27 = vector.load %arg2[%c0_19, %26, %c0_20, %c0_21] : memref<1x16x16x4xf32, #tpu.memory_space<vmem>>, vector<1x14x14x4xf32>
    %28 = vector.shape_cast %27 : vector<1x14x14x4xf32> to vector<14x14x4xf32>
    %c2_i32_22 = arith.constant 2 : i32
    %29 = arith.addi %0, %c2_i32_22 : i32
    %c0_23 = arith.constant 0 : index
    %30 = arith.index_cast %29 : i32 to index
    %c1_24 = arith.constant 1 : index
    %c0_25 = arith.constant 0 : index
    %31 = vector.load %arg2[%c0_23, %30, %c1_24, %c0_25] : memref<1x16x16x4xf32, #tpu.memory_space<vmem>>, vector<1x14x14x4xf32>
    %32 = vector.shape_cast %31 : vector<1x14x14x4xf32> to vector<14x14x4xf32>
    %c2_i32_26 = arith.constant 2 : i32
    %33 = arith.addi %0, %c2_i32_26 : i32
    %c0_27 = arith.constant 0 : index
    %34 = arith.index_cast %33 : i32 to index
    %c2_28 = arith.constant 2 : index
    %c0_29 = arith.constant 0 : index
    %35 = vector.load %arg2[%c0_27, %34, %c2_28, %c0_29] : memref<1x16x16x4xf32, #tpu.memory_space<vmem>>, vector<1x14x14x4xf32>
    %36 = vector.shape_cast %35 : vector<1x14x14x4xf32> to vector<14x14x4xf32>
    %37 = tpu.concatenate %4, %8, %12, %16, %20, %24, %28, %32, %36 in 2 : vector<14x14x4xf32>, vector<14x14x4xf32>, vector<14x14x4xf32>, vector<14x14x4xf32>, vector<14x14x4xf32>, vector<14x14x4xf32>, vector<14x14x4xf32>, vector<14x14x4xf32>, vector<14x14x4xf32> -> vector<14x14x36xf32>
    %38 = vector.shape_cast %37 : vector<14x14x36xf32> to vector<196x36xf32>
    %c0_30 = arith.constant 0 : index
    %c0_31 = arith.constant 0 : index
    %39 = vector.load %arg3[%c0_30, %c0_31] : memref<8x36xf32, #tpu.memory_space<vmem>>, vector<8x36xf32>
    %cst = arith.constant dense<0.000000e+00> : vector<8x196xf32>
    %40 = tpu.matmul %39, %38, %cst {dimension_numbers = #tpu.dot_dimension_numbers<[1], [1], [0], [0], [0, 0, 1, 0], [], []>} : vector<8x36xf32>, vector<196x36xf32>, vector<8x196xf32> -> vector<8x196xf32>
    %c0_32 = arith.constant 0 : index
    %c0_33 = arith.constant 0 : index
    %41 = vector.load %arg4[%c0_32, %c0_33] : memref<8x1xf32, #tpu.memory_space<vmem>>, vector<8x1xf32>
    %42 = vector.broadcast %41 : vector<8x1xf32> to vector<8x196xf32>
    %43 = arith.addf %40, %42 : vector<8x196xf32>
    %cst_34 = arith.constant 0.000000e+00 : f32
    %44 = vector.broadcast %cst_34 : f32 to vector<8x196xf32>
    %45 = arith.maximumf %43, %44 : vector<8x196xf32>
    %c0_35 = arith.constant 0 : index
    %c0_36 = arith.constant 0 : index
    %c0_37 = arith.constant 0 : index
    %46 = vector.load %arg5[%c0_35, %c0_36, %c0_37] : memref<1x8x196xf32, #tpu.memory_space<vmem>>, vector<1x8x196xf32>
    %47 = vector.shape_cast %46 : vector<1x8x196xf32> to vector<8x196xf32>
    %48 = vector.shape_cast %45 : vector<8x196xf32> to vector<1x8x196xf32>
    tpu.vector_store %arg5[%c0_35, %c0_36, %c0_37], %48 {strides = array<i32>} : memref<1x8x196xf32, #tpu.memory_space<vmem>>, vector<1x8x196xf32>,
    return
  }
  func.func @transform_0(%arg0: i32, %arg1: i32) -> (i32, i32, i32, i32) {
    %c0_i32 = arith.constant 0 : i32
    %c0_i32_0 = arith.constant 0 : i32
    %c0_i32_1 = arith.constant 0 : i32
    %c0_i32_2 = arith.constant 0 : i32
    return %arg0, %c0_i32, %c0_i32_0, %c0_i32_1 : i32, i32, i32, i32
  }
  func.func @transform_1(%arg0: i32, %arg1: i32) -> (i32, i32) {
    %c0_i32 = arith.constant 0 : i32
    %c0_i32_0 = arith.constant 0 : i32
    %c0_i32_1 = arith.constant 0 : i32
    return %c0_i32, %c0_i32_0 : i32, i32
  }
  func.func @transform_2(%arg0: i32, %arg1: i32) -> (i32, i32) {
    %c0_i32 = arith.constant 0 : i32
    %c0_i32_0 = arith.constant 0 : i32
    %c0_i32_1 = arith.constant 0 : i32
    return %c0_i32, %c0_i32_0 : i32, i32
  }
  func.func @transform_3(%arg0: i32, %arg1: i32) -> (i32, i32, i32) {
    %c0_i32 = arith.constant 0 : i32
    %c0_i32_0 = arith.constant 0 : i32
    return %arg0, %c0_i32, %arg1 : i32, i32, i32
  }
}

module attributes {stable_mosaic.version = 11 : i64} {
  func.func @conv_relu_kernel(%arg0: i32, %arg1: i32, %arg2: memref<1x16x16x4xf32, #tpu.memory_space<vmem>>, %arg3: memref<8x36xf32, #tpu.memory_space<vmem>>, %arg4: memref<8x1xf32, #tpu.memory_space<vmem>>, %arg5: memref<1x8x196xf32, #tpu.memory_space<vmem>>) attributes {dimension_semantics = [#tpu.dimension_semantics<parallel>, #tpu.dimension_semantics<parallel>], iteration_bounds = array<i64: 2, 1>, scalar_prefetch = 0 : i64, scratch_operands = 0 : i64, tpu.core_type = #tpu.core_type<tc>, window_params = [{transform_indices = @transform_0, window_bounds = array<i64: 1, 16, 16, 4>}, {pipeline_mode = #tpu.pipeline_mode<synchronous>, transform_indices = @transform_1, window_bounds = array<i64: 8, 36>}, {pipeline_mode = #tpu.pipeline_mode<synchronous>, transform_indices = @transform_2, window_bounds = array<i64: 8, 1>}, {transform_indices = @transform_3, window_bounds = array<i64: 1, 8, 196>}]} {
    %c14_i32 = arith.constant 14 : i32
    %0 = arith.muli %arg1, %c14_i32 : i32
    %c0_i32 = arith.constant 0 : i32
    %1 = arith.addi %0, %c0_i32 : i32
    %c0 = arith.constant 0 : index
    %2 = arith.index_cast %1 : i32 to index
    %c0_0 = arith.constant 0 : index
    %c0_1 = arith.constant 0 : index
    %3 = vector.load %arg2[%c0, %2, %c0_0, %c0_1] : memref<1x16x16x4xf32, #tpu.memory_space<vmem>>, vector<1x14x14x4xf32>
    %4 = vector.shape_cast %3 : vector<1x14x14x4xf32> to vector<14x14x4xf32>
    %c0_i32_2 = arith.constant 0 : i32
    %5 = arith.addi %0, %c0_i32_2 : i32
    %c0_3 = arith.constant 0 : index
    %6 = arith.index_cast %5 : i32 to index
    %c1 = arith.constant 1 : index
    %c0_4 = arith.constant 0 : index
    %7 = vector.load %arg2[%c0_3, %6, %c1, %c0_4] : memref<1x16x16x4xf32, #tpu.memory_space<vmem>>, vector<1x14x14x4xf32>
    %8 = vector.shape_cast %7 : vector<1x14x14x4xf32> to vector<14x14x4xf32>
    %c0_i32_5 = arith.constant 0 : i32
    %9 = arith.addi %0, %c0_i32_5 : i32
    %c0_6 = arith.constant 0 : index
    %10 = arith.index_cast %9 : i32 to index
    %c2 = arith.constant 2 : index
    %c0_7 = arith.constant 0 : index
    %11 = vector.load %arg2[%c0_6, %10, %c2, %c0_7] : memref<1x16x16x4xf32, #tpu.memory_space<vmem>>, vector<1x14x14x4xf32>
    %12 = vector.shape_cast %11 : vector<1x14x14x4xf32> to vector<14x14x4xf32>
    %c1_i32 = arith.constant 1 : i32
    %13 = arith.addi %0, %c1_i32 : i32
    %c0_8 = arith.constant 0 : index
    %14 = arith.index_cast %13 : i32 to index
    %c0_9 = arith.constant 0 : index
    %c0_10 = arith.constant 0 : index
    %15 = vector.load %arg2[%c0_8, %14, %c0_9, %c0_10] : memref<1x16x16x4xf32, #tpu.memory_space<vmem>>, vector<1x14x14x4xf32>
    %16 = vector.shape_cast %15 : vector<1x14x14x4xf32> to vector<14x14x4xf32>
    %c1_i32_11 = arith.constant 1 : i32
    %17 = arith.addi %0, %c1_i32_11 : i32
    %c0_12 = arith.constant 0 : index
    %18 = arith.index_cast %17 : i32 to index
    %c1_13 = arith.constant 1 : index
    %c0_14 = arith.constant 0 : index
    %19 = vector.load %arg2[%c0_12, %18, %c1_13, %c0_14] : memref<1x16x16x4xf32, #tpu.memory_space<vmem>>, vector<1x14x14x4xf32>
    %20 = vector.shape_cast %19 : vector<1x14x14x4xf32> to vector<14x14x4xf32>
    %c1_i32_15 = arith.constant 1 : i32
    %21 = arith.addi %0, %c1_i32_15 : i32
    %c0_16 = arith.constant 0 : index
    %22 = arith.index_cast %21 : i32 to index
    %c2_17 = arith.constant 2 : index
    %c0_18 = arith.constant 0 : index
    %23 = vector.load %arg2[%c0_16, %22, %c2_17, %c0_18] : memref<1x16x16x4xf32, #tpu.memory_space<vmem>>, vector<1x14x14x4xf32>
    %24 = vector.shape_cast %23 : vector<1x14x14x4xf32> to vector<14x14x4xf32>
    %c2_i32 = arith.constant 2 : i32
    %25 = arith.addi %0, %c2_i32 : i32
    %c0_19 = arith.constant 0 : index
    %26 = arith.index_cast %25 : i32 to index
    %c0_20 = arith.constant 0 : index
    %c0_21 = arith.constant 0 : index
    %27 = vector.load %arg2[%c0_19, %26, %c0_20, %c0_21] : memref<1x16x16x4xf32, #tpu.memory_space<vmem>>, vector<1x14x14x4xf32>
    %28 = vector.shape_cast %27 : vector<1x14x14x4xf32> to vector<14x14x4xf32>
    %c2_i32_22 = arith.constant 2 : i32
    %29 = arith.addi %0, %c2_i32_22 : i32
    %c0_23 = arith.constant 0 : index
    %30 = arith.index_cast %29 : i32 to index
    %c1_24 = arith.constant 1 : index
    %c0_25 = arith.constant 0 : index
    %31 = vector.load %arg2[%c0_23, %30, %c1_24, %c0_25] : memref<1x16x16x4xf32, #tpu.memory_space<vmem>>, vector<1x14x14x4xf32>
    %32 = vector.shape_cast %31 : vector<1x14x14x4xf32> to vector<14x14x4xf32>
    %c2_i32_26 = arith.constant 2 : i32
    %33 = arith.addi %0, %c2_i32_26 : i32
    %c0_27 = arith.constant 0 : index
    %34 = arith.index_cast %33 : i32 to index
    %c2_28 = arith.constant 2 : index
    %c0_29 = arith.constant 0 : index
    %35 = vector.load %arg2[%c0_27, %34, %c2_28, %c0_29] : memref<1x16x16x4xf32, #tpu.memory_space<vmem>>, vector<1x14x14x4xf32>
    %36 = vector.shape_cast %35 : vector<1x14x14x4xf32> to vector<14x14x4xf32>
    %37 = tpu.concatenate %4, %8, %12, %16, %20, %24, %28, %32, %36 in 2 : vector<14x14x4xf32>, vector<14x14x4xf32>, vector<14x14x4xf32>, vector<14x14x4xf32>, vector<14x14x4xf32>, vector<14x14x4xf32>, vector<14x14x4xf32>, vector<14x14x4xf32>, vector<14x14x4xf32> -> vector<14x14x36xf32>
    %38 = vector.shape_cast %37 : vector<14x14x36xf32> to vector<196x36xf32>
    %c0_30 = arith.constant 0 : index
    %c0_31 = arith.constant 0 : index
    %39 = vector.load %arg3[%c0_30, %c0_31] : memref<8x36xf32, #tpu.memory_space<vmem>>, vector<8x36xf32>
    %cst = arith.constant dense<0.000000e+00> : vector<8x196xf32>
    %40 = tpu.matmul %39, %38, %cst {dimension_numbers = #tpu.dot_dimension_numbers<[1], [1], [0], [0], [0, 0, 1, 0], [], []>} : vector<8x36xf32>, vector<196x36xf32>, vector<8x196xf32> -> vector<8x196xf32>
    %c0_32 = arith.constant 0 : index
    %c0_33 = arith.constant 0 : index
    %41 = vector.load %arg4[%c0_32, %c0_33] : memref<8x1xf32, #tpu.memory_space<vmem>>, vector<8x1xf32>
    %42 = vector.broadcast %41 : vector<8x1xf32> to vector<8x196xf32>
    %43 = arith.addf %40, %42 : vector<8x196xf32>
    %cst_34 = arith.constant 0.000000e+00 : f32
    %44 = vector.broadcast %cst_34 : f32 to vector<8x196xf32>
    %45 = arith.maximumf %43, %44 : vector<8x196xf32>
    %c0_35 = arith.constant 0 : index
    %c0_36 = arith.constant 0 : index
    %c0_37 = arith.constant 0 : index
    %46 = vector.load %arg5[%c0_35, %c0_36, %c0_37] : memref<1x8x196xf32, #tpu.memory_space<vmem>>, vector<1x8x196xf32>
    %47 = vector.shape_cast %46 : vector<1x8x196xf32> to vector<8x196xf32>
    %48 = vector.shape_cast %45 : vector<8x196xf32> to vector<1x8x196xf32>
    tpu.vector_store %arg5[%c0_35, %c0_36, %c0_37], %48 {strides = array<i32>} : memref<1x8x196xf32, #tpu.memory_space<vmem>>, vector<1x8x196xf32>,
    return
  }
  func.func @transform_0(%arg0: i32, %arg1: i32) -> (i32, i32, i32, i32) {
    %c0_i32 = arith.constant 0 : i32
    %c0_i32_0 = arith.constant 0 : i32
    %c0_i32_1 = arith.constant 0 : i32
    %c0_i32_2 = arith.constant 0 : i32
    return %arg0, %c0_i32, %c0_i32_0, %c0_i32_1 : i32, i32, i32, i32
  }
  func.func @transform_1(%arg0: i32, %arg1: i32) -> (i32, i32) {
    %c0_i32 = arith.constant 0 : i32
    %c0_i32_0 = arith.constant 0 : i32
    %c0_i32_1 = arith.constant 0 : i32
    return %c0_i32, %c0_i32_0 : i32, i32
  }
  func.func @transform_2(%arg0: i32, %arg1: i32) -> (i32, i32) {
    %c0_i32 = arith.constant 0 : i32
    %c0_i32_0 = arith.constant 0 : i32
    %c0_i32_1 = arith.constant 0 : i32
    return %c0_i32, %c0_i32_0 : i32, i32
  }
  func.func @transform_3(%arg0: i32, %arg1: i32) -> (i32, i32, i32) {
    %c0_i32 = arith.constant 0 : i32
    %c0_i32_0 = arith.constant 0 : i32
    return %arg0, %c0_i32, %arg1 : i32, i32, i32
  }
}

</mosaic_0001>

<bundles_post_ra>
// kernel: tpu_custom_call.1
= control target key start
LH: loop header
LB: loop body
LE: loop exit
PB: predicated region body
PF: predicated region fallthrough
CT: control target
= control target key end

     0   :  { %8 = vsyncpa [#allocation3], 0  ;;  %s4311_s0 = inlined_call_operand.vmem [shape: f32[2,16,16,4], index: 0, kind: input, shape index: {}]   ;;  %s4312_s1 = inlined_call_operand.vmem [shape: f32[8,36], index: 1, kind: input, shape index: {}]   ;;  %s4313_s2 = inlined_call_operand.vmem [shape: f32[8,1], index: 2, kind: input, shape index: {}]   ;;  %s4314_s3 = inlined_call_operand.hbm [shape: f32[2,8,196], index: 3, kind: output, shape index: {}]  }
   0x1   :  { %10 = vsyncpa [#allocation3 + $0x1], 0  ;;  %s3151_s12 = smov 0   ;;  %s3153_s13 = smov 0  }
   0x2   :  { %s3155_s14 = smov 0   ;;  %s3157_s15 = smov 0  }
   0x3   :  { %s3159_s16 = smov 0   ;;  %s3161_s17 = smov 0  }
   0x4 LB: > { %s2713_s18 = sadd.s32 4294967295, %s3116_s17   ;;  %s2714_s19 = sadd.s32 4294967294, %s3116_s17   ;;  %s3116_s17 = sphi %s3161_s17, %s16_s17   ;;  %s3112_s16 = sphi %s3159_s16, %s4323_s16   ;;  %s3108_s15 = sphi %s3157_s15, %s4322_s15   ;;  %s3104_s14 = sphi %s3155_s14, %s4321_s14   ;;  %s3100_s13 = sphi %s3153_s13, %s4320_s13   ;;  %s3096_s12 = sphi %s3151_s12, %s4319_s12  }
   0x5   : > { %s28_s20 = sadd.s32 1, %s3112_s16  ;;  %s105_s21 = sadd.s32 1, %s3104_s14 }
   0x6   : > { %p30_p0 = scmp.ge.s32.totalorder %s28_s20, 2  ;;  %p115_p1 = scmp.ne.s32.totalorder %s3104_s14, %s3100_s13 }
   0x7   : > { %p116_p2 = scmp.eq.s32.totalorder %s2713_s18, 1  ;;  %p121_p3 = scmp.ne.s32.totalorder %s3100_s13, %s3096_s12 }
   0x8   : > { %s4325_s20 = smov (%p30_p0, %s28_s20), 0  ;;  %p122_p5 = scmp.eq.s32.totalorder %s2714_s19, 1 }
   0x9   : > { %p3191_p4 = por %p116_p2, %p115_p1  ;;  %s100_s23 = ssub.s32 %s3112_s16, %s4325_s20 }
   0xa   : > { %p2717_p6 = scmp.ge.s32.totalorder %s3116_s17, 1  ;;  %p103_p7 = scmp.eq.s32.totalorder %s100_s23, 0 }
   0xb   : > { %p3198_p8 = por %p122_p5, %p121_p3  ;;  %p154_p9 = scmp.lt.s32.totalorder %s3116_s17, 3 }
   0xc   : > { %s3204_s25 = scalar_select %p103_p7, %s3104_s14, %s105_s21  }
   0xd   : > { %p155_p10 = pnand %p2717_p6, %p154_p9 }
   0xe   : > { %p178_p11 = scmp.lt.s32.totalorder (!%p155_p10), %s3108_s15, 1  ;;  %s3118_s4 = smov (!%p155_p10), 4   ;;  %v3126_v44 = vmov (!%p155_p10), 0.0|0.0   ;;  %vm1341_vm0 = vcmask (!%p155_p10), 31744   ;;  %vm1370_vm1 = vcmask (!%p155_p10), 64512   ;;  %vm1399_vm2 = vcmask (!%p155_p10), 97280  }
   0xf   : > { %158 = sbr.rel (%p155_p10) target bundleno = 841 (0x349), region = 32  ;;  %s3119_s5 = smov (!%p155_p10), 12   ;;  %2922 = vmatprep.subr.bf16.mxu0 (!%p155_p10), %v3126_v44  ;;  %vm1428_vm3 = vcmask (!%p155_p10), 130048   ;;  %vm1457_vm4 = vcmask (!%p155_p10), 162816   ;;  %vm1486_vm5 = vcmask (!%p155_p10), 195584   ;;  %vm1515_vm6 = vcmask (!%p155_p10), 228352  }
  0x10   : > { %s3120_s6 = smov (!%p155_p10), 8   ;;  %s3121_s7 = smov (!%p155_p10), 16   ;;  %vm1544_vm7 = vcmask (!%p155_p10), 261120   ;;  %vm2486_vm8 = vcmask (!%p155_p10), 293888   ;;  %vm2614_vm10 = vcmask (!%p155_p10), 556032  }
  0x11   : > { %s3122_s8 = smov (!%p155_p10), 20   ;;  %s3123_s9 = smov (!%p155_p10), 24   ;;  %vm3586_vm9 = vmpackc.low (!%p155_p10), %vm2486_vm8, %vm2486_vm8 }
  0x12   : > { %s3124_s10 = smov (!%p155_p10), 28   ;;  %s3125_s11 = smov (!%p155_p10), 32  }
  0x13   : > { %s2921_s28 = sshll.u32 (!%p155_p10), %s3108_s15, 8 }
  0x16   : > { %s179_s26 = scalar_select %p178_p11, %s3108_s15, 1 }
  0x18   : > { %s2920_s27 = sshll.u32 %s179_s26, 8  ;;  %s175_s26 = sand.u32 1, %s3100_s13  }
  0x19   : > { %s3211_s30 = scalar_lea.vmem %s4311_s0, %s2920_s27  ;;  %s2718_s27 = sshll.u32 %s175_s26, 4 }
  0x1a   : > { %v3214_v0 = vld [vmem:[%s3211_s30 + $0x11] sm:$0xff]  ;;  %v215_v1 = vld [vmem:[%s3211_s30 + $0x1] sm:$0xff]  ;;  %v218_v2 = vld [vmem:[%s3211_s30 + $0x19] sm:$0x3f]  ;;  %s177_s29 = scalar_lea.vmem [#allocation2], %s2718_s27 }
  0x1b   : > { %477 = vrot.lane.b32.xlu1 %v3214_v0, %s3118_s4  ;;  %473 = vrot.lane.b32.xlu0 %v215_v1, %s3118_s4  ;;  %v216_v3 = vld [vmem:[%s3211_s30 + $0x9] sm:$0x3f]  ;;  %v3226_v5 = vld [vmem:[%s3211_s30 + $0x21] sm:$0xff] }
  0x1c   : > { %v220_v4 = vld [vmem:[%s3211_s30 + $0x29] sm:$0x3f]  ;;  %v222_v6 = vld [vmem:[%s3211_s30 + $0x39] sm:$0x3f]  ;;  %v3233_v7 = vld [vmem:[%s3211_s30 + $0x31] sm:$0xff] }
  0x1d   : > { %v224_v8 = vld [vmem:[%s3211_s30 + $0x49] sm:$0x3f]  ;;  %v3240_v9 = vld [vmem:[%s3211_s30 + $0x41] sm:$0xff]  ;;  %v226_v10 = vld [vmem:[%s3211_s30 + $0x59] sm:$0x3f] }
  0x1e   : > { %v3247_v11 = vld [vmem:[%s3211_s30 + $0x51] sm:$0xff]  ;;  %v228_v12 = vld [vmem:[%s3211_s30 + $0x69] sm:$0x3f]  ;;  %v3254_v13 = vld [vmem:[%s3211_s30 + $0x61] sm:$0xff] }
  0x1f   : > { %479 = vrot.lane.b32.xlu1 %v218_v2, %s3118_s4  ;;  %475 = vrot.lane.b32.xlu0 %v216_v3, %s3118_s4  ;;  %v230_v14 = vld [vmem:[%s3211_s30 + $0x79] sm:$0x3f]  ;;  %v3261_v15 = vld [vmem:[%s3211_s30 + $0x71] sm:$0xff] }
  0x20   : > { %v232_v16 = vld [vmem:[%s3211_s30 + $0x89] sm:$0x3f]  ;;  %v3268_v17 = vld [vmem:[%s3211_s30 + $0x81] sm:$0xff]  ;;  %v234_v18 = vld [vmem:[%s3211_s30 + $0x99] sm:$0x3f] }
  0x21   : > { %v3275_v19 = vld [vmem:[%s3211_s30 + $0x91] sm:$0xff]  ;;  %v236_v20 = vld [vmem:[%s3211_s30 + $0xa9] sm:$0x3f]  ;;  %v235_v21 = vld [vmem:[%s3211_s30 + $0xa1] sm:$0xff] }
  0x22   : > { %v238_v22 = vld [vmem:[%s3211_s30 + $0xb9] sm:$0x3f]  ;;  %v237_v23 = vld [vmem:[%s3211_s30 + $0xb1] sm:$0xff]  ;;  %v240_v24 = vld [vmem:[%s3211_s30 + $0xc9] sm:$0x3f] }
  0x23   : > { %483 = vrot.lane.b32.xlu1 %v220_v4, %s3118_s4  ;;  %481 = vrot.lane.b32.xlu0 %v3226_v5, %s3118_s4  ;;  %v239_v25 = vld [vmem:[%s3211_s30 + $0xc1] sm:$0xff]  ;;  %v242_v26 = vld [vmem:[%s3211_s30 + $0xd9] sm:$0x3f] }
  0x24   : > { %v241_v27 = vld [vmem:[%s3211_s30 + $0xd1] sm:$0xff]  ;;  %v243_v29 = vld [vmem:[%s3211_s30 + $0x2] sm:$0xff]  ;;  %v244_v30 = vld [vmem:[%s3211_s30 + $0xa] sm:$0x3f] }
  0x25   : > { %v3297_v28 = vld [vmem:[%s3211_s30 + $0x10] sm:$0xff]  ;;  %v2722_v32 = vld [vmem:[%s3211_s30 + $0x18] sm:$0x3f]  ;;  %v3315_v34 = vld [vmem:[%s3211_s30 + $0x20] sm:$0xff] }
  0x26   : > { %v2777_v31 = vld [vmem:[%s3211_s30 + $0x12] sm:$0xff]  ;;  %v2778_v35 = vld [vmem:[%s3211_s30 + $0x1a] sm:$0x3f]  ;;  %v2806_v36 = vld [vmem:[%s3211_s30 + $0x28] sm:$0x3f] }
  0x27   : > { %487 = vrot.lane.b32.xlu1 %v222_v6, %s3118_s4  ;;  %485 = vrot.lane.b32.xlu0 %v3233_v7, %s3118_s4  ;;  %v2750_v33 = vld [vmem:[%s3211_s30 + $0x19] sm:$0x3f]  ;;  %v2779_v37 = vld [vmem:[%s3211_s30 + $0x22] sm:$0xff] }
  0x28   : > { %v3333_v38 = vld [vmem:[%s3211_s30 + $0x30] sm:$0xff]  ;;  %v2834_v39 = vld [vmem:[%s3211_s30 + $0x29] sm:$0x3f]  ;;  %v246_v41 = vld [vmem:[%s3211_s30 + $0x1a] sm:$0x3f] }
  0x29   : > { %v2862_v40 = vld [vmem:[%s3211_s30 + $0x2a] sm:$0x3f]  ;;  %v2863_v43 = vld [vmem:[%s3211_s30 + $0x32] sm:$0xff]  ;;  %v2809_v49 = vld [vmem:[%s3211_s30 + $0x40] sm:$0xff] }
  0x2a   : > { %v2724_v42 = vld [vmem:[%s3211_s30 + $0x28] sm:$0x3f]  ;;  %v2808_v47 = vld [vmem:[%s3211_s30 + $0x38] sm:$0x3f]  ;;  %v197_v2 = vld [vmem:[%s3211_s30 + $0x50] sm:$0xff] }
  0x2b   : > { %491 = vrot.lane.b32.xlu1 %v224_v8, %s3118_s4  ;;  %489 = vrot.lane.b32.xlu0 %v3240_v9, %s3118_s4  ;;  %v2752_v45 = vld [vmem:[%s3211_s30 + $0x29] sm:$0x3f]  ;;  %v2836_v48 = vld [vmem:[%s3211_s30 + $0x39] sm:$0x3f] }
  0x2c   : > { %v2780_v46 = vld [vmem:[%s3211_s30 + $0x2a] sm:$0x3f]  ;;  %v2864_v52 = vld [vmem:[%s3211_s30 + $0x3a] sm:$0x3f]  ;;  %v2865_v56 = vld [vmem:[%s3211_s30 + $0x42] sm:$0xff] }
  0x2d   : > { %v248_v55 = vld [vmem:[%s3211_s30 + $0x2a] sm:$0x3f]  ;;  %v2726_v59 = vld [vmem:[%s3211_s30 + $0x38] sm:$0x3f] }
  0x2e   : > { %v2754_v62 = vld [vmem:[%s3211_s30 + $0x39] sm:$0x3f]  ;;  %v2810_v8 = vld [vmem:[%s3211_s30 + $0x48] sm:$0x3f] }
  0x2f   : > { %495 = vrot.lane.b32.xlu1 %v226_v10, %s3118_s4  ;;  %493 = vrot.lane.b32.xlu0 %v3247_v11, %s3118_s4  ;;  %v2782_v3 = vld [vmem:[%s3211_s30 + $0x3a] sm:$0x3f] }
  0x33   : > { %499 = vrot.lane.b32.xlu1 %v228_v12, %s3118_s4  ;;  %497 = vrot.lane.b32.xlu0 %v3254_v13, %s3118_s4 }
  0x37   : > { %503 = vrot.lane.b32.xlu1 %v230_v14, %s3118_s4  ;;  %501 = vrot.lane.b32.xlu0 %v3261_v15, %s3118_s4 }
  0x3b   : > { %507 = vrot.lane.b32.xlu1 %v232_v16, %s3118_s4  ;;  %505 = vrot.lane.b32.xlu0 %v3268_v17, %s3118_s4  ;;  %v2838_v16 = vld [vmem:[%s3211_s30 + $0x49] sm:$0x3f] }
  0x3f   : > { %511 = vrot.lane.b32.xlu1 %v234_v18, %s3118_s4  ;;  %509 = vrot.lane.b32.xlu0 %v3275_v19, %s3118_s4 }
  0x43   : > { %515 = vrot.lane.b32.xlu1 %v236_v20, %s3118_s4  ;;  %513 = vrot.lane.b32.xlu0 %v235_v21, %s3118_s4 }
  0x47   : > { %519 = vrot.lane.b32.xlu1 %v238_v22, %s3118_s4  ;;  %517 = vrot.lane.b32.xlu0 %v237_v23, %s3118_s4  ;;  %v2867_v22 = vld [vmem:[%s3211_s30 + $0x52] sm:$0xff]  ;;  %v2866_v23 = vld [vmem:[%s3211_s30 + $0x4a] sm:$0x3f] }
  0x4b   : > { %523 = vrot.lane.b32.xlu1 %v240_v24, %s3118_s4  ;;  %521 = vrot.lane.b32.xlu0 %v239_v25, %s3118_s4 }
  0x4f   : > { %527 = vrot.lane.b32.xlu1 %v242_v26, %s3118_s4  ;;  %525 = vrot.lane.b32.xlu0 %v241_v27, %s3118_s4  ;;  %v250_v26 = vld [vmem:[%s3211_s30 + $0x3a] sm:$0x3f] }
  0x53   : > { %697 = vrot.lane.b32.xlu1 %v3297_v28, %s3119_s5  ;;  %585 = vrot.lane.b32.xlu0 %v243_v29, %s3120_s6 }
  0x57   : > { %809 = vrot.lane.b32.xlu1 %v3214_v0, %s3121_s7  ;;  %587 = vrot.lane.b32.xlu0 %v244_v30, %s3120_s6  ;;  %v2728_v30 = vld [vmem:[%s3211_s30 + $0x48] sm:$0x3f] }
  0x5b   : > { %921 = vrot.lane.b32.xlu1 %v2777_v31, %s3122_s8  ;;  %699 = vrot.lane.b32.xlu0 %v2722_v32, %s3119_s5 }
  0x5f   : > { %811 = vrot.lane.b32.xlu1 %v2750_v33, %s3121_s7  ;;  %589 = vrot.lane.b32.xlu0 %v2777_v31, %s3120_s6  ;;  %v2756_v33 = vld [vmem:[%s3211_s30 + $0x49] sm:$0x3f] }
  0x63   : > { %701 = vrot.lane.b32.xlu1 %v3315_v34, %s3119_s5  ;;  %1033 = vrot.lane.b32.xlu0 %v3315_v34, %s3123_s9 }
  0x67   : > { %1145 = vrot.lane.b32.xlu1 %v3226_v5, %s3124_s10  ;;  %923 = vrot.lane.b32.xlu0 %v2778_v35, %s3122_s8 }
  0x6b   : > { %1035 = vrot.lane.b32.xlu1 %v2806_v36, %s3123_s9  ;;  %813 = vrot.lane.b32.xlu0 %v3226_v5, %s3121_s7 }
  0x6f   : > { %925 = vrot.lane.b32.xlu1 %v2779_v37, %s3122_s8  ;;  %1257 = vrot.lane.b32.xlu0 %v2779_v37, %s3125_s11 }
  0x73   : > { %1037 = vrot.lane.b32.xlu1 %v3333_v38, %s3123_s9  ;;  %1147 = vrot.lane.b32.xlu0 %v2834_v39, %s3124_s10 }
  0x77   : > { %1149 = vrot.lane.b32.xlu1 %v3233_v7, %s3124_s10  ;;  %1259 = vrot.lane.b32.xlu0 %v2862_v40, %s3125_s11 }
  0x7b   : > { %593 = vrot.lane.b32.xlu1 %v2779_v37, %s3120_s6  ;;  %591 = vrot.lane.b32.xlu0 %v246_v41, %s3120_s6  ;;  %v2784_v37 = vld [vmem:[%s3211_s30 + $0x4a] sm:$0x3f] }
  0x7f   : > { %703 = vrot.lane.b32.xlu1 %v2724_v42, %s3119_s5  ;;  %1261 = vrot.lane.b32.xlu0 %v2863_v43, %s3125_s11 }
  0x83   : > { %815 = vrot.lane.b32.xlu1 %v2752_v45, %s3121_s7  ;;  %705 = vrot.lane.b32.xlu0 %v3333_v38, %s3119_s5  ;;  %v3477_v45 = vld [vmem:[%s3211_s30 + $0x62] sm:$0xff] }
  0x87   : > { %927 = vrot.lane.b32.xlu1 %v2780_v46, %s3122_s8  ;;  %817 = vrot.lane.b32.xlu0 %v3233_v7, %s3121_s7  ;;  %v199_v7 = vld [vmem:[%s3211_s30 + $0x60] sm:$0xff] }
  0x8b   : > { %1039 = vrot.lane.b32.xlu1 %v2808_v47, %s3123_s9  ;;  %929 = vrot.lane.b32.xlu0 %v2863_v43, %s3122_s8 }
  0x8d   : > { %v3364_v50 = vpop.permute.xlu1 %477  ;;  %v3366_v51 = vpop.permute.xlu0 %473 }
  0x8f   : > { %1151 = vrot.lane.b32.xlu1 %v2836_v48, %s3124_s10  ;;  %1041 = vrot.lane.b32.xlu0 %v2809_v49, %s3123_s9  ;;  %v2868_v48 = vld [vmem:[%s3211_s30 + $0x5a] sm:$0x3f] }
  0x91   : > { %v3371_v53 = vpop.permute.xlu1 %479  ;;  %v3373_v54 = vpop.permute.xlu0 %475 }
  0x93   : > { %1263 = vrot.lane.b32.xlu1 %v2864_v52, %s3125_s11  ;;  %1153 = vrot.lane.b32.xlu0 %v3240_v9, %s3124_s10 }
  0x95   : > { %v3380_v57 = vpop.permute.xlu1 %483  ;;  %v3382_v58 = vpop.permute.xlu0 %481 }
  0x97   : > { %595 = vrot.lane.b32.xlu1 %v248_v55, %s3120_s6  ;;  %1265 = vrot.lane.b32.xlu0 %v2865_v56, %s3125_s11  ;;  %v252_v55 = vld [vmem:[%s3211_s30 + $0x4a] sm:$0x3f] }
  0x99   : > { %v3387_v60 = vpop.permute.xlu1 %487  ;;  %v3389_v61 = vpop.permute.xlu0 %485 }
  0x9b   : > { %707 = vrot.lane.b32.xlu1 %v2726_v59, %s3119_s5  ;;  %597 = vrot.lane.b32.xlu0 %v2863_v43, %s3120_s6  ;;  %v2840_v43 = vld [vmem:[%s3211_s30 + $0x59] sm:$0x3f] }
  0x9d   : > { %v3394_v63 = vpop.permute.xlu1 %491  ;;  %v490_v0 = vpop.permute.xlu0 %489 }
  0x9e   : > { %v3397_v1 = vsel %vm1341_vm0, %v2809_v49, %v490_v0 }
  0x9f   : > { %819 = vrot.lane.b32.xlu1 %v2754_v62, %s3121_s7  ;;  %709 = vrot.lane.b32.xlu0 %v2809_v49, %s3119_s5  ;;  %v2730_v62 = vld [vmem:[%s3211_s30 + $0x58] sm:$0x3f] }
  0xa1   : > { %v3403_v4 = vpop.permute.xlu1 %495  ;;  %v494_v5 = vpop.permute.xlu0 %493 }
  0xa2   : > { %v3406_v6 = vsel %vm1341_vm0, %v197_v2, %v494_v5  ;;  %v254_v5 = vld [vmem:[%s3211_s30 + $0x5a] sm:$0x3f] }
  0xa3   : > { %931 = vrot.lane.b32.xlu1 %v2782_v3, %s3122_s8  ;;  %821 = vrot.lane.b32.xlu0 %v3240_v9, %s3121_s7  ;;  %v187_v3 = vld [vmem:[%s3211_s30] sm:$0xff] }
  0xa5   : > { %v3413_v10 = vpop.permute.xlu1 %499  ;;  %v498_v12 = vpop.permute.xlu0 %497 }
  0xa6   : > { %v3416_v14 = vsel %vm1341_vm0, %v199_v7, %v498_v12 }
  0xa7   : > { %1043 = vrot.lane.b32.xlu1 %v2810_v8, %s3123_s9  ;;  %933 = vrot.lane.b32.xlu0 %v2865_v56, %s3122_s8  ;;  %v1342_v8 = vsel %vm1341_vm0, %v187_v3, %v3366_v51 }
  0xa9   : > { %v3421_v18 = vpop.permute.xlu1 %503  ;;  %v3423_v20 = vpop.permute.xlu0 %501 }
  0xab   : > { %1155 = vrot.lane.b32.xlu1 %v2838_v16, %s3124_s10  ;;  %1045 = vrot.lane.b32.xlu0 %v197_v2, %s3123_s9 }
  0xad   : > { %v3427_v9 = vpop.permute.xlu1 %507  ;;  %v3429_v21 = vpop.permute.xlu0 %505 }
  0xaf   : > { %601 = vrot.lane.b32.xlu1 %v2865_v56, %s3120_s6  ;;  %1157 = vrot.lane.b32.xlu0 %v3247_v11, %s3124_s10 }
  0xb1   : > { %v3436_v24 = vpop.permute.xlu1 %511  ;;  %v3438_v25 = vpop.permute.xlu0 %509 }
  0xb3   : > { %1269 = vrot.lane.b32.xlu1 %v2867_v22, %s3125_s11  ;;  %1267 = vrot.lane.b32.xlu0 %v2866_v23, %s3125_s11 }
  0xb5   : > { %v3443_v27 = vpop.permute.xlu1 %515  ;;  %v3445_v29 = vpop.permute.xlu0 %513 }
  0xb7   : > { %599 = vrot.lane.b32.xlu1 %v250_v26, %s3120_s6  ;;  %713 = vrot.lane.b32.xlu0 %v197_v2, %s3119_s5  ;;  %v3507_v26 = vld [vmem:[%s3211_s30 + $0x70] sm:$0xff] }
  0xb9   : > { %v3450_v31 = vpop.permute.xlu1 %519  ;;  %v3452_v32 = vpop.permute.xlu0 %517 }
  0xbb   : > { %711 = vrot.lane.b32.xlu1 %v2728_v30, %s3119_s5  ;;  %825 = vrot.lane.b32.xlu0 %v3247_v11, %s3121_s7  ;;  %v2812_v11 = vld [vmem:[%s3211_s30 + $0x58] sm:$0x3f] }
  0xbd   : > { %v3458_v35 = vpop.permute.xlu1 %523  ;;  %v3460_v36 = vpop.permute.xlu0 %521 }
  0xbf   : > { %823 = vrot.lane.b32.xlu1 %v2756_v33, %s3121_s7  ;;  %937 = vrot.lane.b32.xlu0 %v2867_v22, %s3122_s8  ;;  %v3127_v33 = vmov 1983009808  }
  0xc1   : > { %v3465_v39 = vpop.permute.xlu1 %527  ;;  %v3467_v40 = vpop.permute.xlu0 %525 }
  0xc3   : > { %935 = vrot.lane.b32.xlu1 %v2784_v37, %s3122_s8  ;;  %1049 = vrot.lane.b32.xlu0 %v199_v7, %s3123_s9  ;;  %v1603_v37 = vunpack.c.l.s4 %v3127_v33 }
  0xc5   : > { %v698_v41 = vpop.permute.xlu1 %697  ;;  %v586_v42 = vpop.permute.xlu0 %585 }
  0xc7   : > { %1047 = vrot.lane.b32.xlu1 %v2812_v11, %s3123_s9  ;;  %1161 = vrot.lane.b32.xlu0 %v3254_v13, %s3124_s10  ;;  %v1605_v11 = vlaneseq }
  0xc9   : > { %v810_v46 = vpop.permute.xlu1 %809  ;;  %v588_v47 = vpop.permute.xlu0 %587 }
  0xcb   : > { %1159 = vrot.lane.b32.xlu1 %v2840_v43, %s3124_s10  ;;  %1273 = vrot.lane.b32.xlu0 %v3477_v45, %s3125_s11 }
  0xcd   : > { %v922_v49 = vpop.permute.xlu1 %921  ;;  %v700_v52 = vpop.permute.xlu0 %699 }
  0xcf   : > { %1271 = vrot.lane.b32.xlu1 %v2868_v48, %s3125_s11  ;;  %605 = vrot.lane.b32.xlu0 %v2867_v22, %s3120_s6  ;;  %v2758_v22 = vld [vmem:[%s3211_s30 + $0x59] sm:$0x3f] }
  0xd0   : > { %v2786_v48 = vld [vmem:[%s3211_s30 + $0x5a] sm:$0x3f] }
  0xd1   : > { %v812_v56 = vpop.permute.xlu1 %811  ;;  %v3486_v59 = vpop.permute.xlu0 %589 }
  0xd3   : > { %603 = vrot.lane.b32.xlu1 %v252_v55, %s3120_s6  ;;  %717 = vrot.lane.b32.xlu0 %v199_v7, %s3119_s5  ;;  %v1371_v7 = vsel %vm1370_vm1, %v1342_v8, %v586_v42  ;;  %v2732_v55 = vld [vmem:[%s3211_s30 + $0x68] sm:$0x3f]  ;;  %v1606_v8 = vshrl.u32 %v1605_v11, 7 }
  0xd5   : > { %v3491_v0 = vpop.permute.xlu1 %701  ;;  %v1034_v2 = vpop.permute.xlu0 %1033 }
  0xd7   : > { %715 = vrot.lane.b32.xlu1 %v2730_v62, %s3119_s5  ;;  %829 = vrot.lane.b32.xlu0 %v3254_v13, %s3121_s7  ;;  %v1400_v13 = vsel %vm1399_vm2, %v1371_v7, %v698_v41  ;;  %v188_v41 = vld [vmem:[%s3211_s30 + $0x8] sm:$0x3f] }
  0xd8   : > { %v1429_v30 = vsel %vm1428_vm3, %v1400_v13, %v810_v46  ;;  %v1343_v7 = vsel %vm1341_vm0, %v188_v41, %v3373_v54 }
  0xd9   : > { %v1146_v12 = vpop.permute.xlu1 %1145  ;;  %v924_v16 = vpop.permute.xlu0 %923  ;;  %v1458_v42 = vsel %vm1457_vm4, %v1429_v30, %v922_v49 }
  0xda   : > { %v1487_v43 = vsel %vm1486_vm5, %v1458_v42, %v1034_v2  ;;  %v1372_v2 = vsel %vm1370_vm1, %v1343_v7, %v588_v47  ;;  %v3536_v47 = vld [vmem:[%s3211_s30 + $0x72] sm:$0xff] }
  0xdb   : > { %607 = vrot.lane.b32.xlu1 %v254_v5, %s3120_s6  ;;  %941 = vrot.lane.b32.xlu0 %v3477_v45, %s3122_s8  ;;  %v1516_v46 = vsel %vm1515_vm6, %v1487_v43, %v1146_v12  ;;  %v1604_v5 = vunpack.c.0.s8 %v1603_v37  ;;  %v1401_v12 = vsel %vm1399_vm2, %v1372_v2, %v700_v52  ;;  %v2814_v52 = vld [vmem:[%s3211_s30 + $0x68] sm:$0x3f] }
  0xdc   : > { %v1430_v37 = vsel %vm1428_vm3, %v1401_v12, %v812_v56 }
  0xdd   : > { %v1036_v51 = vpop.permute.xlu1 %1035  ;;  %v814_v23 = vpop.permute.xlu0 %813  ;;  %v3528_v11 = vsub.s32 %v1604_v5, %v1606_v8  ;;  %v1459_v42 = vsel %vm1457_vm4, %v1430_v37, %v924_v16  ;;  %v2842_v5 = vld [vmem:[%s3211_s30 + $0x69] sm:$0x3f]  ;;  %v2816_v37 = vld [vmem:[%s3211_s30 + $0x78] sm:$0x3f] }
  0xde   : > { %v1488_v54 = vsel %vm1486_vm5, %v1459_v42, %v1036_v51  ;;  %v2788_v8 = vld [vmem:[%s3211_s30 + $0x6a] sm:$0x3f] }
  0xdf   : > { %1053 = vrot.lane.b32.xlu1 %v3507_v26, %s3123_s9  ;;  %827 = vrot.lane.b32.xlu0 %v2758_v22, %s3121_s7  ;;  %v2760_v22 = vld [vmem:[%s3211_s30 + $0x69] sm:$0x3f] }
  0xe1   : > { %v926_v62 = vpop.permute.xlu1 %925  ;;  %v1258_v3 = vpop.permute.xlu0 %1257 }
  0xe2   : > { %v1545_v49 = vsel %vm1544_vm7, %v1516_v46, %v1258_v3  ;;  %v1344_v46 = vsel %vm1341_vm0, %v3297_v28, %v3364_v50 }
  0xe3   : > { %939 = vrot.lane.b32.xlu1 %v2786_v48, %s3122_s8  ;;  %719 = vrot.lane.b32.xlu0 %v2732_v55, %s3119_s5  ;;  %v1601_v13 = vcombine.high %v1545_v49, %v1545_v49  ;;  %v1608_v16 = vrot.slane %v1545_v49, %v3528_v11  ;;  %v1373_v51 = vsel %vm1370_vm1, %v1344_v46, %v3486_v59 }
  0xe4   : > { %v1402_v49 = vsel %vm1399_vm2, %v1373_v51, %v3491_v0 }
  0xe5   : > { %v1038_v30 = vpop.permute.xlu1 %1037  ;;  %v1148_v33 = vpop.permute.xlu0 %1147  ;;  %v1615_v41 = vrot.slane %v1601_v13, %v3528_v11  ;;  %v1431_v50 = vsel %vm1428_vm3, %v1402_v49, %v814_v23 }
  0xe6   : > { %v1517_v56 = vsel %vm1515_vm6, %v1488_v54, %v1148_v33  ;;  %v1460_v12 = vsel %vm1457_vm4, %v1431_v50, %v926_v62 }
  0xe7   : > { %831 = vrot.lane.b32.xlu1 %v2760_v22, %s3121_s7  ;;  %1165 = vrot.lane.b32.xlu0 %v3261_v15, %s3124_s10  ;;  %v1617_v7 = vcombine.high %v1615_v41, %v1615_v41  ;;  %v1616_v22 = vcombine.high %v1608_v16, %v1608_v16  ;;  %v1489_v59 = vsel %vm1486_vm5, %v1460_v12, %v1038_v30  ;;  %v2870_v30 = vld [vmem:[%s3211_s30 + $0x6a] sm:$0x3f] }
  0xe9   : > { %v1150_v43 = vpop.permute.xlu1 %1149  ;;  %v1260_v48 = vpop.permute.xlu0 %1259  ;;  %v2071_v0 = vcombine.low %v1615_v41, %v1617_v7 }
  0xea   : > { %v1546_v55 = vsel %vm1544_vm7, %v1517_v56, %v1260_v48  ;;  %v1518_v42 = vsel %vm1515_vm6, %v1489_v59, %v1150_v43  ;;  %v2070_v56 = vcombine.low %v1608_v16, %v1616_v22  ;;  %v2872_v59 = vld [vmem:[%s3211_s30 + $0x7a] sm:$0x3f] }
  0xeb   : > { %v1625_v3 = vrot.slane %v1546_v55, %v3528_v11  ;;  %1277 = vrot.lane.b32.xlu1 %v3536_v47, %s3125_s11  ;;  %1051 = vrot.lane.b32.xlu0 %v2814_v52, %s3123_s9  ;;  %v1618_v13 = vcombine.high %v1546_v55, %v1546_v55  ;;  %v2085_v46 = vrot.slane %v2071_v0, %v3528_v11 }
  0xec   : > { %v2078_v51 = vrot.slane %v2070_v56, %v3528_v11  ;;  %v2734_v56 = vld [vmem:[%s3211_s30 + $0x78] sm:$0x3f] }
  0xed   : > { %v3556_v2 = vpop.permute.xlu1 %593  ;;  %v592_v28 = vpop.permute.xlu0 %591  ;;  %v1633_v33 = vcombine.high %v1625_v3, %v1625_v3  ;;  %v1632_v62 = vrot.slane %v1618_v13, %v3528_v11 }
  0xee   : > { %v2086_v50 = vcombine.low %v2078_v51, %v2085_v46 }
  0xef   : > { %1163 = vrot.lane.b32.xlu1 %v2842_v5, %s3124_s10  ;;  %943 = vrot.lane.b32.xlu0 %v2788_v8, %s3122_s8  ;;  %v2087_v48 = vcombine.low %v1625_v3, %v1633_v33  ;;  %v2844_v8 = vld [vmem:[%s3211_s30 + $0x79] sm:$0x3f] }
  0xf0   : > { %v190_v33 = vld [vmem:[%s3211_s30 + $0x18] sm:$0x3f] }
  0xf1   : > { %v704_v54 = vpop.permute.xlu1 %703  ;;  %v1262_v52 = vpop.permute.xlu0 %1261  ;;  %v2095_v3 = vrot.slane %v2087_v48, %v3528_v11 }
  0xf2   : > { %v1547_v23 = vsel %vm1544_vm7, %v1518_v42, %v1262_v52  ;;  %v1345_v42 = vsel %vm1341_vm0, %v190_v33, %v3371_v53  ;;  %v1346_v53 = vsel %vm1341_vm0, %v3315_v34, %v3382_v58 }
  0xf3   : > { %v3568_v55 = vrot.slane %v1547_v23, %v3528_v11  ;;  %1055 = vrot.lane.b32.xlu1 %v2816_v37, %s3123_s9  ;;  %609 = vrot.lane.b32.xlu0 %v3477_v45, %s3120_s6  ;;  %v256_v45 = vld [vmem:[%s3211_s30 + $0x6a] sm:$0x3f]  ;;  %v1374_v52 = vsel %vm1370_vm1, %v1345_v42, %v592_v28  ;;  %v1634_v48 = vcombine.high %v1547_v23, %v1547_v23  ;;  %v2790_v42 = vld [vmem:[%s3211_s30 + $0x7a] sm:$0x3f] }
  0xf5   : > { %v2088_v41 = vcombine.low %v1632_v62, %v3568_v55  ;;  %v816_v43 = vpop.permute.xlu1 %815  ;;  %v706_v16 = vpop.permute.xlu0 %705  ;;  %v1403_v62 = vsel %vm1399_vm2, %v1374_v52, %v704_v54  ;;  %v2762_v54 = vld [vmem:[%s3211_s30 + $0x79] sm:$0x3f]  ;;  %v1648_v23 = vrot.slane %v1634_v48, %v3528_v11 }
  0xf6   : > { %v1432_v46 = vsel %vm1428_vm3, %v1403_v62, %v816_v43 }
  0xf7   : > { %v2102_v5 = vrot.slane %v2088_v41, %v3528_v11  ;;  %721 = vrot.lane.b32.xlu1 %v3507_v26, %s3119_s5  ;;  %1275 = vrot.lane.b32.xlu0 %v2870_v30, %s3125_s11 }
  0xf9   : > { %v928_v49 = vpop.permute.xlu1 %927  ;;  %v818_v7 = vpop.permute.xlu0 %817  ;;  %v2103_v22 = vcombine.low %v2095_v3, %v2102_v5  ;;  %v3621_v5 = vld [vmem:[%s3211_s30 + $0x80] sm:$0xff] }
  0xfa   : > { %v1461_v51 = vsel %vm1457_vm4, %v1432_v46, %v928_v49 }
  0xfb   : > { %611 = vrot.lane.b32.xlu1 %v256_v45, %s3120_s6  ;;  %1167 = vrot.lane.b32.xlu0 %v2844_v8, %s3124_s10  ;;  %v2923_v13 = vpack.c.bf16 %v2103_v22, %v2086_v50 }
  0xfd   : > { %v1040_v37 = vpop.permute.xlu1 %1039  ;;  %v930_v0 = vpop.permute.xlu0 %929  ;;  %2925 = vmatpush1.bf16.xpose.msk.msra.mxu0 %vm3586_vm9, %v2923_v13  ;;  %v1650_v13 = vcombine.high %v1648_v23, %v1648_v23 }
  0xfe   : > { %2926 = vmatprep.subr.bf16.mxu0 %v3126_v44  ;;  %v1490_v28 = vsel %vm1486_vm5, %v1461_v51, %v1040_v37  ;;  %v2818_v51 = vld [vmem:[%s3211_s30 + $0x88] sm:$0x3f] }
  0xff   : > { %1279 = vrot.lane.b32.xlu1 %v2872_v59, %s3125_s11  ;;  %833 = vrot.lane.b32.xlu0 %v3261_v15, %s3121_s7  ;;  %v1375_v15 = vsel %vm1370_vm1, %v1346_v53, %v3556_v2 }
 0x100   : > { %v1404_v43 = vsel %vm1399_vm2, %v1375_v15, %v706_v16  ;;  %v1649_v16 = vcombine.high %v3568_v55, %v3568_v55  ;;  %v3642_v55 = vld [vmem:[%s3211_s30 + $0x82] sm:$0xff] }
 0x101   : > { %v1152_v30 = vpop.permute.xlu1 %1151  ;;  %v1042_v41 = vpop.permute.xlu0 %1041  ;;  %v1433_v45 = vsel %vm1428_vm3, %v1404_v43, %v818_v7 }
 0x102   : > { %v1519_v3 = vsel %vm1515_vm6, %v1490_v28, %v1152_v30  ;;  %v1462_v2 = vsel %vm1457_vm4, %v1433_v45, %v930_v0  ;;  %v2104_v48 = vcombine.low %v1649_v16, %v1648_v23 }
 0x103   : > { %945 = vrot.lane.b32.xlu1 %v3536_v47, %s3122_s8  ;;  %723 = vrot.lane.b32.xlu0 %v2734_v56, %s3119_s5  ;;  %v1491_v22 = vsel %vm1486_vm5, %v1462_v2, %v1042_v41 }
 0x105   : > { %v1264_v34 = vpop.permute.xlu1 %1263  ;;  %v1154_v58 = vpop.permute.xlu0 %1153 }
 0x106   : > { %v1548_v8 = vsel %vm1544_vm7, %v1519_v3, %v1264_v34  ;;  %v1520_v59 = vsel %vm1515_vm6, %v1491_v22, %v1154_v58  ;;  %v2846_v58 = vld [vmem:[%s3211_s30 + $0x89] sm:$0x3f] }
 0x107   : > { %v1651_v49 = vcombine.high %v1548_v8, %v1548_v8  ;;  %v1658_v50 = vrot.slane %v1548_v8, %v3528_v11  ;;  %1057 = vrot.lane.b32.xlu1 %v3621_v5, %s3123_s9  ;;  %835 = vrot.lane.b32.xlu0 %v2762_v54, %s3121_s7  ;;  %v2112_v54 = vrot.slane %v2104_v48, %v3528_v11 }
 0x109   : > { %v1665_v7 = vrot.slane %v1651_v49, %v3528_v11  ;;  %v1666_v33 = vcombine.high %v1658_v50, %v1658_v50  ;;  %v596_v37 = vpop.permute.xlu1 %595  ;;  %v1266_v0 = vpop.permute.xlu0 %1265  ;;  %v2105_v56 = vcombine.low %v1650_v13, %v1658_v50  ;;  %v2874_v50 = vld [vmem:[%s3211_s30 + $0x8a] sm:$0x3f] }
 0x10a   : > { %v1549_v52 = vsel %vm1544_vm7, %v1520_v59, %v1266_v0 }
 0x10b   : > { %v1674_v62 = vrot.slane %v1549_v52, %v3528_v11  ;;  %1169 = vrot.lane.b32.xlu1 %v3268_v17, %s3124_s10  ;;  %947 = vrot.lane.b32.xlu0 %v2790_v42, %s3122_s8  ;;  %v2121_v30 = vcombine.low %v1666_v33, %v1665_v7  ;;  %v2119_v15 = vrot.slane %v2105_v56, %v3528_v11  ;;  %v192_v7 = vld [vmem:[%s3211_s30 + $0x28] sm:$0x3f] }
 0x10c   : > { %v1667_v33 = vcombine.high %v1549_v52, %v1549_v52  ;;  %v2736_v42 = vld [vmem:[%s3211_s30 + $0x88] sm:$0x3f]  ;;  %v1347_v56 = vsel %vm1341_vm0, %v192_v7, %v3380_v57 }
 0x10d   : > { %v1682_v41 = vcombine.high %v1674_v62, %v1674_v62  ;;  %v708_v46 = vpop.permute.xlu1 %707  ;;  %v598_v53 = vpop.permute.xlu0 %597  ;;  %v2129_v43 = vrot.slane %v2121_v30, %v3528_v11  ;;  %v2120_v45 = vcombine.low %v2112_v54, %v2119_v15 }
 0x10e   : > { %v1681_v52 = vrot.slane %v1667_v33, %v3528_v11 }
 0x10f   : > { %v2122_v28 = vcombine.low %v1674_v62, %v1682_v41  ;;  %1281 = vrot.lane.b32.xlu1 %v3642_v55, %s3125_s11  ;;  %1059 = vrot.lane.b32.xlu0 %v2818_v51, %s3123_s9  ;;  %v1348_v62 = vsel %vm1341_vm0, %v3333_v38, %v3389_v61  ;;  %v2764_v38 = vld [vmem:[%s3211_s30 + $0x89] sm:$0x3f]  ;;  %v3686_v61 = vld [vmem:[%s3211_s30 + $0x90] sm:$0xff] }
 0x110   : > { %v1377_v48 = vsel %vm1370_vm1, %v1348_v62, %v598_v53  ;;  %v2820_v62 = vld [vmem:[%s3211_s30 + $0x98] sm:$0x3f] }
 0x111   : > { %v2136_v23 = vrot.slane %v2122_v28, %v3528_v11  ;;  %v820_v3 = vpop.permute.xlu1 %819  ;;  %v710_v34 = vpop.permute.xlu0 %709 }
 0x112   : > { %v1406_v41 = vsel %vm1399_vm2, %v1377_v48, %v710_v34 }
 0x113   : > { %v2137_v8 = vcombine.low %v2129_v43, %v2136_v23  ;;  %613 = vrot.lane.b32.xlu1 %v3536_v47, %s3120_s6  ;;  %1171 = vrot.lane.b32.xlu0 %v2846_v58, %s3124_s10  ;;  %v258_v47 = vld [vmem:[%s3211_s30 + $0x7a] sm:$0x3f] }
 0x115   : > { %v932_v2 = vpop.permute.xlu1 %931  ;;  %v822_v49 = vpop.permute.xlu0 %821  ;;  %v2927_v16 = vpack.c.bf16 %v2137_v8, %v2120_v45  ;;  %v2792_v45 = vld [vmem:[%s3211_s30 + $0x8a] sm:$0x3f] }
 0x117   : > { %725 = vrot.lane.b32.xlu1 %v3621_v5, %s3119_s5  ;;  %2929 = vmatpush1.bf16.xpose.msk.msra.mxu0 %vm3586_vm9, %v2927_v16 }
 0x118   : > { %1283 = vrot.lane.b32.xlu0 %v2874_v50, %s3125_s11  ;;  %2930 = vmatprep.subr.bf16.mxu0 %v3126_v44 }
 0x119   : > { %v1044_v22 = vpop.permute.xlu1 %1043  ;;  %v934_v13 = vpop.permute.xlu0 %933 }
 0x11b   : > { %837 = vrot.lane.b32.xlu1 %v3268_v17, %s3121_s7  ;;  %v1376_v17 = vsel %vm1370_vm1, %v1347_v56, %v596_v37  ;;  %v1435_v37 = vsel %vm1428_vm3, %v1406_v41, %v822_v49 }
 0x11c   : > { %615 = vrot.lane.b32.xlu0 %v258_v47, %s3120_s6  ;;  %v1405_v30 = vsel %vm1399_vm2, %v1376_v17, %v708_v46  ;;  %v1464_v53 = vsel %vm1457_vm4, %v1435_v37, %v934_v13  ;;  %v1683_v46 = vcombine.high %v1681_v52, %v1681_v52  ;;  %v3708_v47 = vld [vmem:[%s3211_s30 + $0x92] sm:$0xff] }
 0x11d   : > { %v1156_v59 = vpop.permute.xlu1 %1155  ;;  %v1046_v0 = vpop.permute.xlu0 %1045  ;;  %v1434_v15 = vsel %vm1428_vm3, %v1405_v30, %v820_v3  ;;  %v2848_v37 = vld [vmem:[%s3211_s30 + $0x99] sm:$0x3f] }
 0x11e   : > { %v1463_v28 = vsel %vm1457_vm4, %v1434_v15, %v932_v2  ;;  %v1493_v43 = vsel %vm1486_vm5, %v1464_v53, %v1046_v0  ;;  %v2138_v13 = vcombine.low %v1681_v52, %v1683_v46 }
 0x11f   : > { %949 = vrot.lane.b32.xlu1 %v3642_v55, %s3122_s8  ;;  %v1492_v54 = vsel %vm1486_vm5, %v1463_v28, %v1044_v22 }
 0x120   : > { %727 = vrot.lane.b32.xlu0 %v2736_v42, %s3119_s5  ;;  %v1521_v23 = vsel %vm1515_vm6, %v1492_v54, %v1156_v59  ;;  %v2146_v52 = vrot.slane %v2138_v13, %v3528_v11 }
 0x121   : > { %v3682_v57 = vpop.permute.xlu1 %601  ;;  %v1158_v51 = vpop.permute.xlu0 %1157 }
 0x122   : > { %v1522_v3 = vsel %vm1515_vm6, %v1493_v43, %v1158_v51  ;;  %v2876_v43 = vld [vmem:[%s3211_s30 + $0x9a] sm:$0x3f] }
 0x123   : > { %1061 = vrot.lane.b32.xlu1 %v3686_v61, %s3123_s9 }
 0x124   : > { %839 = vrot.lane.b32.xlu0 %v2764_v38, %s3121_s7 }
 0x125   : > { %v1270_v34 = vpop.permute.xlu1 %1269  ;;  %v1268_v58 = vpop.permute.xlu0 %1267 }
 0x126   : > { %v1551_v8 = vsel %vm1544_vm7, %v1522_v3, %v1270_v34  ;;  %v1550_v2 = vsel %vm1544_vm7, %v1521_v23, %v1268_v58  ;;  %v2765_v3 = vld [vmem:[%s3211_s30 + $0x91] sm:$0xff]  ;;  %v260_v58 = vld [vmem:[%s3211_s30 + $0x8a] sm:$0x3f] }
 0x127   : > { %v1700_v49 = vcombine.high %v1551_v8, %v1551_v8  ;;  %v1707_v50 = vrot.slane %v1551_v8, %v3528_v11  ;;  %v1684_v16 = vcombine.high %v1550_v2, %v1550_v2  ;;  %v1691_v22 = vrot.slane %v1550_v2, %v3528_v11  ;;  %1173 = vrot.lane.b32.xlu1 %v3275_v19, %s3124_s10 }
 0x128   : > { %951 = vrot.lane.b32.xlu0 %v2792_v45, %s3122_s8  ;;  %v194_v45 = vld [vmem:[%s3211_s30 + $0x38] sm:$0x3f]  ;;  %v1379_v8 = vsel %vm1370_vm1, %v3397_v1, %v3682_v57 }
 0x129   : > { %v3711_v7 = vrot.slane %v1700_v49, %v3528_v11  ;;  %v1715_v33 = vcombine.high %v1707_v50, %v1707_v50  ;;  %v1698_v59 = vrot.slane %v1684_v16, %v3528_v11  ;;  %v1699_v0 = vcombine.high %v1691_v22, %v1691_v22  ;;  %v600_v42 = vpop.permute.xlu1 %599  ;;  %v714_v56 = vpop.permute.xlu0 %713  ;;  %v2738_v16 = vld [vmem:[%s3211_s30 + $0x98] sm:$0x3f] }
 0x12a   : > { %v1408_v2 = vsel %vm1399_vm2, %v1379_v8, %v714_v56  ;;  %v1349_v13 = vsel %vm1341_vm0, %v194_v45, %v3387_v60  ;;  %v2766_v57 = vld [vmem:[%s3211_s30 + $0x99] sm:$0x3f] }
 0x12b   : > { %v2156_v17 = vcombine.low %v1715_v33, %v3711_v7  ;;  %v2139_v48 = vcombine.low %v1691_v22, %v1699_v0  ;;  %v2155_v19 = vcombine.low %v1698_v59, %v1707_v50  ;;  %1285 = vrot.lane.b32.xlu1 %v3708_v47, %s3125_s11  ;;  %v1378_v59 = vsel %vm1370_vm1, %v1349_v13, %v600_v42 }
 0x12c   : > { %1063 = vrot.lane.b32.xlu0 %v2820_v62, %s3123_s9 }
 0x12d   : > { %v2170_v30 = vrot.slane %v2156_v17, %v3528_v11  ;;  %v2153_v41 = vrot.slane %v2139_v48, %v3528_v11  ;;  %v2163_v51 = vrot.slane %v2155_v19, %v3528_v11  ;;  %v712_v38 = vpop.permute.xlu1 %711  ;;  %v826_v15 = vpop.permute.xlu0 %825 }
 0x12e   : > { %v1437_v22 = vsel %vm1428_vm3, %v1408_v2, %v826_v15  ;;  %v1407_v0 = vsel %vm1399_vm2, %v1378_v59, %v712_v38  ;;  %v2794_v2 = vld [vmem:[%s3211_s30 + $0x9a] sm:$0x3f] }
 0x12f   : > { %v2154_v28 = vcombine.low %v2146_v52, %v2153_v41  ;;  %617 = vrot.lane.b32.xlu1 %v3642_v55, %s3120_s6  ;;  %v2171_v53 = vcombine.low %v2163_v51, %v2170_v30 }
 0x130   : > { %1175 = vrot.lane.b32.xlu0 %v2848_v37, %s3124_s10 }
 0x131   : > { %v824_v46 = vpop.permute.xlu1 %823  ;;  %v938_v54 = vpop.permute.xlu0 %937  ;;  %v2931_v23 = vpack.c.bf16 %v2171_v53, %v2154_v28  ;;  %v3769_v28 = vld [vmem:[%s3211_s30 + $0xa0] sm:$0xff] }
 0x132   : > { %v1466_v33 = vsel %vm1457_vm4, %v1437_v22, %v938_v54  ;;  %v1436_v60 = vsel %vm1428_vm3, %v1407_v0, %v824_v46 }
 0x133   : > { %729 = vrot.lane.b32.xlu1 %v3686_v61, %s3119_s5  ;;  %2933 = vmatpush1.bf16.xpose.msk.msra.mxu0 %vm3586_vm9, %v2931_v23  ;;  %v2849_v23 = vld [vmem:[%s3211_s30 + $0xa1] sm:$0xff] }
 0x134   : > { %1287 = vrot.lane.b32.xlu0 %v2876_v43, %s3125_s11  ;;  %2934 = vmatprep.subr.bf16.mxu0 %v3126_v44 }
 0x135   : > { %v936_v55 = vpop.permute.xlu1 %935  ;;  %v1050_v34 = vpop.permute.xlu0 %1049 }
 0x136   : > { %v1495_v1 = vsel %vm1486_vm5, %v1466_v33, %v1050_v34  ;;  %v1465_v19 = vsel %vm1457_vm4, %v1436_v60, %v936_v55 }
 0x137   : > { %841 = vrot.lane.b32.xlu1 %v2765_v3, %s3121_s7 }
 0x138   : > { %619 = vrot.lane.b32.xlu0 %v260_v58, %s3120_s6 }
 0x139   : > { %v1048_v49 = vpop.permute.xlu1 %1047  ;;  %v1162_v50 = vpop.permute.xlu0 %1161 }
 0x13a   : > { %v1524_v56 = vsel %vm1515_vm6, %v1495_v1, %v1162_v50  ;;  %v1494_v30 = vsel %vm1486_vm5, %v1465_v19, %v1048_v49 }
 0x13b   : > { %953 = vrot.lane.b32.xlu1 %v3708_v47, %s3122_s8 }
 0x13c   : > { %731 = vrot.lane.b32.xlu0 %v2738_v16, %s3119_s5 }
 0x13d   : > { %v1160_v62 = vpop.permute.xlu1 %1159  ;;  %v1274_v17 = vpop.permute.xlu0 %1273 }
 0x13e   : > { %v1553_v48 = vsel %vm1544_vm7, %v1524_v56, %v1274_v17  ;;  %v1523_v41 = vsel %vm1515_vm6, %v1494_v30, %v1160_v62  ;;  %v2795_v56 = vld [vmem:[%s3211_s30 + $0xa2] sm:$0xff]  ;;  %v2851_v30 = vld [vmem:[%s3211_s30 + $0xb1] sm:$0xff] }
 0x13f   : > { %v1733_v52 = vcombine.high %v1553_v48, %v1553_v48  ;;  %v1740_v42 = vrot.slane %v1553_v48, %v3528_v11  ;;  %843 = vrot.lane.b32.xlu1 %v2766_v57, %s3121_s7 }
 0x140   : > { %621 = vrot.lane.b32.xlu0 %v3708_v47, %s3120_s6  ;;  %v1716_v47 = vcombine.high %v3711_v7, %v3711_v7  ;;  %v2822_v7 = vld [vmem:[%s3211_s30 + $0xa8] sm:$0x3f] }
 0x141   : > { %v1747_v51 = vrot.slane %v1733_v52, %v3528_v11  ;;  %v1748_v38 = vcombine.high %v1740_v42, %v1740_v42  ;;  %v1272_v15 = vpop.permute.xlu1 %1271  ;;  %v3766_v37 = vpop.permute.xlu0 %605  ;;  %v2850_v52 = vld [vmem:[%s3211_s30 + $0xa9] sm:$0x3f] }
 0x142   : > { %v1552_v53 = vsel %vm1544_vm7, %v1523_v41, %v1272_v15 }
 0x143   : > { %v1749_v46 = vcombine.high %v1747_v51, %v1747_v51  ;;  %v1717_v54 = vcombine.high %v1552_v53, %v1552_v53  ;;  %v1724_v43 = vrot.slane %v1552_v53, %v3528_v11  ;;  %733 = vrot.lane.b32.xlu1 %v3769_v28, %s3119_s5  ;;  %v2189_v3 = vcombine.low %v1740_v42, %v1748_v38  ;;  %v3801_v42 = vld [vmem:[%s3211_s30 + $0xb0] sm:$0xff]  ;;  %v2878_v38 = vld [vmem:[%s3211_s30 + $0xaa] sm:$0x3f] }
 0x144   : > { %1065 = vrot.lane.b32.xlu0 %v3769_v28, %s3123_s9 }
 0x145   : > { %v2190_v55 = vcombine.low %v1747_v51, %v1749_v46  ;;  %v1731_v34 = vrot.slane %v1717_v54, %v3528_v11  ;;  %v1732_v58 = vcombine.high %v1724_v43, %v1724_v43  ;;  %v604_v45 = vpop.permute.xlu1 %603  ;;  %v718_v8 = vpop.permute.xlu0 %717  ;;  %v2172_v49 = vcombine.low %v1716_v47, %v1724_v43  ;;  %v262_v46 = vld [vmem:[%s3211_s30 + $0x9a] sm:$0x3f]  ;;  %v2740_v54 = vld [vmem:[%s3211_s30 + $0xa8] sm:$0x3f] }
 0x146   : > { %v2197_v22 = vrot.slane %v2189_v3, %v3528_v11  ;;  %v196_v3 = vld [vmem:[%s3211_s30 + $0x48] sm:$0x3f] }
 0x147   : > { %v2204_v50 = vrot.slane %v2190_v55, %v3528_v11  ;;  %v2173_v16 = vcombine.low %v1732_v58, %v1731_v34  ;;  %1177 = vrot.lane.b32.xlu1 %v2849_v23, %s3124_s10  ;;  %v2180_v13 = vrot.slane %v2172_v49, %v3528_v11  ;;  %v2768_v55 = vld [vmem:[%s3211_s30 + $0xa9] sm:$0x3f]  ;;  %v1381_v34 = vsel %vm1370_vm1, %v3406_v6, %v3766_v37 }
 0x148   : > { %955 = vrot.lane.b32.xlu0 %v2794_v2, %s3122_s8  ;;  %v1410_v49 = vsel %vm1399_vm2, %v1381_v34, %v718_v8  ;;  %v2796_v6 = vld [vmem:[%s3211_s30 + $0xaa] sm:$0x3f] }
 0x149   : > { %v2187_v33 = vrot.slane %v2173_v16, %v3528_v11  ;;  %v716_v59 = vpop.permute.xlu1 %715  ;;  %v830_v1 = vpop.permute.xlu0 %829  ;;  %v2205_v57 = vcombine.low %v2197_v22, %v2204_v50  ;;  %v1351_v50 = vsel %vm1341_vm0, %v196_v3, %v3394_v63 }
 0x14a   : > { %v1439_v16 = vsel %vm1428_vm3, %v1410_v49, %v830_v1  ;;  %v3867_v49 = vld [vmem:[%s3211_s30 + $0xc0] sm:$0xff] }
 0x14b   : > { %v2188_v0 = vcombine.low %v2180_v13, %v2187_v33  ;;  %1067 = vrot.lane.b32.xlu1 %v2822_v7, %s3123_s9  ;;  %v1380_v7 = vsel %vm1370_vm1, %v1351_v50, %v604_v45 }
 0x14c   : > { %845 = vrot.lane.b32.xlu0 %v2849_v23, %s3121_s7  ;;  %v3815_v23 = vld [vmem:[%s3211_s30 + $0xb2] sm:$0xff]  ;;  %v1409_v37 = vsel %vm1399_vm2, %v1380_v7, %v716_v59 }
 0x14d   : > { %v3792_v62 = vpop.permute.xlu1 %607  ;;  %v942_v17 = vpop.permute.xlu0 %941  ;;  %v2935_v60 = vpack.c.bf16 %v2205_v57, %v2188_v0  ;;  %v198_v0 = vld [vmem:[%s3211_s30 + $0x58] sm:$0x3f] }
 0x14e   : > { %v1468_v22 = vsel %vm1457_vm4, %v1439_v16, %v942_v17  ;;  %v2824_v59 = vld [vmem:[%s3211_s30 + $0xb8] sm:$0x3f] }
 0x14f   : > { %957 = vrot.lane.b32.xlu1 %v2795_v56, %s3122_s8  ;;  %2937 = vmatpush1.bf16.xpose.msk.msra.mxu0 %vm3586_vm9, %v2935_v60 }
 0x150   : > { %1289 = vrot.lane.b32.xlu0 %v2795_v56, %s3125_s11  ;;  %2938 = vmatprep.subr.bf16.mxu0 %v3126_v44 }
 0x151   : > { %v1054_v48 = vpop.permute.xlu1 %1053  ;;  %v828_v19 = vpop.permute.xlu0 %827 }
 0x152   : > { %v1497_v8 = vsel %vm1486_vm5, %v1468_v22, %v1054_v48  ;;  %v1438_v33 = vsel %vm1428_vm3, %v1409_v37, %v828_v19  ;;  %v2880_v22 = vld [vmem:[%s3211_s30 + $0xba] sm:$0x3f] }
 0x153   : > { %1069 = vrot.lane.b32.xlu1 %v3801_v42, %s3123_s9 }
 0x154   : > { %1179 = vrot.lane.b32.xlu0 %v2850_v52, %s3124_s10 }
 0x155   : > { %v940_v41 = vpop.permute.xlu1 %939  ;;  %v720_v51 = vpop.permute.xlu0 %719 }
 0x156   : > { %v1467_v45 = vsel %vm1457_vm4, %v1438_v33, %v940_v41  ;;  %v1353_v41 = vsel %vm1341_vm0, %v198_v0, %v3403_v4  ;;  %v2853_v33 = vld [vmem:[%s3211_s30 + $0xc1] sm:$0xff] }
 0x157   : > { %1181 = vrot.lane.b32.xlu1 %v2851_v30, %s3124_s10 }
 0x158   : > { %1291 = vrot.lane.b32.xlu0 %v2878_v38, %s3125_s11 }
 0x159   : > { %v832_v15 = vpop.permute.xlu1 %831  ;;  %v1166_v53 = vpop.permute.xlu0 %1165 }
 0x15a   : > { %v1526_v1 = vsel %vm1515_vm6, %v1497_v8, %v1166_v53 }
 0x15b   : > { %625 = vrot.lane.b32.xlu1 %v2795_v56, %s3120_s6 }
 0x15c   : > { %623 = vrot.lane.b32.xlu0 %v262_v46, %s3120_s6 }
 0x15d   : > { %v1278_v43 = vpop.permute.xlu1 %1277  ;;  %v1052_v47 = vpop.permute.xlu0 %1051 }
 0x15e   : > { %v1555_v57 = vsel %vm1544_vm7, %v1526_v1, %v1278_v43  ;;  %v1496_v56 = vsel %vm1486_vm5, %v1467_v45, %v1052_v47 }
 0x15f   : > { %735 = vrot.lane.b32.xlu1 %v2740_v54, %s3119_s5  ;;  %v1766_v19 = vcombine.high %v1555_v57, %v1555_v57  ;;  %v1773_v38 = vrot.slane %v1555_v57, %v3528_v11  ;;  %v2852_v54 = vld [vmem:[%s3211_s30 + $0xb9] sm:$0x3f] }
 0x160   : > { %1293 = vrot.lane.b32.xlu0 %v3815_v23, %s3125_s11 }
 0x161   : > { %v1164_v58 = vpop.permute.xlu1 %1163  ;;  %v944_v2 = vpop.permute.xlu0 %943 }
 0x162   : > { %v1525_v17 = vsel %vm1515_vm6, %v1496_v56, %v1164_v58  ;;  %v1780_v58 = vrot.slane %v1766_v19, %v3528_v11  ;;  %v264_v56 = vld [vmem:[%s3211_s30 + $0xaa] sm:$0x3f]  ;;  %v3885_v19 = vld [vmem:[%s3211_s30 + $0xc2] sm:$0xff] }
 0x163   : > { %847 = vrot.lane.b32.xlu1 %v2768_v55, %s3121_s7 }
 0x164   : > { %737 = vrot.lane.b32.xlu0 %v3801_v42, %s3119_s5  ;;  %v1782_v57 = vcombine.high %v1780_v58, %v1780_v58 }
 0x165   : > { %v1056_v13 = vpop.permute.xlu1 %1055  ;;  %v3837_v63 = vpop.permute.xlu0 %609 }
 0x167   : > { %959 = vrot.lane.b32.xlu1 %v2796_v6, %s3122_s8 }
 0x168   : > { %849 = vrot.lane.b32.xlu0 %v2851_v30, %s3121_s7  ;;  %v1382_v30 = vsel %vm1370_vm1, %v1353_v41, %v3792_v62  ;;  %v1781_v62 = vcombine.high %v1773_v38, %v1773_v38 }
 0x169   : > { %v722_v60 = vpop.permute.xlu1 %721  ;;  %v1276_v48 = vpop.permute.xlu0 %1275  ;;  %v1411_v43 = vsel %vm1399_vm2, %v1382_v30, %v720_v51 }
 0x16a   : > { %v1554_v52 = vsel %vm1544_vm7, %v1525_v17, %v1276_v48  ;;  %v1440_v34 = vsel %vm1428_vm3, %v1411_v43, %v832_v15  ;;  %v2223_v45 = vcombine.low %v1781_v62, %v1780_v58  ;;  %v1383_v43 = vsel %vm1370_vm1, %v3416_v14, %v3837_v63  ;;  %v2743_v58 = vld [vmem:[%s3211_s30 + $0xc0] sm:$0xff]  ;;  %v2798_v63 = vld [vmem:[%s3211_s30 + $0xba] sm:$0x3f] }
 0x16b   : > { %v1750_v53 = vcombine.high %v1554_v52, %v1554_v52  ;;  %v1757_v46 = vrot.slane %v1554_v52, %v3528_v11  ;;  %1071 = vrot.lane.b32.xlu1 %v2824_v59, %s3123_s9  ;;  %v1469_v50 = vsel %vm1457_vm4, %v1440_v34, %v944_v2 }
 0x16c   : > { %961 = vrot.lane.b32.xlu0 %v3815_v23, %s3122_s8  ;;  %v1498_v51 = vsel %vm1486_vm5, %v1469_v50, %v1056_v13  ;;  %v2231_v52 = vrot.slane %v2223_v45, %v3528_v11 }
 0x16d   : > { %v1764_v47 = vrot.slane %v1750_v53, %v3528_v11  ;;  %v1765_v4 = vcombine.high %v1757_v46, %v1757_v46  ;;  %v3862_v3 = vpop.permute.xlu1 %611  ;;  %v1168_v55 = vpop.permute.xlu0 %1167 }
 0x16e   : > { %v1527_v37 = vsel %vm1515_vm6, %v1498_v51, %v1168_v55 }
 0x16f   : > { %v2206_v16 = vcombine.low %v1757_v46, %v1765_v4  ;;  %v2207_v7 = vcombine.low %v1764_v47, %v1773_v38  ;;  %1183 = vrot.lane.b32.xlu1 %v2852_v54, %s3124_s10  ;;  %v2742_v38 = vld [vmem:[%s3211_s30 + $0xb8] sm:$0x3f]  ;;  %v1412_v4 = vsel %vm1399_vm2, %v1383_v43, %v722_v60  ;;  %v200_v60 = vld [vmem:[%s3211_s30 + $0x68] sm:$0x3f] }
 0x170   : > { %1073 = vrot.lane.b32.xlu0 %v3867_v49, %s3123_s9  ;;  %v2770_v47 = vld [vmem:[%s3211_s30 + $0xb9] sm:$0x3f] }
 0x171   : > { %v2214_v15 = vrot.slane %v2206_v16, %v3528_v11  ;;  %v2221_v6 = vrot.slane %v2207_v7, %v3528_v11  ;;  %v1280_v8 = vpop.permute.xlu1 %1279  ;;  %v834_v2 = vpop.permute.xlu0 %833 }
 0x172   : > { %v1556_v1 = vsel %vm1544_vm7, %v1527_v37, %v1280_v8  ;;  %v1441_v62 = vsel %vm1428_vm3, %v1412_v4, %v834_v2  ;;  %v1355_v2 = vsel %vm1341_vm0, %v200_v60, %v3413_v10 }
 0x173   : > { %v2222_v13 = vcombine.low %v2214_v15, %v2221_v6  ;;  %v1790_v0 = vrot.slane %v1556_v1, %v3528_v11  ;;  %1295 = vrot.lane.b32.xlu1 %v2880_v22, %s3125_s11  ;;  %v1783_v55 = vcombine.high %v1556_v1, %v1556_v1  ;;  %v2826_v1 = vld [vmem:[%s3211_s30 + $0xc8] sm:$0x3f]  ;;  %v1384_v45 = vsel %vm1370_vm1, %v1355_v2, %v3862_v3 }
 0x174   : > { %1185 = vrot.lane.b32.xlu0 %v2853_v33, %s3124_s10  ;;  %v2854_v3 = vld [vmem:[%s3211_s30 + $0xc9] sm:$0x3f]  ;;  %v1356_v2 = vsel %vm1341_vm0, %v3507_v26, %v3423_v20 }
 0x175   : > { %v2224_v59 = vcombine.low %v1782_v57, %v1790_v0  ;;  %v946_v17 = vpop.permute.xlu1 %945  ;;  %v724_v48 = vpop.permute.xlu0 %723  ;;  %v1797_v16 = vrot.slane %v1783_v55, %v3528_v11  ;;  %v1798_v7 = vcombine.high %v1790_v0, %v1790_v0 }
 0x176   : > { %v1470_v14 = vsel %vm1457_vm4, %v1441_v62, %v946_v17 }
 0x177   : > { %v2238_v41 = vrot.slane %v2224_v59, %v3528_v11  ;;  %627 = vrot.lane.b32.xlu1 %v264_v56, %s3120_s6  ;;  %v1413_v56 = vsel %vm1399_vm2, %v1384_v45, %v724_v48  ;;  %v2744_v45 = vld [vmem:[%s3211_s30 + $0xc8] sm:$0x3f] }
 0x178   : > { %1297 = vrot.lane.b32.xlu0 %v3885_v19, %s3125_s11 }
 0x179   : > { %v2239_v53 = vcombine.low %v2231_v52, %v2238_v41  ;;  %v1058_v46 = vpop.permute.xlu1 %1057  ;;  %v836_v30 = vpop.permute.xlu0 %835 }
 0x17a   : > { %v1442_v52 = vsel %vm1428_vm3, %v1413_v56, %v836_v30 }
 0x17b   : > { %739 = vrot.lane.b32.xlu1 %v2742_v38, %s3119_s5  ;;  %v2939_v54 = vpack.c.bf16 %v2239_v53, %v2222_v13  ;;  %v2240_v13 = vcombine.low %v1798_v7, %v1797_v16  ;;  %v2882_v16 = vld [vmem:[%s3211_s30 + $0xca] sm:$0x3f] }
 0x17c   : > { %629 = vrot.lane.b32.xlu0 %v3815_v23, %s3120_s6  ;;  %v1499_v23 = vsel %vm1486_vm5, %v1470_v14, %v1058_v46  ;;  %v2827_v46 = vld [vmem:[%s3211_s30 + $0xd0] sm:$0xff] }
 0x17d   : > { %v1170_v34 = vpop.permute.xlu1 %1169  ;;  %2941 = vmatpush1.bf16.xpose.msk.msra.mxu0 %vm3586_vm9, %v2939_v54  ;;  %v948_v50 = vpop.permute.xlu0 %947 }
 0x17e   : > { %2942 = vmatprep.subr.bf16.mxu0 %v3126_v44  ;;  %v1528_v51 = vsel %vm1515_vm6, %v1499_v23, %v1170_v34  ;;  %v1471_v10 = vsel %vm1457_vm4, %v1442_v52, %v948_v50 }
 0x17f   : > { %851 = vrot.lane.b32.xlu1 %v2770_v47, %s3121_s7 }
 0x180   : > { %741 = vrot.lane.b32.xlu0 %v2743_v58, %s3119_s5  ;;  %v2855_v58 = vld [vmem:[%s3211_s30 + $0xd1] sm:$0xff] }
 0x181   : > { %v1282_v22 = vpop.permute.xlu1 %1281  ;;  %v1060_v6 = vpop.permute.xlu0 %1059 }
 0x182   : > { %v1557_v15 = vsel %vm1544_vm7, %v1528_v51, %v1282_v22  ;;  %v1500_v48 = vsel %vm1486_vm5, %v1471_v10, %v1060_v6 }
 0x183   : > { %v1799_v37 = vcombine.high %v1557_v15, %v1557_v15  ;;  %v1806_v8 = vrot.slane %v1557_v15, %v3528_v11  ;;  %963 = vrot.lane.b32.xlu1 %v2798_v63, %s3122_s8  ;;  %v3948_v63 = vld [vmem:[%s3211_s30 + $0xd2] sm:$0xff] }
 0x184   : > { %853 = vrot.lane.b32.xlu0 %v2853_v33, %s3121_s7  ;;  %v2248_v33 = vrot.slane %v2240_v13, %v3528_v11 }
 0x185   : > { %v1814_v57 = vcombine.high %v1806_v8, %v1806_v8  ;;  %v614_v0 = vpop.permute.xlu1 %613  ;;  %v1813_v59 = vrot.slane %v1799_v37, %v3528_v11  ;;  %v1172_v17 = vpop.permute.xlu0 %1171 }
 0x186   : > { %v1529_v30 = vsel %vm1515_vm6, %v1500_v48, %v1172_v17  ;;  %v202_v17 = vld [vmem:[%s3211_s30 + $0x78] sm:$0x3f] }
 0x187   : > { %v2241_v41 = vcombine.low %v1806_v8, %v1814_v57  ;;  %1075 = vrot.lane.b32.xlu1 %v2826_v1, %s3123_s9  ;;  %v1815_v54 = vcombine.high %v1813_v59, %v1813_v59  ;;  %v1385_v1 = vsel %vm1370_vm1, %v1356_v2, %v614_v0  ;;  %v2772_v0 = vld [vmem:[%s3211_s30 + $0xc9] sm:$0x3f] }
 0x188   : > { %965 = vrot.lane.b32.xlu0 %v3885_v19, %s3122_s8  ;;  %v2885_v2 = vld [vmem:[%s3211_s30 + $0xe2] sm:$0xff] }
 0x189   : > { %v2255_v38 = vrot.slane %v2241_v41, %v3528_v11  ;;  %v726_v53 = vpop.permute.xlu1 %725  ;;  %v2257_v62 = vcombine.low %v1813_v59, %v1815_v54 }
 0x18a   : > { %v1284_v43 = vpop.permute.xlu0 %1283  ;;  %v1414_v13 = vsel %vm1399_vm2, %v1385_v1, %v726_v53  ;;  %v2800_v53 = vld [vmem:[%s3211_s30 + $0xca] sm:$0x3f] }
 0x18b   : > { %v2256_v47 = vcombine.low %v2248_v33, %v2255_v38  ;;  %v3937_v4 = vsel %vm1544_vm7, %v1529_v30, %v1284_v43  ;;  %1187 = vrot.lane.b32.xlu1 %v2854_v3, %s3124_s10  ;;  %v2265_v7 = vrot.slane %v2257_v62, %v3528_v11  ;;  %v1357_v33 = vsel %vm1341_vm0, %v202_v17, %v3421_v18  ;;  %v2829_v30 = vld [vmem:[%s3211_s30 + $0xe0] sm:$0xff] }
 0x18c   : > { %v1823_v55 = vrot.slane %v3937_v4, %v3528_v11  ;;  %1077 = vrot.lane.b32.xlu0 %v2827_v46, %s3123_s9  ;;  %v1816_v18 = vcombine.high %v3937_v4, %v3937_v4 }
 0x18d   : > { %v838_v34 = vpop.permute.xlu1 %837 }
 0x18e   : > { %v1831_v50 = vcombine.high %v1823_v55, %v1823_v55  ;;  %v616_v14 = vpop.permute.xlu0 %615  ;;  %v1443_v56 = vsel %vm1428_vm3, %v1414_v13, %v838_v34 }
 0x18f   : > { %633 = vrot.lane.b32.xlu1 %v3885_v19, %s3120_s6  ;;  %v266_v19 = vld [vmem:[%s3211_s30 + $0xba] sm:$0x3f] }
 0x190   : > { %v2258_v23 = vcombine.low %v1823_v55, %v1831_v50  ;;  %1189 = vrot.lane.b32.xlu0 %v2855_v58, %s3124_s10  ;;  %v2828_v50 = vld [vmem:[%s3211_s30 + $0xd8] sm:$0x3f] }
 0x191   : > { %v950_v60 = vpop.permute.xlu1 %949 }
 0x192   : > { %v2272_v51 = vrot.slane %v2258_v23, %v3528_v11  ;;  %v728_v22 = vpop.permute.xlu0 %727  ;;  %v1472_v20 = vsel %vm1457_vm4, %v1443_v56, %v950_v60  ;;  %v2857_v60 = vld [vmem:[%s3211_s30 + $0xe1] sm:$0xff] }
 0x193   : > { %1301 = vrot.lane.b32.xlu1 %v3948_v63, %s3125_s11 }
 0x194   : > { %v2273_v15 = vcombine.low %v2265_v7, %v2272_v51  ;;  %1299 = vrot.lane.b32.xlu0 %v2882_v16, %s3125_s11  ;;  %v1830_v7 = vrot.slane %v1816_v18, %v3528_v11 }
 0x195   : > { %v1062_v6 = vpop.permute.xlu1 %1061 }
 0x196   : > { %v840_v37 = vpop.permute.xlu0 %839  ;;  %v2943_v8 = vpack.c.bf16 %v2273_v15, %v2256_v47  ;;  %v1501_v26 = vsel %vm1486_vm5, %v1472_v20, %v1062_v6 }
 0x197   : > { %631 = vrot.lane.b32.xlu1 %v266_v19, %s3120_s6 }
 0x198   : > { %745 = vrot.lane.b32.xlu0 %v2827_v46, %s3119_s5  ;;  %2945 = vmatpush1.bf16.xpose.msk.msra.mxu0 %vm3586_vm9, %v2943_v8  ;;  %v1386_v46 = vsel %vm1370_vm1, %v1357_v33, %v616_v14 }
 0x199   : > { %v1174_v57 = vpop.permute.xlu1 %1173  ;;  %2946 = vmatprep.subr.bf16.mxu0 %v3126_v44  ;;  %v1415_v43 = vsel %vm1399_vm2, %v1386_v46, %v728_v22 }
 0x19a   : > { %v952_v59 = vpop.permute.xlu0 %951  ;;  %v1530_v52 = vsel %vm1515_vm6, %v1501_v26, %v1174_v57  ;;  %v1444_v55 = vsel %vm1428_vm3, %v1415_v43, %v840_v37  ;;  %v2856_v37 = vld [vmem:[%s3211_s30 + $0xd9] sm:$0x3f] }
 0x19b   : > { %743 = vrot.lane.b32.xlu1 %v2744_v45, %s3119_s5  ;;  %v1473_v34 = vsel %vm1457_vm4, %v1444_v55, %v952_v59  ;;  %v2884_v26 = vld [vmem:[%s3211_s30 + $0xda] sm:$0x3f] }
 0x19c   : > { %857 = vrot.lane.b32.xlu0 %v2855_v58, %s3121_s7  ;;  %v2746_v43 = vld [vmem:[%s3211_s30 + $0xd8] sm:$0x3f] }
 0x19d   : > { %v1286_v41 = vpop.permute.xlu1 %1285 }
 0x19e   : > { %v1559_v10 = vsel %vm1544_vm7, %v1530_v52, %v1286_v41  ;;  %v1064_v3 = vpop.permute.xlu0 %1063 }
 0x19f   : > { %855 = vrot.lane.b32.xlu1 %v2772_v0, %s3121_s7  ;;  %v1832_v38 = vcombine.high %v1559_v10, %v1559_v10  ;;  %v1839_v48 = vrot.slane %v1559_v10, %v3528_v11  ;;  %v1502_v14 = vsel %vm1486_vm5, %v1473_v34, %v1064_v3 }
 0x1a0   : > { %969 = vrot.lane.b32.xlu0 %v3948_v63, %s3122_s8 }
 0x1a1   : > { %v3985_v54 = vpop.permute.xlu1 %617  ;;  %v1846_v58 = vrot.slane %v1832_v38, %v3528_v11  ;;  %v1847_v62 = vcombine.high %v1839_v48, %v1839_v48  ;;  %v2274_v1 = vcombine.low %v1830_v7, %v1839_v48  ;;  %v268_v38 = vld [vmem:[%s3211_s30 + $0xca] sm:$0x3f] }
 0x1a2   : > { %v1176_v47 = vpop.permute.xlu0 %1175 }
 0x1a3   : > { %967 = vrot.lane.b32.xlu1 %v2800_v53, %s3122_s8  ;;  %v1531_v4 = vsel %vm1515_vm6, %v1502_v14, %v1176_v47  ;;  %v2275_v22 = vcombine.low %v1847_v62, %v1846_v58  ;;  %v1848_v15 = vcombine.high %v1846_v58, %v1846_v58  ;;  %v2282_v17 = vrot.slane %v2274_v1, %v3528_v11  ;;  %v2831_v58 = vld [vmem:[%s3211_s30 + $0xf0] sm:$0xff]  ;;  %v2774_v14 = vld [vmem:[%s3211_s30 + $0xd9] sm:$0x3f] }
 0x1a4   : > { %1081 = vrot.lane.b32.xlu0 %v2829_v30, %s3123_s9  ;;  %v2859_v1 = vld [vmem:[%s3211_s30 + $0xf1] sm:$0xff] }
 0x1a5   : > { %v730_v23 = vpop.permute.xlu1 %729  ;;  %v2289_v59 = vrot.slane %v2275_v22, %v3528_v11  ;;  %v2748_v22 = vld [vmem:[%s3211_s30 + $0xe8] sm:$0x3f] }
 0x1a6   : > { %v1288_v16 = vpop.permute.xlu0 %1287 }
 0x1a7   : > { %v1560_v51 = vsel %vm1544_vm7, %v1531_v4, %v1288_v16  ;;  %1079 = vrot.lane.b32.xlu1 %v2828_v50, %s3123_s9  ;;  %v2290_v3 = vcombine.low %v2282_v17, %v2289_v59 }
 0x1a8   : > { %v1849_v19 = vcombine.high %v1560_v51, %v1560_v51  ;;  %v1856_v6 = vrot.slane %v1560_v51, %v3528_v11  ;;  %1193 = vrot.lane.b32.xlu0 %v2857_v60, %s3124_s10 }
 0x1a9   : > { %v842_v8 = vpop.permute.xlu1 %841 }
 0x1aa   : > { %v1863_v45 = vrot.slane %v1849_v19, %v3528_v11  ;;  %v1864_v13 = vcombine.high %v1856_v6, %v1856_v6  ;;  %v2291_v57 = vcombine.low %v1848_v15, %v1856_v6  ;;  %v620_v56 = vpop.permute.xlu0 %619 }
 0x1ab   : > { %1191 = vrot.lane.b32.xlu1 %v2856_v37, %s3124_s10  ;;  %v2776_v37 = vld [vmem:[%s3211_s30 + $0xe9] sm:$0x3f] }
 0x1ac   : > { %v2292_v20 = vcombine.low %v1864_v13, %v1863_v45  ;;  %1305 = vrot.lane.b32.xlu0 %v2885_v2, %s3125_s11  ;;  %v2299_v52 = vrot.slane %v2291_v57, %v3528_v11 }
 0x1ad   : > { %v954_v0 = vpop.permute.xlu1 %953 }
 0x1ae   : > { %v2306_v41 = vrot.slane %v2292_v20, %v3528_v11  ;;  %v732_v10 = vpop.permute.xlu0 %731 }
 0x1af   : > { %1303 = vrot.lane.b32.xlu1 %v2884_v26, %s3125_s11 }
 0x1b0   : > { %v2307_v33 = vcombine.low %v2299_v52, %v2306_v41  ;;  %637 = vrot.lane.b32.xlu0 %v3948_v63, %s3120_s6  ;;  %v270_v63 = vld [vmem:[%s3211_s30 + $0xda] sm:$0x3f] }
 0x1b1   : > { %v844_v48 = vpop.permute.xlu1 %843 }
 0x1b2   : > { %v4019_v53 = vpop.permute.xlu0 %621  ;;  %v2947_v46 = vpack.c.bf16 %v2307_v33, %v2290_v3  ;;  %v1360_v3 = vsel %vm1341_vm0, %v3686_v61, %v3438_v25 }
 0x1b3   : > { %635 = vrot.lane.b32.xlu1 %v268_v38, %s3120_s6 }
 0x1b4   : > { %749 = vrot.lane.b32.xlu0 %v2829_v30, %s3119_s5  ;;  %2949 = vmatpush1.bf16.xpose.msk.msra.mxu0 %vm3586_vm9, %v2947_v46  ;;  %v1358_v30 = vsel %vm1341_vm0, %v3621_v5, %v3429_v21  ;;  %v2802_v21 = vld [vmem:[%s3211_s30 + $0xda] sm:$0x3f]  ;;  %v204_v5 = vld [vmem:[%s3211_s30 + $0x88] sm:$0x3f]  ;;  %v1389_v46 = vsel %vm1370_vm1, %v1360_v3, %v4019_v53 }
 0x1b5   : > { %v734_v47 = vpop.permute.xlu1 %733  ;;  %2950 = vmatprep.subr.bf16.mxu0 %v3126_v44  ;;  %v1387_v62 = vsel %vm1370_vm1, %v1358_v30, %v3985_v54  ;;  %v1359_v6 = vsel %vm1341_vm0, %v204_v5, %v3427_v9  ;;  %v2887_v9 = vld [vmem:[%s3211_s30 + $0xf2] sm:$0xff]  ;;  %v2886_v53 = vld [vmem:[%s3211_s30 + $0xea] sm:$0x3f] }
 0x1b6   : > { %v1066_v18 = vpop.permute.xlu0 %1065 }
 0x1b7   : > { %747 = vrot.lane.b32.xlu1 %v2746_v43, %s3119_s5 }
 0x1b8   : > { %861 = vrot.lane.b32.xlu0 %v2857_v60, %s3121_s7  ;;  %v1416_v60 = vsel %vm1399_vm2, %v1387_v62, %v730_v23 }
 0x1b9   : > { %v1178_v55 = vpop.permute.xlu1 %1177  ;;  %v1445_v16 = vsel %vm1428_vm3, %v1416_v60, %v842_v8  ;;  %v1388_v8 = vsel %vm1370_vm1, %v1359_v6, %v620_v56 }
 0x1ba   : > { %v956_v34 = vpop.permute.xlu0 %955  ;;  %v1474_v7 = vsel %vm1457_vm4, %v1445_v16, %v954_v0  ;;  %v1417_v45 = vsel %vm1399_vm2, %v1388_v8, %v732_v10  ;;  %v2830_v0 = vld [vmem:[%s3211_s30 + $0xe8] sm:$0x3f] }
 0x1bb   : > { %639 = vrot.lane.b32.xlu1 %v270_v63, %s3120_s6  ;;  %v1503_v51 = vsel %vm1486_vm5, %v1474_v7, %v1066_v18  ;;  %v1446_v59 = vsel %vm1428_vm3, %v1417_v45, %v844_v48  ;;  %v2858_v48 = vld [vmem:[%s3211_s30 + $0xe9] sm:$0x3f]  ;;  %v1418_v63 = vsel %vm1399_vm2, %v1389_v46, %v734_v47  ;;  %v2832_v47 = vld [vmem:[%s3211_s30 + $0xf8] sm:$0x3f]  ;;  %v3128_v45 = vmov 0.0   ;;  %s4264_s6 = scalar_lea.hbm %s4314_s3, %s2921_s28 }
 0x1bc   : > { %973 = vrot.lane.b32.xlu0 %v2885_v2, %s3122_s8  ;;  %v1532_v15 = vsel %vm1515_vm6, %v1503_v51, %v1178_v55  ;;  %v1475_v20 = vsel %vm1457_vm4, %v1446_v59, %v956_v34  ;;  %v2804_v18 = vld [vmem:[%s3211_s30 + $0xea] sm:$0x3f]  ;;  %2604 = vmatprep.mubr.f32.mxu0 %v3128_v45 }
 0x1bd   : > { %v1068_v50 = vpop.permute.xlu1 %1067 }
 0x1be   : > { %v846_v4 = vpop.permute.xlu0 %845  ;;  %v1504_v26 = vsel %vm1486_vm5, %v1475_v20, %v1068_v50 }
 0x1bf   : > { %1085 = vrot.lane.b32.xlu1 %v2831_v58, %s3123_s9  ;;  %v1447_v25 = vsel %vm1428_vm3, %v1418_v63, %v846_v4 }
 0x1c0   : > { %859 = vrot.lane.b32.xlu0 %v2774_v14, %s3121_s7 }
 0x1c1   : > { %v958_v54 = vpop.permute.xlu1 %957 }
 0x1c2   : > { %v1290_v23 = vpop.permute.xlu0 %1289  ;;  %v1476_v61 = vsel %vm1457_vm4, %v1447_v25, %v958_v54 }
 0x1c3   : > { %v1561_v19 = vsel %vm1544_vm7, %v1532_v15, %v1290_v23  ;;  %971 = vrot.lane.b32.xlu1 %v2802_v21, %s3122_s8  ;;  %v2860_v23 = vld [vmem:[%s3211_s30 + $0xf9] sm:$0x3f] }
 0x1c4   : > { %751 = vrot.lane.b32.xlu0 %v2748_v22, %s3119_s5  ;;  %v1865_v13 = vcombine.high %v1561_v19, %v1561_v19  ;;  %v1872_v33 = vrot.slane %v1561_v19, %v3528_v11  ;;  %v2888_v22 = vld [vmem:[%s3211_s30 + $0xfa] sm:$0x3f] }
 0x1c5   : > { %v1070_v2 = vpop.permute.xlu1 %1069 }
 0x1c6   : > { %v1180_v57 = vpop.permute.xlu0 %1179  ;;  %v1879_v17 = vrot.slane %v1865_v13, %v3528_v11  ;;  %v1880_v30 = vcombine.high %v1872_v33, %v1872_v33  ;;  %v1505_v50 = vsel %vm1486_vm5, %v1476_v61, %v1070_v2 }
 0x1c7   : > { %863 = vrot.lane.b32.xlu1 %v2776_v37, %s3121_s7  ;;  %v1533_v52 = vsel %vm1515_vm6, %v1504_v26, %v1180_v57  ;;  %s2617_s7 = scalar_lea.sflag [#allocation3], %s175_s26 }
 0x1c8   : > { %1197 = vrot.lane.b32.xlu0 %v2859_v1, %s3124_s10  ;;  %v1881_v55 = vcombine.high %v1879_v17, %v1879_v17  ;;  %v2308_v21 = vcombine.low %v1872_v33, %v1880_v30 }
 0x1c9   : > { %v1182_v56 = vpop.permute.xlu1 %1181 }
 0x1ca   : > { %v1292_v41 = vpop.permute.xlu0 %1291  ;;  %v2309_v60 = vcombine.low %v1879_v17, %v1881_v55  ;;  %v1534_v16 = vsel %vm1515_vm6, %v1505_v50, %v1182_v56  ;;  %v2316_v8 = vrot.slane %v2308_v21, %v3528_v11 }
 0x1cb   : > { %v1562_v10 = vsel %vm1544_vm7, %v1533_v52, %v1292_v41  ;;  %1309 = vrot.lane.b32.xlu1 %v2887_v9, %s3125_s11  ;;  %v206_v9 = vld [vmem:[%s3211_s30 + $0x98] sm:$0x3f] }
 0x1cc   : > { %v1889_v38 = vrot.slane %v1562_v10, %v3528_v11  ;;  %1083 = vrot.lane.b32.xlu0 %v2830_v0, %s3123_s9  ;;  %v1882_v58 = vcombine.high %v1562_v10, %v1562_v10  ;;  %v2323_v19 = vrot.slane %v2309_v60, %v3528_v11  ;;  %v1361_v17 = vsel %vm1341_vm0, %v206_v9, %v3436_v24 }
 0x1cd   : > { %v4078_v43 = vpop.permute.xlu1 %625  ;;  %v1362_v24 = vsel %vm1341_vm0, %v3769_v28, %v3445_v29 }
 0x1ce   : > { %v624_v34 = vpop.permute.xlu0 %623  ;;  %v1897_v62 = vcombine.high %v1889_v38, %v1889_v38  ;;  %v1896_v5 = vrot.slane %v1882_v58, %v3528_v11  ;;  %v2324_v57 = vcombine.low %v2316_v8, %v2323_v19  ;;  %v1391_v55 = vsel %vm1370_vm1, %v1362_v24, %v4078_v43 }
 0x1cf   : > { %1195 = vrot.lane.b32.xlu1 %v2858_v48, %s3124_s10  ;;  %v1390_v52 = vsel %vm1370_vm1, %v1361_v17, %v624_v34  ;;  %v2064_v48 = vld [vmem:[%s4313_s2] sm:$0xff] }
 0x1d0   : > { %975 = vrot.lane.b32.xlu0 %v2804_v18, %s3122_s8  ;;  %v2325_v51 = vcombine.low %v1889_v38, %v1897_v62  ;;  %v3129_v18 = vmov 0   ;;  %s3130_s8 = smov [#allocation2]  }
 0x1d1   : > { %v736_v14 = vpop.permute.xlu1 %735  ;;  %3037 = vset.pattern.permute.xlu0 %v3129_v18 }
 0x1d2   : > { %v1294_v4 = vpop.permute.xlu0 %1293  ;;  %v2333_v2 = vrot.slane %v2325_v51, %v3528_v11  ;;  %v1419_v41 = vsel %vm1399_vm2, %v1390_v52, %v736_v14 }
 0x1d3   : > { %v1563_v7 = vsel %vm1544_vm7, %v1534_v16, %v1294_v4  ;;  %1307 = vrot.lane.b32.xlu1 %v2886_v53, %s3125_s11 }
 0x1d4   : > { %v4094_v54 = vrot.slane %v1563_v7, %v3528_v11  ;;  %1087 = vrot.lane.b32.xlu0 %v2832_v47, %s3123_s9  ;;  %v1898_v3 = vcombine.high %v1563_v7, %v1563_v7  ;;  %s3042_s9 = sshll.u32 %s3130_s8, 4  ;;  %s3043_s9 = int_to_ptr.vmem [resolvable:$false] %s3042_s9 }
 0x1d5   : > { %v848_v15 = vpop.permute.xlu1 %847 }
 0x1d6   : > { %v2326_v6 = vcombine.low %v1896_v5, %v4094_v54  ;;  %v738_v37 = vpop.permute.xlu0 %737  ;;  %v1448_v33 = vsel %vm1428_vm3, %v1419_v41, %v848_v15  ;;  %v1912_v61 = vrot.slane %v1898_v3, %v3528_v11  ;;  %v1913_v43 = vcombine.high %v4094_v54, %v4094_v54  ;;  %v208_v41 = vld [vmem:[%s3211_s30 + $0xa8] sm:$0x3f] }
 0x1d7   : > { %1311 = vrot.lane.b32.xlu1 %v2888_v22, %s3125_s11  ;;  %v1420_v30 = vsel %vm1399_vm2, %v1391_v55, %v738_v37 }
 0x1d8   : > { %v2340_v1 = vrot.slane %v2326_v6, %v3528_v11  ;;  %1199 = vrot.lane.b32.xlu0 %v2860_v23, %s3124_s10  ;;  %v1914_v60 = vcombine.high %v1912_v61, %v1912_v61  ;;  %v2342_v23 = vcombine.low %v1913_v43, %v1912_v61  ;;  %s3044_s10 = scalar_lea.vmem %s3043_s9, 512 }
 0x1d9   : > { %v960_v13 = vpop.permute.xlu1 %959 }
 0x1da   : > { %v2341_v59 = vcombine.low %v2333_v2, %v2340_v1  ;;  %v850_v20 = vpop.permute.xlu0 %849  ;;  %v1477_v46 = vsel %vm1457_vm4, %v1448_v33, %v960_v13  ;;  %v2350_v1 = vrot.slane %v2342_v23, %v3528_v11 }
 0x1db   : > { %v1449_v53 = vsel %vm1428_vm3, %v1420_v30, %v850_v20 }
 0x1dc   : > { %v2951_v26 = vpack.c.bf16 %v2341_v59, %v2324_v57  ;;  %2067 = vperm.xlu0 %3037, %v2064_v48   ;;  %v1363_v48 = vsel %vm1341_vm0, %v208_v41, %v3443_v27  ;;  %v1366_v41 = vsel %vm1341_vm0, %v3867_v49, %v3460_v36 }
 0x1dd   : > { %v1072_v56 = vpop.permute.xlu1 %1071 }
 0x1de   : > { %v962_v0 = vpop.permute.xlu0 %961  ;;  %2953 = vmatpush1.bf16.xpose.msk.msra.mxu0 %vm3586_vm9, %v2951_v26  ;;  %v1506_v63 = vsel %vm1486_vm5, %v1477_v46, %v1072_v56 }
 0x1df   : > { %2954 = vmatprep.subr.bf16.mxu0 %v3126_v44  ;;  %v1478_v28 = vsel %vm1457_vm4, %v1449_v53, %v962_v0 }
 0x1e1   : > { %v1184_v10 = vpop.permute.xlu1 %1183 }
 0x1e2   : > { %v1074_v38 = vpop.permute.xlu0 %1073  ;;  %v1535_v34 = vsel %vm1515_vm6, %v1506_v63, %v1184_v10 }
 0x1e3   : > { %v1507_v14 = vsel %vm1486_vm5, %v1478_v28, %v1074_v38  ;;  %v1364_v38 = vsel %vm1341_vm0, %v3801_v42, %v3452_v32 }
 0x1e5   : > { %v1296_v25 = vpop.permute.xlu1 %1295 }
 0x1e6   : > { %v1564_v58 = vsel %vm1544_vm7, %v1535_v34, %v1296_v25  ;;  %v1186_v62 = vpop.permute.xlu0 %1185 }
 0x1e7   : > { %v1915_v50 = vcombine.high %v1564_v58, %v1564_v58  ;;  %v1922_v29 = vrot.slane %v1564_v58, %v3528_v11  ;;  %v1536_v7 = vsel %vm1515_vm6, %v1507_v14, %v1186_v62 }
 0x1e9   : > { %v628_v47 = vpop.permute.xlu1 %627  ;;  %v1929_v16 = vrot.slane %v1915_v50, %v3528_v11  ;;  %v1930_v4 = vcombine.high %v1922_v29, %v1922_v29  ;;  %v2343_v51 = vcombine.low %v1914_v60, %v1922_v29 }
 0x1ea   : > { %v1298_v21 = vpop.permute.xlu0 %1297  ;;  %v1392_v18 = vsel %vm1370_vm1, %v1363_v48, %v628_v47 }
 0x1eb   : > { %v1565_v5 = vsel %vm1544_vm7, %v1536_v7, %v1298_v21  ;;  %v2359_v19 = vcombine.low %v1930_v4, %v1929_v16  ;;  %v2357_v37 = vrot.slane %v2343_v51, %v3528_v11 }
 0x1ec   : > { %v1938_v22 = vrot.slane %v1565_v5, %v3528_v11  ;;  %v1931_v3 = vcombine.high %v1565_v5, %v1565_v5 }
 0x1ed   : > { %v740_v15 = vpop.permute.xlu1 %739  ;;  %v2367_v13 = vrot.slane %v2359_v19, %v3528_v11  ;;  %v2358_v20 = vcombine.low %v2350_v1, %v2357_v37 }
 0x1ee   : > { %v1946_v6 = vcombine.high %v1938_v22, %v1938_v22  ;;  %v630_v54 = vpop.permute.xlu0 %629  ;;  %v1945_v55 = vrot.slane %v1931_v3, %v3528_v11  ;;  %v1421_v34 = vsel %vm1399_vm2, %v1392_v18, %v740_v15 }
 0x1ef   : > { %v1393_v46 = vsel %vm1370_vm1, %v1364_v38, %v630_v54 }
 0x1f0   : > { %v2360_v8 = vcombine.low %v1938_v22, %v1946_v6  ;;  %v1947_v50 = vcombine.high %v1945_v55, %v1945_v55 }
 0x1f1   : > { %v852_v2 = vpop.permute.xlu1 %851 }
 0x1f2   : > { %v2374_v57 = vrot.slane %v2360_v8, %v3528_v11  ;;  %v742_v59 = vpop.permute.xlu0 %741  ;;  %v1450_v30 = vsel %vm1428_vm3, %v1421_v34, %v852_v2  ;;  %v2376_v51 = vcombine.low %v1945_v55, %v1947_v50 }
 0x1f3   : > { %v1422_v24 = vsel %vm1399_vm2, %v1393_v46, %v742_v59 }
 0x1f4   : > { %v2375_v9 = vcombine.low %v2367_v13, %v2374_v57  ;;  %v2384_v2 = vrot.slane %v2376_v51, %v3528_v11 }
 0x1f5   : > { %v964_v26 = vpop.permute.xlu1 %963 }
 0x1f6   : > { %v854_v56 = vpop.permute.xlu0 %853  ;;  %v2955_v0 = vpack.c.bf16 %v2375_v9, %v2358_v20  ;;  %v1479_v27 = vsel %vm1457_vm4, %v1450_v30, %v964_v26 }
 0x1f7   : > { %v1451_v25 = vsel %vm1428_vm3, %v1422_v24, %v854_v56 }
 0x1f8   : > { %2957 = vmatpush1.bf16.xpose.msk.msra.mxu0 %vm3586_vm9, %v2955_v0 }
 0x1f9   : > { %v1076_v17 = vpop.permute.xlu1 %1075  ;;  %2958 = vmatprep.subr.bf16.mxu0 %v3126_v44 }
 0x1fa   : > { %v966_v52 = vpop.permute.xlu0 %965  ;;  %v1508_v58 = vsel %vm1486_vm5, %v1479_v27, %v1076_v17 }
 0x1fb   : > { %v1480_v32 = vsel %vm1457_vm4, %v1451_v25, %v966_v52  ;;  %v210_v52 = vld [vmem:[%s3211_s30 + $0xb8] sm:$0x3f] }
 0x1fc   : > { %v1365_v48 = vsel %vm1341_vm0, %v210_v52, %v3450_v31 }
 0x1fd   : > { %v1188_v10 = vpop.permute.xlu1 %1187 }
 0x1fe   : > { %v1078_v33 = vpop.permute.xlu0 %1077  ;;  %v1537_v29 = vsel %vm1515_vm6, %v1508_v58, %v1188_v10 }
 0x1ff   : > { %v1509_v42 = vsel %vm1486_vm5, %v1480_v32, %v1078_v33 }
 0x201   : > { %v634_v63 = vpop.permute.xlu1 %633 }
 0x202   : > { %v1190_v61 = vpop.permute.xlu0 %1189  ;;  %v1395_v10 = vsel %vm1370_vm1, %v1366_v41, %v634_v63 }
 0x203   : > { %v1538_v62 = vsel %vm1515_vm6, %v1509_v42, %v1190_v61 }
 0x205   : > { %v1302_v53 = vpop.permute.xlu1 %1301 }
 0x206   : > { %v1567_v28 = vsel %vm1544_vm7, %v1538_v62, %v1302_v53  ;;  %v1300_v43 = vpop.permute.xlu0 %1299 }
 0x207   : > { %v1964_v14 = vcombine.high %v1567_v28, %v1567_v28  ;;  %v1971_v47 = vrot.slane %v1567_v28, %v3528_v11  ;;  %v1566_v60 = vsel %vm1544_vm7, %v1537_v29, %v1300_v43 }
 0x208   : > { %v1948_v16 = vcombine.high %v1566_v60, %v1566_v60  ;;  %v1955_v4 = vrot.slane %v1566_v60, %v3528_v11 }
 0x209   : > { %v1978_v7 = vrot.slane %v1964_v14, %v3528_v11  ;;  %v1979_v21 = vcombine.high %v1971_v47, %v1971_v47  ;;  %v632_v5 = vpop.permute.xlu1 %631 }
 0x20a   : > { %v1962_v22 = vrot.slane %v1948_v16, %v3528_v11  ;;  %v1963_v15 = vcombine.high %v1955_v4, %v1955_v4  ;;  %v746_v23 = vpop.permute.xlu0 %745  ;;  %v1394_v18 = vsel %vm1370_vm1, %v1365_v48, %v632_v5 }
 0x20b   : > { %v2394_v19 = vcombine.low %v1979_v21, %v1978_v7  ;;  %v1424_v33 = vsel %vm1399_vm2, %v1395_v10, %v746_v23  ;;  %v1980_v28 = vcombine.high %v1978_v7, %v1978_v7  ;;  %v212_v10 = vld [vmem:[%s3211_s30 + $0xc8] sm:$0x3f] }
 0x20c   : > { %v2377_v6 = vcombine.low %v1955_v4, %v1963_v15  ;;  %v2393_v54 = vcombine.low %v1962_v22, %v1971_v47 }
 0x20d   : > { %v2408_v37 = vrot.slane %v2394_v19, %v3528_v11  ;;  %v744_v8 = vpop.permute.xlu1 %743 }
 0x20e   : > { %v2391_v1 = vrot.slane %v2377_v6, %v3528_v11  ;;  %v2401_v13 = vrot.slane %v2393_v54, %v3528_v11  ;;  %v858_v57 = vpop.permute.xlu0 %857  ;;  %v1423_v55 = vsel %vm1399_vm2, %v1394_v18, %v744_v8 }
 0x20f   : > { %v1453_v46 = vsel %vm1428_vm3, %v1424_v33, %v858_v57 }
 0x210   : > { %v2392_v59 = vcombine.low %v2384_v2, %v2391_v1  ;;  %v2409_v20 = vcombine.low %v2401_v13, %v2408_v37 }
 0x211   : > { %v856_v9 = vpop.permute.xlu1 %855 }
 0x212   : > { %v970_v26 = vpop.permute.xlu0 %969  ;;  %v2959_v56 = vpack.c.bf16 %v2409_v20, %v2392_v59  ;;  %v1452_v49 = vsel %vm1428_vm3, %v1423_v55, %v856_v9 }
 0x213   : > { %v1482_v24 = vsel %vm1457_vm4, %v1453_v46, %v970_v26  ;;  %v1367_v46 = vsel %vm1341_vm0, %v212_v10, %v3458_v35 }
 0x214   : > { %2961 = vmatpush1.bf16.xpose.msk.msra.mxu0 %vm3586_vm9, %v2959_v56  ;;  %v213_v56 = vld [vmem:[%s3211_s30 + $0xd0] sm:$0xff] }
 0x215   : > { %v968_v0 = vpop.permute.xlu1 %967  ;;  %2962 = vmatprep.subr.bf16.mxu0 %v3126_v44 }
 0x216   : > { %v1082_v17 = vpop.permute.xlu0 %1081  ;;  %v1481_v61 = vsel %vm1457_vm4, %v1452_v49, %v968_v0  ;;  %v214_v49 = vld [vmem:[%s3211_s30 + $0xd8] sm:$0x3f]  ;;  %s2633_s30 = sshll.u32 %s177_s29, 4  ;;  %s4266_s30 = int_to_ptr.vmem [resolvable:$true] %s2633_s30 }
 0x217   : > { %v1511_v34 = vsel %vm1486_vm5, %v1482_v24, %v1082_v17  ;;  %v1368_v17 = vsel %vm1341_vm0, %v213_v56, %v3467_v40  ;;  %s3038_s15 = scalar_lea.vmem %s4266_s30, 256  ;;  %p3045_p1 = scmp.lt.s32.totalorder %s4266_s30, %s3043_s9 }
 0x218   : > { %p3039_p12 = scmp.ne.s32.totalorder %s4266_s30, %s3038_s15  ;;  %p3046_p2 = scmp.lt.s32.totalorder %s3044_s10, %s3038_s15 }
 0x219   : > { %v1080_v3 = vpop.permute.xlu1 %1079 }
 0x21a   : > { %v1194_v38 = vpop.permute.xlu0 %1193  ;;  %v1510_v30 = vsel %vm1486_vm5, %v1481_v61, %v1080_v3  ;;  %p3040_p13 = pnand %p3039_p12, %p3191_p4  ;;  %p3047_p3 = por %p3046_p2, %p3045_p1 }
 0x21b   : > { %v1540_v63 = vsel %vm1515_vm6, %v1511_v34, %v1194_v38 }
 0x21c   : > { %p3041_p0 = pneg %p3040_p13 }
 0x21d   : > { %v1192_v36 = vpop.permute.xlu1 %1191 }
 0x21e   : > { %v1306_v25 = vpop.permute.xlu0 %1305  ;;  %v1539_v42 = vsel %vm1515_vm6, %v1510_v30, %v1192_v36  ;;  %v1369_v30 = vsel %vm1341_vm0, %v214_v49, %v3465_v39  ;;  %p3048_p5 = pnand %p3047_p3, %p3041_p0 }
 0x21f   : > { %v1569_v31 = vsel %vm1544_vm7, %v1540_v63, %v1306_v25 }
 0x220   : > { %v1997_v32 = vcombine.high %v1569_v31, %v1569_v31  ;;  %v2004_v27 = vrot.slane %v1569_v31, %v3528_v11 }
 0x221   : > { %v1304_v58 = vpop.permute.xlu1 %1303 }
 0x222   : > { %v2011_v62 = vrot.slane %v1997_v32, %v3528_v11  ;;  %v2012_v53 = vcombine.high %v2004_v27, %v2004_v27  ;;  %v1568_v50 = vsel %vm1544_vm7, %v1539_v42, %v1304_v58  ;;  %v638_v29 = vpop.permute.xlu0 %637 }
 0x223   : > { %v1981_v43 = vcombine.high %v1568_v50, %v1568_v50  ;;  %v1988_v14 = vrot.slane %v1568_v50, %v3528_v11  ;;  %v1397_v41 = vsel %vm1370_vm1, %v1368_v17, %v638_v29  ;;  %v2063_v17 = vld [vmem:[%s4312_s1] sm:$0xff] }
 0x224   : > { %v2013_v47 = vcombine.high %v2011_v62, %v2011_v62  ;;  %v2427_v60 = vcombine.low %v2004_v27, %v2012_v53 }
 0x225   : > { %v1995_v16 = vrot.slane %v1981_v43, %v3528_v11  ;;  %v1996_v4 = vcombine.high %v1988_v14, %v1988_v14  ;;  %v2410_v21 = vcombine.low %v1980_v28, %v1988_v14  ;;  %v636_v5 = vpop.permute.xlu1 %635 }
 0x226   : > { %v2428_v51 = vcombine.low %v2011_v62, %v2013_v47  ;;  %v750_v22 = vpop.permute.xlu0 %749  ;;  %v2435_v19 = vrot.slane %v2427_v60, %v3528_v11  ;;  %v1396_v40 = vsel %vm1370_vm1, %v1367_v46, %v636_v5 }
 0x227   : > { %v2411_v15 = vcombine.low %v1996_v4, %v1995_v16  ;;  %v2418_v7 = vrot.slane %v2410_v21, %v3528_v11  ;;  %v1426_v3 = vsel %vm1399_vm2, %v1397_v41, %v750_v22 }
 0x228   : > { %v2442_v23 = vrot.slane %v2428_v51, %v3528_v11 }
 0x229   : > { %v2425_v6 = vrot.slane %v2411_v15, %v3528_v11  ;;  %v748_v54 = vpop.permute.xlu1 %747 }
 0x22a   : > { %v862_v37 = vpop.permute.xlu0 %861  ;;  %v2443_v8 = vcombine.low %v2435_v19, %v2442_v23  ;;  %v1425_v55 = vsel %vm1399_vm2, %v1396_v40, %v748_v54 }
 0x22b   : > { %v2426_v2 = vcombine.low %v2418_v7, %v2425_v6  ;;  %v1455_v33 = vsel %vm1428_vm3, %v1426_v3, %v862_v37 }
 0x22d   : > { %v640_v1 = vpop.permute.xlu1 %639  ;;  %v2963_v13 = vpack.c.bf16 %v2443_v8, %v2426_v2 }
 0x22e   : > { %v974_v57 = vpop.permute.xlu0 %973  ;;  %v1398_v58 = vsel %vm1370_vm1, %v1369_v30, %v640_v1 }
 0x22f   : > { %2965 = vmatpush1.bf16.xpose.msk.msra.mxu0 %vm3586_vm9, %v2963_v13 }
 0x230   : > { %2966 = vmatprep.subr.bf16.mxu0 %v3126_v44  ;;  %v1484_v44 = vsel %vm1457_vm4, %v1455_v33, %v974_v57 }
 0x231   : > { %v1086_v59 = vpop.permute.xlu1 %1085 }
 0x232   : > { %v860_v20 = vpop.permute.xlu0 %859  ;;  %v1513_v18 = vsel %vm1486_vm5, %v1484_v44, %v1086_v59 }
 0x233   : > { %v1454_v63 = vsel %vm1428_vm3, %v1425_v55, %v860_v20 }
 0x235   : > { %v972_v9 = vpop.permute.xlu1 %971 }
 0x236   : > { %v752_v26 = vpop.permute.xlu0 %751  ;;  %v1483_v61 = vsel %vm1457_vm4, %v1454_v63, %v972_v9 }
 0x237   : > { %v1427_v50 = vsel %vm1399_vm2, %v1398_v58, %v752_v26 }
 0x239   : > { %v864_v0 = vpop.permute.xlu1 %863 }
 0x23a   : > { %v1198_v52 = vpop.permute.xlu0 %1197  ;;  %v1456_v43 = vsel %vm1428_vm3, %v1427_v50, %v864_v0 }
 0x23b   : > { %v1542_v24 = vsel %vm1515_vm6, %v1513_v18, %v1198_v52 }
 0x23d   : > { %v1310_v38 = vpop.permute.xlu1 %1309 }
 0x23e   : > { %v1084_v48 = vpop.permute.xlu0 %1083  ;;  %v1571_v34 = vsel %vm1544_vm7, %v1542_v24, %v1310_v38 }
 0x23f   : > { %v2030_v31 = vcombine.high %v1571_v34, %v1571_v34  ;;  %v1512_v35 = vsel %vm1486_vm5, %v1483_v61, %v1084_v48  ;;  %v2037_v32 = vrot.slane %v1571_v34, %v3528_v11 }
 0x241   : > { %v1196_v36 = vpop.permute.xlu1 %1195  ;;  %v2044_v14 = vrot.slane %v2030_v31, %v3528_v11  ;;  %v2045_v39 = vcombine.high %v2037_v32, %v2037_v32 }
 0x242   : > { %v976_v25 = vpop.permute.xlu0 %975  ;;  %v1541_v27 = vsel %vm1515_vm6, %v1512_v35, %v1196_v36 }
 0x243   : > { %v1485_v47 = vsel %vm1457_vm4, %v1456_v43, %v976_v25  ;;  %v2461_v19 = vcombine.low %v2045_v39, %v2044_v14  ;;  %v2046_v7 = vcombine.high %v2044_v14, %v2044_v14 }
 0x245   : > { %v1308_v42 = vpop.permute.xlu1 %1307  ;;  %v2469_v2 = vrot.slane %v2461_v19, %v3528_v11 }
 0x246   : > { %v1570_v62 = vsel %vm1544_vm7, %v1541_v27, %v1308_v42  ;;  %v1088_v53 = vpop.permute.xlu0 %1087 }
 0x247   : > { %v2014_v29 = vcombine.high %v1570_v62, %v1570_v62  ;;  %v2021_v28 = vrot.slane %v1570_v62, %v3528_v11  ;;  %v1514_v21 = vsel %vm1486_vm5, %v1485_v47, %v1088_v53 }
 0x249   : > { %v2028_v60 = vrot.slane %v2014_v29, %v3528_v11  ;;  %v2029_v16 = vcombine.high %v2021_v28, %v2021_v28  ;;  %v1312_v4 = vpop.permute.xlu1 %1311 }
 0x24a   : > { %v1200_v5 = vpop.permute.xlu0 %1199 }
 0x24b   : > { %v2444_v51 = vcombine.low %v2021_v28, %v2029_v16  ;;  %v2445_v22 = vcombine.low %v2028_v60, %v2037_v32  ;;  %v1543_v15 = vsel %vm1515_vm6, %v1514_v21, %v1200_v5 }
 0x24c   : > { %v1572_v23 = vsel %vm1544_vm7, %v1543_v15, %v1312_v4 }
 0x24d   : > { %v2054_v6 = vrot.slane %v1572_v23, %v3528_v11  ;;  %v2452_v54 = vrot.slane %v2444_v51, %v3528_v11  ;;  %v2459_v37 = vrot.slane %v2445_v22, %v3528_v11  ;;  %v2047_v1 = vcombine.high %v1572_v23, %v1572_v23 }
 0x24f   : > { %v2462_v8 = vcombine.low %v2046_v7, %v2054_v6  ;;  %v2460_v57 = vcombine.low %v2452_v54, %v2459_v37  ;;  %v2061_v20 = vrot.slane %v2047_v1, %v3528_v11  ;;  %v2062_v9 = vcombine.high %v2054_v6, %v2054_v6 }
 0x251   : > { %v2476_v13 = vrot.slane %v2462_v8, %v3528_v11  ;;  %v2478_v56 = vcombine.low %v2062_v9, %v2061_v20 }
 0x253   : > { %v2477_v59 = vcombine.low %v2469_v2, %v2476_v13  ;;  %v2485_v0 = vrot.slane %v2478_v56, %v3528_v11 }
 0x255   : > { %v2967_v26 = vpack.c.bf16 %v2477_v59, %v2460_v57 }
 0x257   : > { %2969 = vmatpush1.bf16.xpose.msk.msra.mxu0 %vm3586_vm9, %v2967_v26 }
 0x258   : > { %2588 = vmatprep.subr.mxu0 %v3128_v45 }
 0x25b   : > { %v2068_v52 = vpop.permute.xlu0 %2067 }
 0x25f   : > { %2913 = vmatpush1.xpose.msk.msra.mxu0 %vm2486_vm8, %v2485_v0 }
 0x262   : > { %2914 = vmatmul.mubr.msk.f32.vlgmr.msra.gmra.mrb[0].mxu0 %vm2486_vm8, %v2063_v17 }
 0x335   : > { %v2606_v41 = vpop.f32.mrb[0].mxu0 }
 0x336   : > { %v2607_v10 = vadd.f32 %v2606_v41, %v2068_v52  ;;  %v2608_v12 = vpop.f32.mrb[1].mxu0 }
 0x337   : > { %v2609_v45 = vadd.f32 %v2608_v12, %v2068_v52 }
 0x338   : > { %v2611_v11 = vmax.f32 %v2607_v10, 0.0 }
 0x339   : > { %v2612_v3 = vmax.f32 %v2609_v45, 0.0 }
 0x33a   : > { %2613 = vst [vmem:[%s177_s29] sm:$0xff] %v2611_v11 }
 0x33b   : > { %2615 = vst.msk [vmem:[%s177_s29 + $0x8] sm:$0xff] %vm2614_vm10, %v2612_v3 }
 0x33c   : > { %3051 = shalt.err (!%p3048_p5)
}
 0x33d   : > { %s3052_s11 = scalar_lea.hbm %s4264_s6, 256  ;;  %s3056_s21 = scalar_lea.hbm %s4314_s3, 512 }
 0x33e   : > { %p3053_p6 = scmp.ne.s32.totalorder %s4264_s6, %s3052_s11  ;;  %p3057_p10 = scmp.lt.u32.totalorder %s4264_s6, %s4314_s3 }
 0x33f   : > { %p3058_p11 = scmp.lt.u32.totalorder %s3056_s21, %s3052_s11  ;;  %p3060_p13 = scmp.lt.u32.totalorder %s3052_s11, %s4264_s6 }
 0x340   : > { %p3054_p7 = pnand %p3053_p6, %p3191_p4 }
 0x341   : > { %p3059_p12 = por %p3058_p11, %p3057_p10 }
 0x342   : > { %p3055_p9 = pneg %p3054_p7 }
 0x343   : > { %p3061_p0 = por %p3060_p13, %p3059_p12 }
 0x345   : > { %p3062_p1 = pnand %p3061_p0, %p3055_p9 }
 0x347   : > { %3065 = shalt.err (!%p3062_p1)
}
 0x348   : > { %2970 = dma.vmem_to_hbm [thread:$0]  (%p3191_p4), %s4266_s30, 256, %s4264_s6, %s2617_s7  }
 0x349 PF: > { %p2976_p2 = scmp.ge.s32.totalorder %s3116_s17, 2  ;;  %s2645_s27 = sand.u32 1, %s3096_s12  }
 0x34a   : > { %s2646_s28 = scalar_lea.sflag [#allocation3], %s2645_s27 }
 0x34b   : > { %p2973_p3 = pnand %p2976_p2, %p3198_p8 }
 0x34d   : > { %3091 = dma.done.wait (!%p2973_p3), %s2646_s28, 256  }
 0x34e   : > { %3093 = vsyncadd (!%p2973_p3), %s2646_s28, 4294967040  ;;  %s16_s17 = sadd.s32 1, %s3116_s17   ;;  %s4319_s12 = smov %s3100_s13 }
 0x34f   : > { %p13_p5 = scmp.ge.s32.totalorder %s16_s17, 4   ;;  %s4320_s13 = smov %s3104_s14 }
 0x350   : > { %s4321_s14 = smov %s3204_s25  ;;  %s4322_s15 = smov %s3112_s16 }
 0x351   : > { %s4323_s16 = smov %s4325_s20  ;;  %15 = sbr.rel (!%p13_p5) target bundleno = 4 (0x4), region = 70 }
 0x358   :  { %2651 = vsyncpa [#allocation3], 1 }
 0x359   :  { %2653 = vsyncpa [#allocation3 + $0x1], 1 }

// kernel: tpu_custom_call.1
= control target key start
LH: loop header
LB: loop body
LE: loop exit
PB: predicated region body
PF: predicated region fallthrough
CT: control target
= control target key end

     0   :  { %8 = vsyncpa [#allocation3], 0  ;;  %s4311_s0 = inlined_call_operand.vmem [shape: f32[2,16,16,4], index: 0, kind: input, shape index: {}]   ;;  %s4312_s1 = inlined_call_operand.vmem [shape: f32[8,36], index: 1, kind: input, shape index: {}]   ;;  %s4313_s2 = inlined_call_operand.vmem [shape: f32[8,1], index: 2, kind: input, shape index: {}]   ;;  %s4314_s3 = inlined_call_operand.hbm [shape: f32[2,8,196], index: 3, kind: output, shape index: {}]  }
   0x1   :  { %10 = vsyncpa [#allocation3 + $0x1], 0  ;;  %s3151_s12 = smov 0   ;;  %s3153_s13 = smov 0  }
   0x2   :  { %s3155_s14 = smov 0   ;;  %s3157_s15 = smov 0  }
   0x3   :  { %s3159_s16 = smov 0   ;;  %s3161_s17 = smov 0  }
   0x4 LB: > { %s2713_s18 = sadd.s32 4294967295, %s3116_s17   ;;  %s2714_s19 = sadd.s32 4294967294, %s3116_s17   ;;  %s3116_s17 = sphi %s3161_s17, %s16_s17   ;;  %s3112_s16 = sphi %s3159_s16, %s4323_s16   ;;  %s3108_s15 = sphi %s3157_s15, %s4322_s15   ;;  %s3104_s14 = sphi %s3155_s14, %s4321_s14   ;;  %s3100_s13 = sphi %s3153_s13, %s4320_s13   ;;  %s3096_s12 = sphi %s3151_s12, %s4319_s12  }
   0x5   : > { %s28_s20 = sadd.s32 1, %s3112_s16  ;;  %s105_s21 = sadd.s32 1, %s3104_s14 }
   0x6   : > { %p30_p0 = scmp.ge.s32.totalorder %s28_s20, 2  ;;  %p115_p1 = scmp.ne.s32.totalorder %s3104_s14, %s3100_s13 }
   0x7   : > { %p116_p2 = scmp.eq.s32.totalorder %s2713_s18, 1  ;;  %p121_p3 = scmp.ne.s32.totalorder %s3100_s13, %s3096_s12 }
   0x8   : > { %s4325_s20 = smov (%p30_p0, %s28_s20), 0  ;;  %p122_p5 = scmp.eq.s32.totalorder %s2714_s19, 1 }
   0x9   : > { %p3191_p4 = por %p116_p2, %p115_p1  ;;  %s100_s23 = ssub.s32 %s3112_s16, %s4325_s20 }
   0xa   : > { %p2717_p6 = scmp.ge.s32.totalorder %s3116_s17, 1  ;;  %p103_p7 = scmp.eq.s32.totalorder %s100_s23, 0 }
   0xb   : > { %p3198_p8 = por %p122_p5, %p121_p3  ;;  %p154_p9 = scmp.lt.s32.totalorder %s3116_s17, 3 }
   0xc   : > { %s3204_s25 = scalar_select %p103_p7, %s3104_s14, %s105_s21  }
   0xd   : > { %p155_p10 = pnand %p2717_p6, %p154_p9 }
   0xe   : > { %p178_p11 = scmp.lt.s32.totalorder (!%p155_p10), %s3108_s15, 1  ;;  %s3118_s4 = smov (!%p155_p10), 4   ;;  %v3126_v44 = vmov (!%p155_p10), 0.0|0.0   ;;  %vm1341_vm0 = vcmask (!%p155_p10), 31744   ;;  %vm1370_vm1 = vcmask (!%p155_p10), 64512   ;;  %vm1399_vm2 = vcmask (!%p155_p10), 97280  }
   0xf   : > { %158 = sbr.rel (%p155_p10) target bundleno = 841 (0x349), region = 32  ;;  %s3119_s5 = smov (!%p155_p10), 12   ;;  %2922 = vmatprep.subr.bf16.mxu0 (!%p155_p10), %v3126_v44  ;;  %vm1428_vm3 = vcmask (!%p155_p10), 130048   ;;  %vm1457_vm4 = vcmask (!%p155_p10), 162816   ;;  %vm1486_vm5 = vcmask (!%p155_p10), 195584   ;;  %vm1515_vm6 = vcmask (!%p155_p10), 228352  }
  0x10   : > { %s3120_s6 = smov (!%p155_p10), 8   ;;  %s3121_s7 = smov (!%p155_p10), 16   ;;  %vm1544_vm7 = vcmask (!%p155_p10), 261120   ;;  %vm2486_vm8 = vcmask (!%p155_p10), 293888   ;;  %vm2614_vm10 = vcmask (!%p155_p10), 556032  }
  0x11   : > { %s3122_s8 = smov (!%p155_p10), 20   ;;  %s3123_s9 = smov (!%p155_p10), 24   ;;  %vm3586_vm9 = vmpackc.low (!%p155_p10), %vm2486_vm8, %vm2486_vm8 }
  0x12   : > { %s3124_s10 = smov (!%p155_p10), 28   ;;  %s3125_s11 = smov (!%p155_p10), 32  }
  0x13   : > { %s2921_s28 = sshll.u32 (!%p155_p10), %s3108_s15, 8 }
  0x16   : > { %s179_s26 = scalar_select %p178_p11, %s3108_s15, 1 }
  0x18   : > { %s2920_s27 = sshll.u32 %s179_s26, 8  ;;  %s175_s26 = sand.u32 1, %s3100_s13  }
  0x19   : > { %s3211_s30 = scalar_lea.vmem %s4311_s0, %s2920_s27  ;;  %s2718_s27 = sshll.u32 %s175_s26, 4 }
  0x1a   : > { %v3214_v0 = vld [vmem:[%s3211_s30 + $0x11] sm:$0xff]  ;;  %v215_v1 = vld [vmem:[%s3211_s30 + $0x1] sm:$0xff]  ;;  %v218_v2 = vld [vmem:[%s3211_s30 + $0x19] sm:$0x3f]  ;;  %s177_s29 = scalar_lea.vmem [#allocation2], %s2718_s27 }
  0x1b   : > { %477 = vrot.lane.b32.xlu1 %v3214_v0, %s3118_s4  ;;  %473 = vrot.lane.b32.xlu0 %v215_v1, %s3118_s4  ;;  %v216_v3 = vld [vmem:[%s3211_s30 + $0x9] sm:$0x3f]  ;;  %v3226_v5 = vld [vmem:[%s3211_s30 + $0x21] sm:$0xff] }
  0x1c   : > { %v220_v4 = vld [vmem:[%s3211_s30 + $0x29] sm:$0x3f]  ;;  %v222_v6 = vld [vmem:[%s3211_s30 + $0x39] sm:$0x3f]  ;;  %v3233_v7 = vld [vmem:[%s3211_s30 + $0x31] sm:$0xff] }
  0x1d   : > { %v224_v8 = vld [vmem:[%s3211_s30 + $0x49] sm:$0x3f]  ;;  %v3240_v9 = vld [vmem:[%s3211_s30 + $0x41] sm:$0xff]  ;;  %v226_v10 = vld [vmem:[%s3211_s30 + $0x59] sm:$0x3f] }
  0x1e   : > { %v3247_v11 = vld [vmem:[%s3211_s30 + $0x51] sm:$0xff]  ;;  %v228_v12 = vld [vmem:[%s3211_s30 + $0x69] sm:$0x3f]  ;;  %v3254_v13 = vld [vmem:[%s3211_s30 + $0x61] sm:$0xff] }
  0x1f   : > { %479 = vrot.lane.b32.xlu1 %v218_v2, %s3118_s4  ;;  %475 = vrot.lane.b32.xlu0 %v216_v3, %s3118_s4  ;;  %v230_v14 = vld [vmem:[%s3211_s30 + $0x79] sm:$0x3f]  ;;  %v3261_v15 = vld [vmem:[%s3211_s30 + $0x71] sm:$0xff] }
  0x20   : > { %v232_v16 = vld [vmem:[%s3211_s30 + $0x89] sm:$0x3f]  ;;  %v3268_v17 = vld [vmem:[%s3211_s30 + $0x81] sm:$0xff]  ;;  %v234_v18 = vld [vmem:[%s3211_s30 + $0x99] sm:$0x3f] }
  0x21   : > { %v3275_v19 = vld [vmem:[%s3211_s30 + $0x91] sm:$0xff]  ;;  %v236_v20 = vld [vmem:[%s3211_s30 + $0xa9] sm:$0x3f]  ;;  %v235_v21 = vld [vmem:[%s3211_s30 + $0xa1] sm:$0xff] }
  0x22   : > { %v238_v22 = vld [vmem:[%s3211_s30 + $0xb9] sm:$0x3f]  ;;  %v237_v23 = vld [vmem:[%s3211_s30 + $0xb1] sm:$0xff]  ;;  %v240_v24 = vld [vmem:[%s3211_s30 + $0xc9] sm:$0x3f] }
  0x23   : > { %483 = vrot.lane.b32.xlu1 %v220_v4, %s3118_s4  ;;  %481 = vrot.lane.b32.xlu0 %v3226_v5, %s3118_s4  ;;  %v239_v25 = vld [vmem:[%s3211_s30 + $0xc1] sm:$0xff]  ;;  %v242_v26 = vld [vmem:[%s3211_s30 + $0xd9] sm:$0x3f] }
  0x24   : > { %v241_v27 = vld [vmem:[%s3211_s30 + $0xd1] sm:$0xff]  ;;  %v243_v29 = vld [vmem:[%s3211_s30 + $0x2] sm:$0xff]  ;;  %v244_v30 = vld [vmem:[%s3211_s30 + $0xa] sm:$0x3f] }
  0x25   : > { %v3297_v28 = vld [vmem:[%s3211_s30 + $0x10] sm:$0xff]  ;;  %v2722_v32 = vld [vmem:[%s3211_s30 + $0x18] sm:$0x3f]  ;;  %v3315_v34 = vld [vmem:[%s3211_s30 + $0x20] sm:$0xff] }
  0x26   : > { %v2777_v31 = vld [vmem:[%s3211_s30 + $0x12] sm:$0xff]  ;;  %v2778_v35 = vld [vmem:[%s3211_s30 + $0x1a] sm:$0x3f]  ;;  %v2806_v36 = vld [vmem:[%s3211_s30 + $0x28] sm:$0x3f] }
  0x27   : > { %487 = vrot.lane.b32.xlu1 %v222_v6, %s3118_s4  ;;  %485 = vrot.lane.b32.xlu0 %v3233_v7, %s3118_s4  ;;  %v2750_v33 = vld [vmem:[%s3211_s30 + $0x19] sm:$0x3f]  ;;  %v2779_v37 = vld [vmem:[%s3211_s30 + $0x22] sm:$0xff] }
  0x28   : > { %v3333_v38 = vld [vmem:[%s3211_s30 + $0x30] sm:$0xff]  ;;  %v2834_v39 = vld [vmem:[%s3211_s30 + $0x29] sm:$0x3f]  ;;  %v246_v41 = vld [vmem:[%s3211_s30 + $0x1a] sm:$0x3f] }
  0x29   : > { %v2862_v40 = vld [vmem:[%s3211_s30 + $0x2a] sm:$0x3f]  ;;  %v2863_v43 = vld [vmem:[%s3211_s30 + $0x32] sm:$0xff]  ;;  %v2809_v49 = vld [vmem:[%s3211_s30 + $0x40] sm:$0xff] }
  0x2a   : > { %v2724_v42 = vld [vmem:[%s3211_s30 + $0x28] sm:$0x3f]  ;;  %v2808_v47 = vld [vmem:[%s3211_s30 + $0x38] sm:$0x3f]  ;;  %v197_v2 = vld [vmem:[%s3211_s30 + $0x50] sm:$0xff] }
  0x2b   : > { %491 = vrot.lane.b32.xlu1 %v224_v8, %s3118_s4  ;;  %489 = vrot.lane.b32.xlu0 %v3240_v9, %s3118_s4  ;;  %v2752_v45 = vld [vmem:[%s3211_s30 + $0x29] sm:$0x3f]  ;;  %v2836_v48 = vld [vmem:[%s3211_s30 + $0x39] sm:$0x3f] }
  0x2c   : > { %v2780_v46 = vld [vmem:[%s3211_s30 + $0x2a] sm:$0x3f]  ;;  %v2864_v52 = vld [vmem:[%s3211_s30 + $0x3a] sm:$0x3f]  ;;  %v2865_v56 = vld [vmem:[%s3211_s30 + $0x42] sm:$0xff] }
  0x2d   : > { %v248_v55 = vld [vmem:[%s3211_s30 + $0x2a] sm:$0x3f]  ;;  %v2726_v59 = vld [vmem:[%s3211_s30 + $0x38] sm:$0x3f] }
  0x2e   : > { %v2754_v62 = vld [vmem:[%s3211_s30 + $0x39] sm:$0x3f]  ;;  %v2810_v8 = vld [vmem:[%s3211_s30 + $0x48] sm:$0x3f] }
  0x2f   : > { %495 = vrot.lane.b32.xlu1 %v226_v10, %s3118_s4  ;;  %493 = vrot.lane.b32.xlu0 %v3247_v11, %s3118_s4  ;;  %v2782_v3 = vld [vmem:[%s3211_s30 + $0x3a] sm:$0x3f] }
  0x33   : > { %499 = vrot.lane.b32.xlu1 %v228_v12, %s3118_s4  ;;  %497 = vrot.lane.b32.xlu0 %v3254_v13, %s3118_s4 }
  0x37   : > { %503 = vrot.lane.b32.xlu1 %v230_v14, %s3118_s4  ;;  %501 = vrot.lane.b32.xlu0 %v3261_v15, %s3118_s4 }
  0x3b   : > { %507 = vrot.lane.b32.xlu1 %v232_v16, %s3118_s4  ;;  %505 = vrot.lane.b32.xlu0 %v3268_v17, %s3118_s4  ;;  %v2838_v16 = vld [vmem:[%s3211_s30 + $0x49] sm:$0x3f] }
  0x3f   : > { %511 = vrot.lane.b32.xlu1 %v234_v18, %s3118_s4  ;;  %509 = vrot.lane.b32.xlu0 %v3275_v19, %s3118_s4 }
  0x43   : > { %515 = vrot.lane.b32.xlu1 %v236_v20, %s3118_s4  ;;  %513 = vrot.lane.b32.xlu0 %v235_v21, %s3118_s4 }
  0x47   : > { %519 = vrot.lane.b32.xlu1 %v238_v22, %s3118_s4  ;;  %517 = vrot.lane.b32.xlu0 %v237_v23, %s3118_s4  ;;  %v2867_v22 = vld [vmem:[%s3211_s30 + $0x52] sm:$0xff]  ;;  %v2866_v23 = vld [vmem:[%s3211_s30 + $0x4a] sm:$0x3f] }
  0x4b   : > { %523 = vrot.lane.b32.xlu1 %v240_v24, %s3118_s4  ;;  %521 = vrot.lane.b32.xlu0 %v239_v25, %s3118_s4 }
  0x4f   : > { %527 = vrot.lane.b32.xlu1 %v242_v26, %s3118_s4  ;;  %525 = vrot.lane.b32.xlu0 %v241_v27, %s3118_s4  ;;  %v250_v26 = vld [vmem:[%s3211_s30 + $0x3a] sm:$0x3f] }
  0x53   : > { %697 = vrot.lane.b32.xlu1 %v3297_v28, %s3119_s5  ;;  %585 = vrot.lane.b32.xlu0 %v243_v29, %s3120_s6 }
  0x57   : > { %809 = vrot.lane.b32.xlu1 %v3214_v0, %s3121_s7  ;;  %587 = vrot.lane.b32.xlu0 %v244_v30, %s3120_s6  ;;  %v2728_v30 = vld [vmem:[%s3211_s30 + $0x48] sm:$0x3f] }
  0x5b   : > { %921 = vrot.lane.b32.xlu1 %v2777_v31, %s3122_s8  ;;  %699 = vrot.lane.b32.xlu0 %v2722_v32, %s3119_s5 }
  0x5f   : > { %811 = vrot.lane.b32.xlu1 %v2750_v33, %s3121_s7  ;;  %589 = vrot.lane.b32.xlu0 %v2777_v31, %s3120_s6  ;;  %v2756_v33 = vld [vmem:[%s3211_s30 + $0x49] sm:$0x3f] }
  0x63   : > { %701 = vrot.lane.b32.xlu1 %v3315_v34, %s3119_s5  ;;  %1033 = vrot.lane.b32.xlu0 %v3315_v34, %s3123_s9 }
  0x67   : > { %1145 = vrot.lane.b32.xlu1 %v3226_v5, %s3124_s10  ;;  %923 = vrot.lane.b32.xlu0 %v2778_v35, %s3122_s8 }
  0x6b   : > { %1035 = vrot.lane.b32.xlu1 %v2806_v36, %s3123_s9  ;;  %813 = vrot.lane.b32.xlu0 %v3226_v5, %s3121_s7 }
  0x6f   : > { %925 = vrot.lane.b32.xlu1 %v2779_v37, %s3122_s8  ;;  %1257 = vrot.lane.b32.xlu0 %v2779_v37, %s3125_s11 }
  0x73   : > { %1037 = vrot.lane.b32.xlu1 %v3333_v38, %s3123_s9  ;;  %1147 = vrot.lane.b32.xlu0 %v2834_v39, %s3124_s10 }
  0x77   : > { %1149 = vrot.lane.b32.xlu1 %v3233_v7, %s3124_s10  ;;  %1259 = vrot.lane.b32.xlu0 %v2862_v40, %s3125_s11 }
  0x7b   : > { %593 = vrot.lane.b32.xlu1 %v2779_v37, %s3120_s6  ;;  %591 = vrot.lane.b32.xlu0 %v246_v41, %s3120_s6  ;;  %v2784_v37 = vld [vmem:[%s3211_s30 + $0x4a] sm:$0x3f] }
  0x7f   : > { %703 = vrot.lane.b32.xlu1 %v2724_v42, %s3119_s5  ;;  %1261 = vrot.lane.b32.xlu0 %v2863_v43, %s3125_s11 }
  0x83   : > { %815 = vrot.lane.b32.xlu1 %v2752_v45, %s3121_s7  ;;  %705 = vrot.lane.b32.xlu0 %v3333_v38, %s3119_s5  ;;  %v3477_v45 = vld [vmem:[%s3211_s30 + $0x62] sm:$0xff] }
  0x87   : > { %927 = vrot.lane.b32.xlu1 %v2780_v46, %s3122_s8  ;;  %817 = vrot.lane.b32.xlu0 %v3233_v7, %s3121_s7  ;;  %v199_v7 = vld [vmem:[%s3211_s30 + $0x60] sm:$0xff] }
  0x8b   : > { %1039 = vrot.lane.b32.xlu1 %v2808_v47, %s3123_s9  ;;  %929 = vrot.lane.b32.xlu0 %v2863_v43, %s3122_s8 }
  0x8d   : > { %v3364_v50 = vpop.permute.xlu1 %477  ;;  %v3366_v51 = vpop.permute.xlu0 %473 }
  0x8f   : > { %1151 = vrot.lane.b32.xlu1 %v2836_v48, %s3124_s10  ;;  %1041 = vrot.lane.b32.xlu0 %v2809_v49, %s3123_s9  ;;  %v2868_v48 = vld [vmem:[%s3211_s30 + $0x5a] sm:$0x3f] }
  0x91   : > { %v3371_v53 = vpop.permute.xlu1 %479  ;;  %v3373_v54 = vpop.permute.xlu0 %475 }
  0x93   : > { %1263 = vrot.lane.b32.xlu1 %v2864_v52, %s3125_s11  ;;  %1153 = vrot.lane.b32.xlu0 %v3240_v9, %s3124_s10 }
  0x95   : > { %v3380_v57 = vpop.permute.xlu1 %483  ;;  %v3382_v58 = vpop.permute.xlu0 %481 }
  0x97   : > { %595 = vrot.lane.b32.xlu1 %v248_v55, %s3120_s6  ;;  %1265 = vrot.lane.b32.xlu0 %v2865_v56, %s3125_s11  ;;  %v252_v55 = vld [vmem:[%s3211_s30 + $0x4a] sm:$0x3f] }
  0x99   : > { %v3387_v60 = vpop.permute.xlu1 %487  ;;  %v3389_v61 = vpop.permute.xlu0 %485 }
  0x9b   : > { %707 = vrot.lane.b32.xlu1 %v2726_v59, %s3119_s5  ;;  %597 = vrot.lane.b32.xlu0 %v2863_v43, %s3120_s6  ;;  %v2840_v43 = vld [vmem:[%s3211_s30 + $0x59] sm:$0x3f] }
  0x9d   : > { %v3394_v63 = vpop.permute.xlu1 %491  ;;  %v490_v0 = vpop.permute.xlu0 %489 }
  0x9e   : > { %v3397_v1 = vsel %vm1341_vm0, %v2809_v49, %v490_v0 }
  0x9f   : > { %819 = vrot.lane.b32.xlu1 %v2754_v62, %s3121_s7  ;;  %709 = vrot.lane.b32.xlu0 %v2809_v49, %s3119_s5  ;;  %v2730_v62 = vld [vmem:[%s3211_s30 + $0x58] sm:$0x3f] }
  0xa1   : > { %v3403_v4 = vpop.permute.xlu1 %495  ;;  %v494_v5 = vpop.permute.xlu0 %493 }
  0xa2   : > { %v3406_v6 = vsel %vm1341_vm0, %v197_v2, %v494_v5  ;;  %v254_v5 = vld [vmem:[%s3211_s30 + $0x5a] sm:$0x3f] }
  0xa3   : > { %931 = vrot.lane.b32.xlu1 %v2782_v3, %s3122_s8  ;;  %821 = vrot.lane.b32.xlu0 %v3240_v9, %s3121_s7  ;;  %v187_v3 = vld [vmem:[%s3211_s30] sm:$0xff] }
  0xa5   : > { %v3413_v10 = vpop.permute.xlu1 %499  ;;  %v498_v12 = vpop.permute.xlu0 %497 }
  0xa6   : > { %v3416_v14 = vsel %vm1341_vm0, %v199_v7, %v498_v12 }
  0xa7   : > { %1043 = vrot.lane.b32.xlu1 %v2810_v8, %s3123_s9  ;;  %933 = vrot.lane.b32.xlu0 %v2865_v56, %s3122_s8  ;;  %v1342_v8 = vsel %vm1341_vm0, %v187_v3, %v3366_v51 }
  0xa9   : > { %v3421_v18 = vpop.permute.xlu1 %503  ;;  %v3423_v20 = vpop.permute.xlu0 %501 }
  0xab   : > { %1155 = vrot.lane.b32.xlu1 %v2838_v16, %s3124_s10  ;;  %1045 = vrot.lane.b32.xlu0 %v197_v2, %s3123_s9 }
  0xad   : > { %v3427_v9 = vpop.permute.xlu1 %507  ;;  %v3429_v21 = vpop.permute.xlu0 %505 }
  0xaf   : > { %601 = vrot.lane.b32.xlu1 %v2865_v56, %s3120_s6  ;;  %1157 = vrot.lane.b32.xlu0 %v3247_v11, %s3124_s10 }
  0xb1   : > { %v3436_v24 = vpop.permute.xlu1 %511  ;;  %v3438_v25 = vpop.permute.xlu0 %509 }
  0xb3   : > { %1269 = vrot.lane.b32.xlu1 %v2867_v22, %s3125_s11  ;;  %1267 = vrot.lane.b32.xlu0 %v2866_v23, %s3125_s11 }
  0xb5   : > { %v3443_v27 = vpop.permute.xlu1 %515  ;;  %v3445_v29 = vpop.permute.xlu0 %513 }
  0xb7   : > { %599 = vrot.lane.b32.xlu1 %v250_v26, %s3120_s6  ;;  %713 = vrot.lane.b32.xlu0 %v197_v2, %s3119_s5  ;;  %v3507_v26 = vld [vmem:[%s3211_s30 + $0x70] sm:$0xff] }
  0xb9   : > { %v3450_v31 = vpop.permute.xlu1 %519  ;;  %v3452_v32 = vpop.permute.xlu0 %517 }
  0xbb   : > { %711 = vrot.lane.b32.xlu1 %v2728_v30, %s3119_s5  ;;  %825 = vrot.lane.b32.xlu0 %v3247_v11, %s3121_s7  ;;  %v2812_v11 = vld [vmem:[%s3211_s30 + $0x58] sm:$0x3f] }
  0xbd   : > { %v3458_v35 = vpop.permute.xlu1 %523  ;;  %v3460_v36 = vpop.permute.xlu0 %521 }
  0xbf   : > { %823 = vrot.lane.b32.xlu1 %v2756_v33, %s3121_s7  ;;  %937 = vrot.lane.b32.xlu0 %v2867_v22, %s3122_s8  ;;  %v3127_v33 = vmov 1983009808  }
  0xc1   : > { %v3465_v39 = vpop.permute.xlu1 %527  ;;  %v3467_v40 = vpop.permute.xlu0 %525 }
  0xc3   : > { %935 = vrot.lane.b32.xlu1 %v2784_v37, %s3122_s8  ;;  %1049 = vrot.lane.b32.xlu0 %v199_v7, %s3123_s9  ;;  %v1603_v37 = vunpack.c.l.s4 %v3127_v33 }
  0xc5   : > { %v698_v41 = vpop.permute.xlu1 %697  ;;  %v586_v42 = vpop.permute.xlu0 %585 }
  0xc7   : > { %1047 = vrot.lane.b32.xlu1 %v2812_v11, %s3123_s9  ;;  %1161 = vrot.lane.b32.xlu0 %v3254_v13, %s3124_s10  ;;  %v1605_v11 = vlaneseq }
  0xc9   : > { %v810_v46 = vpop.permute.xlu1 %809  ;;  %v588_v47 = vpop.permute.xlu0 %587 }
  0xcb   : > { %1159 = vrot.lane.b32.xlu1 %v2840_v43, %s3124_s10  ;;  %1273 = vrot.lane.b32.xlu0 %v3477_v45, %s3125_s11 }
  0xcd   : > { %v922_v49 = vpop.permute.xlu1 %921  ;;  %v700_v52 = vpop.permute.xlu0 %699 }
  0xcf   : > { %1271 = vrot.lane.b32.xlu1 %v2868_v48, %s3125_s11  ;;  %605 = vrot.lane.b32.xlu0 %v2867_v22, %s3120_s6  ;;  %v2758_v22 = vld [vmem:[%s3211_s30 + $0x59] sm:$0x3f] }
  0xd0   : > { %v2786_v48 = vld [vmem:[%s3211_s30 + $0x5a] sm:$0x3f] }
  0xd1   : > { %v812_v56 = vpop.permute.xlu1 %811  ;;  %v3486_v59 = vpop.permute.xlu0 %589 }
  0xd3   : > { %603 = vrot.lane.b32.xlu1 %v252_v55, %s3120_s6  ;;  %717 = vrot.lane.b32.xlu0 %v199_v7, %s3119_s5  ;;  %v1371_v7 = vsel %vm1370_vm1, %v1342_v8, %v586_v42  ;;  %v2732_v55 = vld [vmem:[%s3211_s30 + $0x68] sm:$0x3f]  ;;  %v1606_v8 = vshrl.u32 %v1605_v11, 7 }
  0xd5   : > { %v3491_v0 = vpop.permute.xlu1 %701  ;;  %v1034_v2 = vpop.permute.xlu0 %1033 }
  0xd7   : > { %715 = vrot.lane.b32.xlu1 %v2730_v62, %s3119_s5  ;;  %829 = vrot.lane.b32.xlu0 %v3254_v13, %s3121_s7  ;;  %v1400_v13 = vsel %vm1399_vm2, %v1371_v7, %v698_v41  ;;  %v188_v41 = vld [vmem:[%s3211_s30 + $0x8] sm:$0x3f] }
  0xd8   : > { %v1429_v30 = vsel %vm1428_vm3, %v1400_v13, %v810_v46  ;;  %v1343_v7 = vsel %vm1341_vm0, %v188_v41, %v3373_v54 }
  0xd9   : > { %v1146_v12 = vpop.permute.xlu1 %1145  ;;  %v924_v16 = vpop.permute.xlu0 %923  ;;  %v1458_v42 = vsel %vm1457_vm4, %v1429_v30, %v922_v49 }
  0xda   : > { %v1487_v43 = vsel %vm1486_vm5, %v1458_v42, %v1034_v2  ;;  %v1372_v2 = vsel %vm1370_vm1, %v1343_v7, %v588_v47  ;;  %v3536_v47 = vld [vmem:[%s3211_s30 + $0x72] sm:$0xff] }
  0xdb   : > { %607 = vrot.lane.b32.xlu1 %v254_v5, %s3120_s6  ;;  %941 = vrot.lane.b32.xlu0 %v3477_v45, %s3122_s8  ;;  %v1516_v46 = vsel %vm1515_vm6, %v1487_v43, %v1146_v12  ;;  %v1604_v5 = vunpack.c.0.s8 %v1603_v37  ;;  %v1401_v12 = vsel %vm1399_vm2, %v1372_v2, %v700_v52  ;;  %v2814_v52 = vld [vmem:[%s3211_s30 + $0x68] sm:$0x3f] }
  0xdc   : > { %v1430_v37 = vsel %vm1428_vm3, %v1401_v12, %v812_v56 }
  0xdd   : > { %v1036_v51 = vpop.permute.xlu1 %1035  ;;  %v814_v23 = vpop.permute.xlu0 %813  ;;  %v3528_v11 = vsub.s32 %v1604_v5, %v1606_v8  ;;  %v1459_v42 = vsel %vm1457_vm4, %v1430_v37, %v924_v16  ;;  %v2842_v5 = vld [vmem:[%s3211_s30 + $0x69] sm:$0x3f]  ;;  %v2816_v37 = vld [vmem:[%s3211_s30 + $0x78] sm:$0x3f] }
  0xde   : > { %v1488_v54 = vsel %vm1486_vm5, %v1459_v42, %v1036_v51  ;;  %v2788_v8 = vld [vmem:[%s3211_s30 + $0x6a] sm:$0x3f] }
  0xdf   : > { %1053 = vrot.lane.b32.xlu1 %v3507_v26, %s3123_s9  ;;  %827 = vrot.lane.b32.xlu0 %v2758_v22, %s3121_s7  ;;  %v2760_v22 = vld [vmem:[%s3211_s30 + $0x69] sm:$0x3f] }
  0xe1   : > { %v926_v62 = vpop.permute.xlu1 %925  ;;  %v1258_v3 = vpop.permute.xlu0 %1257 }
  0xe2   : > { %v1545_v49 = vsel %vm1544_vm7, %v1516_v46, %v1258_v3  ;;  %v1344_v46 = vsel %vm1341_vm0, %v3297_v28, %v3364_v50 }
  0xe3   : > { %939 = vrot.lane.b32.xlu1 %v2786_v48, %s3122_s8  ;;  %719 = vrot.lane.b32.xlu0 %v2732_v55, %s3119_s5  ;;  %v1601_v13 = vcombine.high %v1545_v49, %v1545_v49  ;;  %v1608_v16 = vrot.slane %v1545_v49, %v3528_v11  ;;  %v1373_v51 = vsel %vm1370_vm1, %v1344_v46, %v3486_v59 }
  0xe4   : > { %v1402_v49 = vsel %vm1399_vm2, %v1373_v51, %v3491_v0 }
  0xe5   : > { %v1038_v30 = vpop.permute.xlu1 %1037  ;;  %v1148_v33 = vpop.permute.xlu0 %1147  ;;  %v1615_v41 = vrot.slane %v1601_v13, %v3528_v11  ;;  %v1431_v50 = vsel %vm1428_vm3, %v1402_v49, %v814_v23 }
  0xe6   : > { %v1517_v56 = vsel %vm1515_vm6, %v1488_v54, %v1148_v33  ;;  %v1460_v12 = vsel %vm1457_vm4, %v1431_v50, %v926_v62 }
  0xe7   : > { %831 = vrot.lane.b32.xlu1 %v2760_v22, %s3121_s7  ;;  %1165 = vrot.lane.b32.xlu0 %v3261_v15, %s3124_s10  ;;  %v1617_v7 = vcombine.high %v1615_v41, %v1615_v41  ;;  %v1616_v22 = vcombine.high %v1608_v16, %v1608_v16  ;;  %v1489_v59 = vsel %vm1486_vm5, %v1460_v12, %v1038_v30  ;;  %v2870_v30 = vld [vmem:[%s3211_s30 + $0x6a] sm:$0x3f] }
  0xe9   : > { %v1150_v43 = vpop.permute.xlu1 %1149  ;;  %v1260_v48 = vpop.permute.xlu0 %1259  ;;  %v2071_v0 = vcombine.low %v1615_v41, %v1617_v7 }
  0xea   : > { %v1546_v55 = vsel %vm1544_vm7, %v1517_v56, %v1260_v48  ;;  %v1518_v42 = vsel %vm1515_vm6, %v1489_v59, %v1150_v43  ;;  %v2070_v56 = vcombine.low %v1608_v16, %v1616_v22  ;;  %v2872_v59 = vld [vmem:[%s3211_s30 + $0x7a] sm:$0x3f] }
  0xeb   : > { %v1625_v3 = vrot.slane %v1546_v55, %v3528_v11  ;;  %1277 = vrot.lane.b32.xlu1 %v3536_v47, %s3125_s11  ;;  %1051 = vrot.lane.b32.xlu0 %v2814_v52, %s3123_s9  ;;  %v1618_v13 = vcombine.high %v1546_v55, %v1546_v55  ;;  %v2085_v46 = vrot.slane %v2071_v0, %v3528_v11 }
  0xec   : > { %v2078_v51 = vrot.slane %v2070_v56, %v3528_v11  ;;  %v2734_v56 = vld [vmem:[%s3211_s30 + $0x78] sm:$0x3f] }
  0xed   : > { %v3556_v2 = vpop.permute.xlu1 %593  ;;  %v592_v28 = vpop.permute.xlu0 %591  ;;  %v1633_v33 = vcombine.high %v1625_v3, %v1625_v3  ;;  %v1632_v62 = vrot.slane %v1618_v13, %v3528_v11 }
  0xee   : > { %v2086_v50 = vcombine.low %v2078_v51, %v2085_v46 }
  0xef   : > { %1163 = vrot.lane.b32.xlu1 %v2842_v5, %s3124_s10  ;;  %943 = vrot.lane.b32.xlu0 %v2788_v8, %s3122_s8  ;;  %v2087_v48 = vcombine.low %v1625_v3, %v1633_v33  ;;  %v2844_v8 = vld [vmem:[%s3211_s30 + $0x79] sm:$0x3f] }
  0xf0   : > { %v190_v33 = vld [vmem:[%s3211_s30 + $0x18] sm:$0x3f] }
  0xf1   : > { %v704_v54 = vpop.permute.xlu1 %703  ;;  %v1262_v52 = vpop.permute.xlu0 %1261  ;;  %v2095_v3 = vrot.slane %v2087_v48, %v3528_v11 }
  0xf2   : > { %v1547_v23 = vsel %vm1544_vm7, %v1518_v42, %v1262_v52  ;;  %v1345_v42 = vsel %vm1341_vm0, %v190_v33, %v3371_v53  ;;  %v1346_v53 = vsel %vm1341_vm0, %v3315_v34, %v3382_v58 }
  0xf3   : > { %v3568_v55 = vrot.slane %v1547_v23, %v3528_v11  ;;  %1055 = vrot.lane.b32.xlu1 %v2816_v37, %s3123_s9  ;;  %609 = vrot.lane.b32.xlu0 %v3477_v45, %s3120_s6  ;;  %v256_v45 = vld [vmem:[%s3211_s30 + $0x6a] sm:$0x3f]  ;;  %v1374_v52 = vsel %vm1370_vm1, %v1345_v42, %v592_v28  ;;  %v1634_v48 = vcombine.high %v1547_v23, %v1547_v23  ;;  %v2790_v42 = vld [vmem:[%s3211_s30 + $0x7a] sm:$0x3f] }
  0xf5   : > { %v2088_v41 = vcombine.low %v1632_v62, %v3568_v55  ;;  %v816_v43 = vpop.permute.xlu1 %815  ;;  %v706_v16 = vpop.permute.xlu0 %705  ;;  %v1403_v62 = vsel %vm1399_vm2, %v1374_v52, %v704_v54  ;;  %v2762_v54 = vld [vmem:[%s3211_s30 + $0x79] sm:$0x3f]  ;;  %v1648_v23 = vrot.slane %v1634_v48, %v3528_v11 }
  0xf6   : > { %v1432_v46 = vsel %vm1428_vm3, %v1403_v62, %v816_v43 }
  0xf7   : > { %v2102_v5 = vrot.slane %v2088_v41, %v3528_v11  ;;  %721 = vrot.lane.b32.xlu1 %v3507_v26, %s3119_s5  ;;  %1275 = vrot.lane.b32.xlu0 %v2870_v30, %s3125_s11 }
  0xf9   : > { %v928_v49 = vpop.permute.xlu1 %927  ;;  %v818_v7 = vpop.permute.xlu0 %817  ;;  %v2103_v22 = vcombine.low %v2095_v3, %v2102_v5  ;;  %v3621_v5 = vld [vmem:[%s3211_s30 + $0x80] sm:$0xff] }
  0xfa   : > { %v1461_v51 = vsel %vm1457_vm4, %v1432_v46, %v928_v49 }
  0xfb   : > { %611 = vrot.lane.b32.xlu1 %v256_v45, %s3120_s6  ;;  %1167 = vrot.lane.b32.xlu0 %v2844_v8, %s3124_s10  ;;  %v2923_v13 = vpack.c.bf16 %v2103_v22, %v2086_v50 }
  0xfd   : > { %v1040_v37 = vpop.permute.xlu1 %1039  ;;  %v930_v0 = vpop.permute.xlu0 %929  ;;  %2925 = vmatpush1.bf16.xpose.msk.msra.mxu0 %vm3586_vm9, %v2923_v13  ;;  %v1650_v13 = vcombine.high %v1648_v23, %v1648_v23 }
  0xfe   : > { %2926 = vmatprep.subr.bf16.mxu0 %v3126_v44  ;;  %v1490_v28 = vsel %vm1486_vm5, %v1461_v51, %v1040_v37  ;;  %v2818_v51 = vld [vmem:[%s3211_s30 + $0x88] sm:$0x3f] }
  0xff   : > { %1279 = vrot.lane.b32.xlu1 %v2872_v59, %s3125_s11  ;;  %833 = vrot.lane.b32.xlu0 %v3261_v15, %s3121_s7  ;;  %v1375_v15 = vsel %vm1370_vm1, %v1346_v53, %v3556_v2 }
 0x100   : > { %v1404_v43 = vsel %vm1399_vm2, %v1375_v15, %v706_v16  ;;  %v1649_v16 = vcombine.high %v3568_v55, %v3568_v55  ;;  %v3642_v55 = vld [vmem:[%s3211_s30 + $0x82] sm:$0xff] }
 0x101   : > { %v1152_v30 = vpop.permute.xlu1 %1151  ;;  %v1042_v41 = vpop.permute.xlu0 %1041  ;;  %v1433_v45 = vsel %vm1428_vm3, %v1404_v43, %v818_v7 }
 0x102   : > { %v1519_v3 = vsel %vm1515_vm6, %v1490_v28, %v1152_v30  ;;  %v1462_v2 = vsel %vm1457_vm4, %v1433_v45, %v930_v0  ;;  %v2104_v48 = vcombine.low %v1649_v16, %v1648_v23 }
 0x103   : > { %945 = vrot.lane.b32.xlu1 %v3536_v47, %s3122_s8  ;;  %723 = vrot.lane.b32.xlu0 %v2734_v56, %s3119_s5  ;;  %v1491_v22 = vsel %vm1486_vm5, %v1462_v2, %v1042_v41 }
 0x105   : > { %v1264_v34 = vpop.permute.xlu1 %1263  ;;  %v1154_v58 = vpop.permute.xlu0 %1153 }
 0x106   : > { %v1548_v8 = vsel %vm1544_vm7, %v1519_v3, %v1264_v34  ;;  %v1520_v59 = vsel %vm1515_vm6, %v1491_v22, %v1154_v58  ;;  %v2846_v58 = vld [vmem:[%s3211_s30 + $0x89] sm:$0x3f] }
 0x107   : > { %v1651_v49 = vcombine.high %v1548_v8, %v1548_v8  ;;  %v1658_v50 = vrot.slane %v1548_v8, %v3528_v11  ;;  %1057 = vrot.lane.b32.xlu1 %v3621_v5, %s3123_s9  ;;  %835 = vrot.lane.b32.xlu0 %v2762_v54, %s3121_s7  ;;  %v2112_v54 = vrot.slane %v2104_v48, %v3528_v11 }
 0x109   : > { %v1665_v7 = vrot.slane %v1651_v49, %v3528_v11  ;;  %v1666_v33 = vcombine.high %v1658_v50, %v1658_v50  ;;  %v596_v37 = vpop.permute.xlu1 %595  ;;  %v1266_v0 = vpop.permute.xlu0 %1265  ;;  %v2105_v56 = vcombine.low %v1650_v13, %v1658_v50  ;;  %v2874_v50 = vld [vmem:[%s3211_s30 + $0x8a] sm:$0x3f] }
 0x10a   : > { %v1549_v52 = vsel %vm1544_vm7, %v1520_v59, %v1266_v0 }
 0x10b   : > { %v1674_v62 = vrot.slane %v1549_v52, %v3528_v11  ;;  %1169 = vrot.lane.b32.xlu1 %v3268_v17, %s3124_s10  ;;  %947 = vrot.lane.b32.xlu0 %v2790_v42, %s3122_s8  ;;  %v2121_v30 = vcombine.low %v1666_v33, %v1665_v7  ;;  %v2119_v15 = vrot.slane %v2105_v56, %v3528_v11  ;;  %v192_v7 = vld [vmem:[%s3211_s30 + $0x28] sm:$0x3f] }
 0x10c   : > { %v1667_v33 = vcombine.high %v1549_v52, %v1549_v52  ;;  %v2736_v42 = vld [vmem:[%s3211_s30 + $0x88] sm:$0x3f]  ;;  %v1347_v56 = vsel %vm1341_vm0, %v192_v7, %v3380_v57 }
 0x10d   : > { %v1682_v41 = vcombine.high %v1674_v62, %v1674_v62  ;;  %v708_v46 = vpop.permute.xlu1 %707  ;;  %v598_v53 = vpop.permute.xlu0 %597  ;;  %v2129_v43 = vrot.slane %v2121_v30, %v3528_v11  ;;  %v2120_v45 = vcombine.low %v2112_v54, %v2119_v15 }
 0x10e   : > { %v1681_v52 = vrot.slane %v1667_v33, %v3528_v11 }
 0x10f   : > { %v2122_v28 = vcombine.low %v1674_v62, %v1682_v41  ;;  %1281 = vrot.lane.b32.xlu1 %v3642_v55, %s3125_s11  ;;  %1059 = vrot.lane.b32.xlu0 %v2818_v51, %s3123_s9  ;;  %v1348_v62 = vsel %vm1341_vm0, %v3333_v38, %v3389_v61  ;;  %v2764_v38 = vld [vmem:[%s3211_s30 + $0x89] sm:$0x3f]  ;;  %v3686_v61 = vld [vmem:[%s3211_s30 + $0x90] sm:$0xff] }
 0x110   : > { %v1377_v48 = vsel %vm1370_vm1, %v1348_v62, %v598_v53  ;;  %v2820_v62 = vld [vmem:[%s3211_s30 + $0x98] sm:$0x3f] }
 0x111   : > { %v2136_v23 = vrot.slane %v2122_v28, %v3528_v11  ;;  %v820_v3 = vpop.permute.xlu1 %819  ;;  %v710_v34 = vpop.permute.xlu0 %709 }
 0x112   : > { %v1406_v41 = vsel %vm1399_vm2, %v1377_v48, %v710_v34 }
 0x113   : > { %v2137_v8 = vcombine.low %v2129_v43, %v2136_v23  ;;  %613 = vrot.lane.b32.xlu1 %v3536_v47, %s3120_s6  ;;  %1171 = vrot.lane.b32.xlu0 %v2846_v58, %s3124_s10  ;;  %v258_v47 = vld [vmem:[%s3211_s30 + $0x7a] sm:$0x3f] }
 0x115   : > { %v932_v2 = vpop.permute.xlu1 %931  ;;  %v822_v49 = vpop.permute.xlu0 %821  ;;  %v2927_v16 = vpack.c.bf16 %v2137_v8, %v2120_v45  ;;  %v2792_v45 = vld [vmem:[%s3211_s30 + $0x8a] sm:$0x3f] }
 0x117   : > { %725 = vrot.lane.b32.xlu1 %v3621_v5, %s3119_s5  ;;  %2929 = vmatpush1.bf16.xpose.msk.msra.mxu0 %vm3586_vm9, %v2927_v16 }
 0x118   : > { %1283 = vrot.lane.b32.xlu0 %v2874_v50, %s3125_s11  ;;  %2930 = vmatprep.subr.bf16.mxu0 %v3126_v44 }
 0x119   : > { %v1044_v22 = vpop.permute.xlu1 %1043  ;;  %v934_v13 = vpop.permute.xlu0 %933 }
 0x11b   : > { %837 = vrot.lane.b32.xlu1 %v3268_v17, %s3121_s7  ;;  %v1376_v17 = vsel %vm1370_vm1, %v1347_v56, %v596_v37  ;;  %v1435_v37 = vsel %vm1428_vm3, %v1406_v41, %v822_v49 }
 0x11c   : > { %615 = vrot.lane.b32.xlu0 %v258_v47, %s3120_s6  ;;  %v1405_v30 = vsel %vm1399_vm2, %v1376_v17, %v708_v46  ;;  %v1464_v53 = vsel %vm1457_vm4, %v1435_v37, %v934_v13  ;;  %v1683_v46 = vcombine.high %v1681_v52, %v1681_v52  ;;  %v3708_v47 = vld [vmem:[%s3211_s30 + $0x92] sm:$0xff] }
 0x11d   : > { %v1156_v59 = vpop.permute.xlu1 %1155  ;;  %v1046_v0 = vpop.permute.xlu0 %1045  ;;  %v1434_v15 = vsel %vm1428_vm3, %v1405_v30, %v820_v3  ;;  %v2848_v37 = vld [vmem:[%s3211_s30 + $0x99] sm:$0x3f] }
 0x11e   : > { %v1463_v28 = vsel %vm1457_vm4, %v1434_v15, %v932_v2  ;;  %v1493_v43 = vsel %vm1486_vm5, %v1464_v53, %v1046_v0  ;;  %v2138_v13 = vcombine.low %v1681_v52, %v1683_v46 }
 0x11f   : > { %949 = vrot.lane.b32.xlu1 %v3642_v55, %s3122_s8  ;;  %v1492_v54 = vsel %vm1486_vm5, %v1463_v28, %v1044_v22 }
 0x120   : > { %727 = vrot.lane.b32.xlu0 %v2736_v42, %s3119_s5  ;;  %v1521_v23 = vsel %vm1515_vm6, %v1492_v54, %v1156_v59  ;;  %v2146_v52 = vrot.slane %v2138_v13, %v3528_v11 }
 0x121   : > { %v3682_v57 = vpop.permute.xlu1 %601  ;;  %v1158_v51 = vpop.permute.xlu0 %1157 }
 0x122   : > { %v1522_v3 = vsel %vm1515_vm6, %v1493_v43, %v1158_v51  ;;  %v2876_v43 = vld [vmem:[%s3211_s30 + $0x9a] sm:$0x3f] }
 0x123   : > { %1061 = vrot.lane.b32.xlu1 %v3686_v61, %s3123_s9 }
 0x124   : > { %839 = vrot.lane.b32.xlu0 %v2764_v38, %s3121_s7 }
 0x125   : > { %v1270_v34 = vpop.permute.xlu1 %1269  ;;  %v1268_v58 = vpop.permute.xlu0 %1267 }
 0x126   : > { %v1551_v8 = vsel %vm1544_vm7, %v1522_v3, %v1270_v34  ;;  %v1550_v2 = vsel %vm1544_vm7, %v1521_v23, %v1268_v58  ;;  %v2765_v3 = vld [vmem:[%s3211_s30 + $0x91] sm:$0xff]  ;;  %v260_v58 = vld [vmem:[%s3211_s30 + $0x8a] sm:$0x3f] }
 0x127   : > { %v1700_v49 = vcombine.high %v1551_v8, %v1551_v8  ;;  %v1707_v50 = vrot.slane %v1551_v8, %v3528_v11  ;;  %v1684_v16 = vcombine.high %v1550_v2, %v1550_v2  ;;  %v1691_v22 = vrot.slane %v1550_v2, %v3528_v11  ;;  %1173 = vrot.lane.b32.xlu1 %v3275_v19, %s3124_s10 }
 0x128   : > { %951 = vrot.lane.b32.xlu0 %v2792_v45, %s3122_s8  ;;  %v194_v45 = vld [vmem:[%s3211_s30 + $0x38] sm:$0x3f]  ;;  %v1379_v8 = vsel %vm1370_vm1, %v3397_v1, %v3682_v57 }
 0x129   : > { %v3711_v7 = vrot.slane %v1700_v49, %v3528_v11  ;;  %v1715_v33 = vcombine.high %v1707_v50, %v1707_v50  ;;  %v1698_v59 = vrot.slane %v1684_v16, %v3528_v11  ;;  %v1699_v0 = vcombine.high %v1691_v22, %v1691_v22  ;;  %v600_v42 = vpop.permute.xlu1 %599  ;;  %v714_v56 = vpop.permute.xlu0 %713  ;;  %v2738_v16 = vld [vmem:[%s3211_s30 + $0x98] sm:$0x3f] }
 0x12a   : > { %v1408_v2 = vsel %vm1399_vm2, %v1379_v8, %v714_v56  ;;  %v1349_v13 = vsel %vm1341_vm0, %v194_v45, %v3387_v60  ;;  %v2766_v57 = vld [vmem:[%s3211_s30 + $0x99] sm:$0x3f] }
 0x12b   : > { %v2156_v17 = vcombine.low %v1715_v33, %v3711_v7  ;;  %v2139_v48 = vcombine.low %v1691_v22, %v1699_v0  ;;  %v2155_v19 = vcombine.low %v1698_v59, %v1707_v50  ;;  %1285 = vrot.lane.b32.xlu1 %v3708_v47, %s3125_s11  ;;  %v1378_v59 = vsel %vm1370_vm1, %v1349_v13, %v600_v42 }
 0x12c   : > { %1063 = vrot.lane.b32.xlu0 %v2820_v62, %s3123_s9 }
 0x12d   : > { %v2170_v30 = vrot.slane %v2156_v17, %v3528_v11  ;;  %v2153_v41 = vrot.slane %v2139_v48, %v3528_v11  ;;  %v2163_v51 = vrot.slane %v2155_v19, %v3528_v11  ;;  %v712_v38 = vpop.permute.xlu1 %711  ;;  %v826_v15 = vpop.permute.xlu0 %825 }
 0x12e   : > { %v1437_v22 = vsel %vm1428_vm3, %v1408_v2, %v826_v15  ;;  %v1407_v0 = vsel %vm1399_vm2, %v1378_v59, %v712_v38  ;;  %v2794_v2 = vld [vmem:[%s3211_s30 + $0x9a] sm:$0x3f] }
 0x12f   : > { %v2154_v28 = vcombine.low %v2146_v52, %v2153_v41  ;;  %617 = vrot.lane.b32.xlu1 %v3642_v55, %s3120_s6  ;;  %v2171_v53 = vcombine.low %v2163_v51, %v2170_v30 }
 0x130   : > { %1175 = vrot.lane.b32.xlu0 %v2848_v37, %s3124_s10 }
 0x131   : > { %v824_v46 = vpop.permute.xlu1 %823  ;;  %v938_v54 = vpop.permute.xlu0 %937  ;;  %v2931_v23 = vpack.c.bf16 %v2171_v53, %v2154_v28  ;;  %v3769_v28 = vld [vmem:[%s3211_s30 + $0xa0] sm:$0xff] }
 0x132   : > { %v1466_v33 = vsel %vm1457_vm4, %v1437_v22, %v938_v54  ;;  %v1436_v60 = vsel %vm1428_vm3, %v1407_v0, %v824_v46 }
 0x133   : > { %729 = vrot.lane.b32.xlu1 %v3686_v61, %s3119_s5  ;;  %2933 = vmatpush1.bf16.xpose.msk.msra.mxu0 %vm3586_vm9, %v2931_v23  ;;  %v2849_v23 = vld [vmem:[%s3211_s30 + $0xa1] sm:$0xff] }
 0x134   : > { %1287 = vrot.lane.b32.xlu0 %v2876_v43, %s3125_s11  ;;  %2934 = vmatprep.subr.bf16.mxu0 %v3126_v44 }
 0x135   : > { %v936_v55 = vpop.permute.xlu1 %935  ;;  %v1050_v34 = vpop.permute.xlu0 %1049 }
 0x136   : > { %v1495_v1 = vsel %vm1486_vm5, %v1466_v33, %v1050_v34  ;;  %v1465_v19 = vsel %vm1457_vm4, %v1436_v60, %v936_v55 }
 0x137   : > { %841 = vrot.lane.b32.xlu1 %v2765_v3, %s3121_s7 }
 0x138   : > { %619 = vrot.lane.b32.xlu0 %v260_v58, %s3120_s6 }
 0x139   : > { %v1048_v49 = vpop.permute.xlu1 %1047  ;;  %v1162_v50 = vpop.permute.xlu0 %1161 }
 0x13a   : > { %v1524_v56 = vsel %vm1515_vm6, %v1495_v1, %v1162_v50  ;;  %v1494_v30 = vsel %vm1486_vm5, %v1465_v19, %v1048_v49 }
 0x13b   : > { %953 = vrot.lane.b32.xlu1 %v3708_v47, %s3122_s8 }
 0x13c   : > { %731 = vrot.lane.b32.xlu0 %v2738_v16, %s3119_s5 }
 0x13d   : > { %v1160_v62 = vpop.permute.xlu1 %1159  ;;  %v1274_v17 = vpop.permute.xlu0 %1273 }
 0x13e   : > { %v1553_v48 = vsel %vm1544_vm7, %v1524_v56, %v1274_v17  ;;  %v1523_v41 = vsel %vm1515_vm6, %v1494_v30, %v1160_v62  ;;  %v2795_v56 = vld [vmem:[%s3211_s30 + $0xa2] sm:$0xff]  ;;  %v2851_v30 = vld [vmem:[%s3211_s30 + $0xb1] sm:$0xff] }
 0x13f   : > { %v1733_v52 = vcombine.high %v1553_v48, %v1553_v48  ;;  %v1740_v42 = vrot.slane %v1553_v48, %v3528_v11  ;;  %843 = vrot.lane.b32.xlu1 %v2766_v57, %s3121_s7 }
 0x140   : > { %621 = vrot.lane.b32.xlu0 %v3708_v47, %s3120_s6  ;;  %v1716_v47 = vcombine.high %v3711_v7, %v3711_v7  ;;  %v2822_v7 = vld [vmem:[%s3211_s30 + $0xa8] sm:$0x3f] }
 0x141   : > { %v1747_v51 = vrot.slane %v1733_v52, %v3528_v11  ;;  %v1748_v38 = vcombine.high %v1740_v42, %v1740_v42  ;;  %v1272_v15 = vpop.permute.xlu1 %1271  ;;  %v3766_v37 = vpop.permute.xlu0 %605  ;;  %v2850_v52 = vld [vmem:[%s3211_s30 + $0xa9] sm:$0x3f] }
 0x142   : > { %v1552_v53 = vsel %vm1544_vm7, %v1523_v41, %v1272_v15 }
 0x143   : > { %v1749_v46 = vcombine.high %v1747_v51, %v1747_v51  ;;  %v1717_v54 = vcombine.high %v1552_v53, %v1552_v53  ;;  %v1724_v43 = vrot.slane %v1552_v53, %v3528_v11  ;;  %733 = vrot.lane.b32.xlu1 %v3769_v28, %s3119_s5  ;;  %v2189_v3 = vcombine.low %v1740_v42, %v1748_v38  ;;  %v3801_v42 = vld [vmem:[%s3211_s30 + $0xb0] sm:$0xff]  ;;  %v2878_v38 = vld [vmem:[%s3211_s30 + $0xaa] sm:$0x3f] }
 0x144   : > { %1065 = vrot.lane.b32.xlu0 %v3769_v28, %s3123_s9 }
 0x145   : > { %v2190_v55 = vcombine.low %v1747_v51, %v1749_v46  ;;  %v1731_v34 = vrot.slane %v1717_v54, %v3528_v11  ;;  %v1732_v58 = vcombine.high %v1724_v43, %v1724_v43  ;;  %v604_v45 = vpop.permute.xlu1 %603  ;;  %v718_v8 = vpop.permute.xlu0 %717  ;;  %v2172_v49 = vcombine.low %v1716_v47, %v1724_v43  ;;  %v262_v46 = vld [vmem:[%s3211_s30 + $0x9a] sm:$0x3f]  ;;  %v2740_v54 = vld [vmem:[%s3211_s30 + $0xa8] sm:$0x3f] }
 0x146   : > { %v2197_v22 = vrot.slane %v2189_v3, %v3528_v11  ;;  %v196_v3 = vld [vmem:[%s3211_s30 + $0x48] sm:$0x3f] }
 0x147   : > { %v2204_v50 = vrot.slane %v2190_v55, %v3528_v11  ;;  %v2173_v16 = vcombine.low %v1732_v58, %v1731_v34  ;;  %1177 = vrot.lane.b32.xlu1 %v2849_v23, %s3124_s10  ;;  %v2180_v13 = vrot.slane %v2172_v49, %v3528_v11  ;;  %v2768_v55 = vld [vmem:[%s3211_s30 + $0xa9] sm:$0x3f]  ;;  %v1381_v34 = vsel %vm1370_vm1, %v3406_v6, %v3766_v37 }
 0x148   : > { %955 = vrot.lane.b32.xlu0 %v2794_v2, %s3122_s8  ;;  %v1410_v49 = vsel %vm1399_vm2, %v1381_v34, %v718_v8  ;;  %v2796_v6 = vld [vmem:[%s3211_s30 + $0xaa] sm:$0x3f] }
 0x149   : > { %v2187_v33 = vrot.slane %v2173_v16, %v3528_v11  ;;  %v716_v59 = vpop.permute.xlu1 %715  ;;  %v830_v1 = vpop.permute.xlu0 %829  ;;  %v2205_v57 = vcombine.low %v2197_v22, %v2204_v50  ;;  %v1351_v50 = vsel %vm1341_vm0, %v196_v3, %v3394_v63 }
 0x14a   : > { %v1439_v16 = vsel %vm1428_vm3, %v1410_v49, %v830_v1  ;;  %v3867_v49 = vld [vmem:[%s3211_s30 + $0xc0] sm:$0xff] }
 0x14b   : > { %v2188_v0 = vcombine.low %v2180_v13, %v2187_v33  ;;  %1067 = vrot.lane.b32.xlu1 %v2822_v7, %s3123_s9  ;;  %v1380_v7 = vsel %vm1370_vm1, %v1351_v50, %v604_v45 }
 0x14c   : > { %845 = vrot.lane.b32.xlu0 %v2849_v23, %s3121_s7  ;;  %v3815_v23 = vld [vmem:[%s3211_s30 + $0xb2] sm:$0xff]  ;;  %v1409_v37 = vsel %vm1399_vm2, %v1380_v7, %v716_v59 }
 0x14d   : > { %v3792_v62 = vpop.permute.xlu1 %607  ;;  %v942_v17 = vpop.permute.xlu0 %941  ;;  %v2935_v60 = vpack.c.bf16 %v2205_v57, %v2188_v0  ;;  %v198_v0 = vld [vmem:[%s3211_s30 + $0x58] sm:$0x3f] }
 0x14e   : > { %v1468_v22 = vsel %vm1457_vm4, %v1439_v16, %v942_v17  ;;  %v2824_v59 = vld [vmem:[%s3211_s30 + $0xb8] sm:$0x3f] }
 0x14f   : > { %957 = vrot.lane.b32.xlu1 %v2795_v56, %s3122_s8  ;;  %2937 = vmatpush1.bf16.xpose.msk.msra.mxu0 %vm3586_vm9, %v2935_v60 }
 0x150   : > { %1289 = vrot.lane.b32.xlu0 %v2795_v56, %s3125_s11  ;;  %2938 = vmatprep.subr.bf16.mxu0 %v3126_v44 }
 0x151   : > { %v1054_v48 = vpop.permute.xlu1 %1053  ;;  %v828_v19 = vpop.permute.xlu0 %827 }
 0x152   : > { %v1497_v8 = vsel %vm1486_vm5, %v1468_v22, %v1054_v48  ;;  %v1438_v33 = vsel %vm1428_vm3, %v1409_v37, %v828_v19  ;;  %v2880_v22 = vld [vmem:[%s3211_s30 + $0xba] sm:$0x3f] }
 0x153   : > { %1069 = vrot.lane.b32.xlu1 %v3801_v42, %s3123_s9 }
 0x154   : > { %1179 = vrot.lane.b32.xlu0 %v2850_v52, %s3124_s10 }
 0x155   : > { %v940_v41 = vpop.permute.xlu1 %939  ;;  %v720_v51 = vpop.permute.xlu0 %719 }
 0x156   : > { %v1467_v45 = vsel %vm1457_vm4, %v1438_v33, %v940_v41  ;;  %v1353_v41 = vsel %vm1341_vm0, %v198_v0, %v3403_v4  ;;  %v2853_v33 = vld [vmem:[%s3211_s30 + $0xc1] sm:$0xff] }
 0x157   : > { %1181 = vrot.lane.b32.xlu1 %v2851_v30, %s3124_s10 }
 0x158   : > { %1291 = vrot.lane.b32.xlu0 %v2878_v38, %s3125_s11 }
 0x159   : > { %v832_v15 = vpop.permute.xlu1 %831  ;;  %v1166_v53 = vpop.permute.xlu0 %1165 }
 0x15a   : > { %v1526_v1 = vsel %vm1515_vm6, %v1497_v8, %v1166_v53 }
 0x15b   : > { %625 = vrot.lane.b32.xlu1 %v2795_v56, %s3120_s6 }
 0x15c   : > { %623 = vrot.lane.b32.xlu0 %v262_v46, %s3120_s6 }
 0x15d   : > { %v1278_v43 = vpop.permute.xlu1 %1277  ;;  %v1052_v47 = vpop.permute.xlu0 %1051 }
 0x15e   : > { %v1555_v57 = vsel %vm1544_vm7, %v1526_v1, %v1278_v43  ;;  %v1496_v56 = vsel %vm1486_vm5, %v1467_v45, %v1052_v47 }
 0x15f   : > { %735 = vrot.lane.b32.xlu1 %v2740_v54, %s3119_s5  ;;  %v1766_v19 = vcombine.high %v1555_v57, %v1555_v57  ;;  %v1773_v38 = vrot.slane %v1555_v57, %v3528_v11  ;;  %v2852_v54 = vld [vmem:[%s3211_s30 + $0xb9] sm:$0x3f] }
 0x160   : > { %1293 = vrot.lane.b32.xlu0 %v3815_v23, %s3125_s11 }
 0x161   : > { %v1164_v58 = vpop.permute.xlu1 %1163  ;;  %v944_v2 = vpop.permute.xlu0 %943 }
 0x162   : > { %v1525_v17 = vsel %vm1515_vm6, %v1496_v56, %v1164_v58  ;;  %v1780_v58 = vrot.slane %v1766_v19, %v3528_v11  ;;  %v264_v56 = vld [vmem:[%s3211_s30 + $0xaa] sm:$0x3f]  ;;  %v3885_v19 = vld [vmem:[%s3211_s30 + $0xc2] sm:$0xff] }
 0x163   : > { %847 = vrot.lane.b32.xlu1 %v2768_v55, %s3121_s7 }
 0x164   : > { %737 = vrot.lane.b32.xlu0 %v3801_v42, %s3119_s5  ;;  %v1782_v57 = vcombine.high %v1780_v58, %v1780_v58 }
 0x165   : > { %v1056_v13 = vpop.permute.xlu1 %1055  ;;  %v3837_v63 = vpop.permute.xlu0 %609 }
 0x167   : > { %959 = vrot.lane.b32.xlu1 %v2796_v6, %s3122_s8 }
 0x168   : > { %849 = vrot.lane.b32.xlu0 %v2851_v30, %s3121_s7  ;;  %v1382_v30 = vsel %vm1370_vm1, %v1353_v41, %v3792_v62  ;;  %v1781_v62 = vcombine.high %v1773_v38, %v1773_v38 }
 0x169   : > { %v722_v60 = vpop.permute.xlu1 %721  ;;  %v1276_v48 = vpop.permute.xlu0 %1275  ;;  %v1411_v43 = vsel %vm1399_vm2, %v1382_v30, %v720_v51 }
 0x16a   : > { %v1554_v52 = vsel %vm1544_vm7, %v1525_v17, %v1276_v48  ;;  %v1440_v34 = vsel %vm1428_vm3, %v1411_v43, %v832_v15  ;;  %v2223_v45 = vcombine.low %v1781_v62, %v1780_v58  ;;  %v1383_v43 = vsel %vm1370_vm1, %v3416_v14, %v3837_v63  ;;  %v2743_v58 = vld [vmem:[%s3211_s30 + $0xc0] sm:$0xff]  ;;  %v2798_v63 = vld [vmem:[%s3211_s30 + $0xba] sm:$0x3f] }
 0x16b   : > { %v1750_v53 = vcombine.high %v1554_v52, %v1554_v52  ;;  %v1757_v46 = vrot.slane %v1554_v52, %v3528_v11  ;;  %1071 = vrot.lane.b32.xlu1 %v2824_v59, %s3123_s9  ;;  %v1469_v50 = vsel %vm1457_vm4, %v1440_v34, %v944_v2 }
 0x16c   : > { %961 = vrot.lane.b32.xlu0 %v3815_v23, %s3122_s8  ;;  %v1498_v51 = vsel %vm1486_vm5, %v1469_v50, %v1056_v13  ;;  %v2231_v52 = vrot.slane %v2223_v45, %v3528_v11 }
 0x16d   : > { %v1764_v47 = vrot.slane %v1750_v53, %v3528_v11  ;;  %v1765_v4 = vcombine.high %v1757_v46, %v1757_v46  ;;  %v3862_v3 = vpop.permute.xlu1 %611  ;;  %v1168_v55 = vpop.permute.xlu0 %1167 }
 0x16e   : > { %v1527_v37 = vsel %vm1515_vm6, %v1498_v51, %v1168_v55 }
 0x16f   : > { %v2206_v16 = vcombine.low %v1757_v46, %v1765_v4  ;;  %v2207_v7 = vcombine.low %v1764_v47, %v1773_v38  ;;  %1183 = vrot.lane.b32.xlu1 %v2852_v54, %s3124_s10  ;;  %v2742_v38 = vld [vmem:[%s3211_s30 + $0xb8] sm:$0x3f]  ;;  %v1412_v4 = vsel %vm1399_vm2, %v1383_v43, %v722_v60  ;;  %v200_v60 = vld [vmem:[%s3211_s30 + $0x68] sm:$0x3f] }
 0x170   : > { %1073 = vrot.lane.b32.xlu0 %v3867_v49, %s3123_s9  ;;  %v2770_v47 = vld [vmem:[%s3211_s30 + $0xb9] sm:$0x3f] }
 0x171   : > { %v2214_v15 = vrot.slane %v2206_v16, %v3528_v11  ;;  %v2221_v6 = vrot.slane %v2207_v7, %v3528_v11  ;;  %v1280_v8 = vpop.permute.xlu1 %1279  ;;  %v834_v2 = vpop.permute.xlu0 %833 }
 0x172   : > { %v1556_v1 = vsel %vm1544_vm7, %v1527_v37, %v1280_v8  ;;  %v1441_v62 = vsel %vm1428_vm3, %v1412_v4, %v834_v2  ;;  %v1355_v2 = vsel %vm1341_vm0, %v200_v60, %v3413_v10 }
 0x173   : > { %v2222_v13 = vcombine.low %v2214_v15, %v2221_v6  ;;  %v1790_v0 = vrot.slane %v1556_v1, %v3528_v11  ;;  %1295 = vrot.lane.b32.xlu1 %v2880_v22, %s3125_s11  ;;  %v1783_v55 = vcombine.high %v1556_v1, %v1556_v1  ;;  %v2826_v1 = vld [vmem:[%s3211_s30 + $0xc8] sm:$0x3f]  ;;  %v1384_v45 = vsel %vm1370_vm1, %v1355_v2, %v3862_v3 }
 0x174   : > { %1185 = vrot.lane.b32.xlu0 %v2853_v33, %s3124_s10  ;;  %v2854_v3 = vld [vmem:[%s3211_s30 + $0xc9] sm:$0x3f]  ;;  %v1356_v2 = vsel %vm1341_vm0, %v3507_v26, %v3423_v20 }
 0x175   : > { %v2224_v59 = vcombine.low %v1782_v57, %v1790_v0  ;;  %v946_v17 = vpop.permute.xlu1 %945  ;;  %v724_v48 = vpop.permute.xlu0 %723  ;;  %v1797_v16 = vrot.slane %v1783_v55, %v3528_v11  ;;  %v1798_v7 = vcombine.high %v1790_v0, %v1790_v0 }
 0x176   : > { %v1470_v14 = vsel %vm1457_vm4, %v1441_v62, %v946_v17 }
 0x177   : > { %v2238_v41 = vrot.slane %v2224_v59, %v3528_v11  ;;  %627 = vrot.lane.b32.xlu1 %v264_v56, %s3120_s6  ;;  %v1413_v56 = vsel %vm1399_vm2, %v1384_v45, %v724_v48  ;;  %v2744_v45 = vld [vmem:[%s3211_s30 + $0xc8] sm:$0x3f] }
 0x178   : > { %1297 = vrot.lane.b32.xlu0 %v3885_v19, %s3125_s11 }
 0x179   : > { %v2239_v53 = vcombine.low %v2231_v52, %v2238_v41  ;;  %v1058_v46 = vpop.permute.xlu1 %1057  ;;  %v836_v30 = vpop.permute.xlu0 %835 }
 0x17a   : > { %v1442_v52 = vsel %vm1428_vm3, %v1413_v56, %v836_v30 }
 0x17b   : > { %739 = vrot.lane.b32.xlu1 %v2742_v38, %s3119_s5  ;;  %v2939_v54 = vpack.c.bf16 %v2239_v53, %v2222_v13  ;;  %v2240_v13 = vcombine.low %v1798_v7, %v1797_v16  ;;  %v2882_v16 = vld [vmem:[%s3211_s30 + $0xca] sm:$0x3f] }
 0x17c   : > { %629 = vrot.lane.b32.xlu0 %v3815_v23, %s3120_s6  ;;  %v1499_v23 = vsel %vm1486_vm5, %v1470_v14, %v1058_v46  ;;  %v2827_v46 = vld [vmem:[%s3211_s30 + $0xd0] sm:$0xff] }
 0x17d   : > { %v1170_v34 = vpop.permute.xlu1 %1169  ;;  %2941 = vmatpush1.bf16.xpose.msk.msra.mxu0 %vm3586_vm9, %v2939_v54  ;;  %v948_v50 = vpop.permute.xlu0 %947 }
 0x17e   : > { %2942 = vmatprep.subr.bf16.mxu0 %v3126_v44  ;;  %v1528_v51 = vsel %vm1515_vm6, %v1499_v23, %v1170_v34  ;;  %v1471_v10 = vsel %vm1457_vm4, %v1442_v52, %v948_v50 }
 0x17f   : > { %851 = vrot.lane.b32.xlu1 %v2770_v47, %s3121_s7 }
 0x180   : > { %741 = vrot.lane.b32.xlu0 %v2743_v58, %s3119_s5  ;;  %v2855_v58 = vld [vmem:[%s3211_s30 + $0xd1] sm:$0xff] }
 0x181   : > { %v1282_v22 = vpop.permute.xlu1 %1281  ;;  %v1060_v6 = vpop.permute.xlu0 %1059 }
 0x182   : > { %v1557_v15 = vsel %vm1544_vm7, %v1528_v51, %v1282_v22  ;;  %v1500_v48 = vsel %vm1486_vm5, %v1471_v10, %v1060_v6 }
 0x183   : > { %v1799_v37 = vcombine.high %v1557_v15, %v1557_v15  ;;  %v1806_v8 = vrot.slane %v1557_v15, %v3528_v11  ;;  %963 = vrot.lane.b32.xlu1 %v2798_v63, %s3122_s8  ;;  %v3948_v63 = vld [vmem:[%s3211_s30 + $0xd2] sm:$0xff] }
 0x184   : > { %853 = vrot.lane.b32.xlu0 %v2853_v33, %s3121_s7  ;;  %v2248_v33 = vrot.slane %v2240_v13, %v3528_v11 }
 0x185   : > { %v1814_v57 = vcombine.high %v1806_v8, %v1806_v8  ;;  %v614_v0 = vpop.permute.xlu1 %613  ;;  %v1813_v59 = vrot.slane %v1799_v37, %v3528_v11  ;;  %v1172_v17 = vpop.permute.xlu0 %1171 }
 0x186   : > { %v1529_v30 = vsel %vm1515_vm6, %v1500_v48, %v1172_v17  ;;  %v202_v17 = vld [vmem:[%s3211_s30 + $0x78] sm:$0x3f] }
 0x187   : > { %v2241_v41 = vcombine.low %v1806_v8, %v1814_v57  ;;  %1075 = vrot.lane.b32.xlu1 %v2826_v1, %s3123_s9  ;;  %v1815_v54 = vcombine.high %v1813_v59, %v1813_v59  ;;  %v1385_v1 = vsel %vm1370_vm1, %v1356_v2, %v614_v0  ;;  %v2772_v0 = vld [vmem:[%s3211_s30 + $0xc9] sm:$0x3f] }
 0x188   : > { %965 = vrot.lane.b32.xlu0 %v3885_v19, %s3122_s8  ;;  %v2885_v2 = vld [vmem:[%s3211_s30 + $0xe2] sm:$0xff] }
 0x189   : > { %v2255_v38 = vrot.slane %v2241_v41, %v3528_v11  ;;  %v726_v53 = vpop.permute.xlu1 %725  ;;  %v2257_v62 = vcombine.low %v1813_v59, %v1815_v54 }
 0x18a   : > { %v1284_v43 = vpop.permute.xlu0 %1283  ;;  %v1414_v13 = vsel %vm1399_vm2, %v1385_v1, %v726_v53  ;;  %v2800_v53 = vld [vmem:[%s3211_s30 + $0xca] sm:$0x3f] }
 0x18b   : > { %v2256_v47 = vcombine.low %v2248_v33, %v2255_v38  ;;  %v3937_v4 = vsel %vm1544_vm7, %v1529_v30, %v1284_v43  ;;  %1187 = vrot.lane.b32.xlu1 %v2854_v3, %s3124_s10  ;;  %v2265_v7 = vrot.slane %v2257_v62, %v3528_v11  ;;  %v1357_v33 = vsel %vm1341_vm0, %v202_v17, %v3421_v18  ;;  %v2829_v30 = vld [vmem:[%s3211_s30 + $0xe0] sm:$0xff] }
 0x18c   : > { %v1823_v55 = vrot.slane %v3937_v4, %v3528_v11  ;;  %1077 = vrot.lane.b32.xlu0 %v2827_v46, %s3123_s9  ;;  %v1816_v18 = vcombine.high %v3937_v4, %v3937_v4 }
 0x18d   : > { %v838_v34 = vpop.permute.xlu1 %837 }
 0x18e   : > { %v1831_v50 = vcombine.high %v1823_v55, %v1823_v55  ;;  %v616_v14 = vpop.permute.xlu0 %615  ;;  %v1443_v56 = vsel %vm1428_vm3, %v1414_v13, %v838_v34 }
 0x18f   : > { %633 = vrot.lane.b32.xlu1 %v3885_v19, %s3120_s6  ;;  %v266_v19 = vld [vmem:[%s3211_s30 + $0xba] sm:$0x3f] }
 0x190   : > { %v2258_v23 = vcombine.low %v1823_v55, %v1831_v50  ;;  %1189 = vrot.lane.b32.xlu0 %v2855_v58, %s3124_s10  ;;  %v2828_v50 = vld [vmem:[%s3211_s30 + $0xd8] sm:$0x3f] }
 0x191   : > { %v950_v60 = vpop.permute.xlu1 %949 }
 0x192   : > { %v2272_v51 = vrot.slane %v2258_v23, %v3528_v11  ;;  %v728_v22 = vpop.permute.xlu0 %727  ;;  %v1472_v20 = vsel %vm1457_vm4, %v1443_v56, %v950_v60  ;;  %v2857_v60 = vld [vmem:[%s3211_s30 + $0xe1] sm:$0xff] }
 0x193   : > { %1301 = vrot.lane.b32.xlu1 %v3948_v63, %s3125_s11 }
 0x194   : > { %v2273_v15 = vcombine.low %v2265_v7, %v2272_v51  ;;  %1299 = vrot.lane.b32.xlu0 %v2882_v16, %s3125_s11  ;;  %v1830_v7 = vrot.slane %v1816_v18, %v3528_v11 }
 0x195   : > { %v1062_v6 = vpop.permute.xlu1 %1061 }
 0x196   : > { %v840_v37 = vpop.permute.xlu0 %839  ;;  %v2943_v8 = vpack.c.bf16 %v2273_v15, %v2256_v47  ;;  %v1501_v26 = vsel %vm1486_vm5, %v1472_v20, %v1062_v6 }
 0x197   : > { %631 = vrot.lane.b32.xlu1 %v266_v19, %s3120_s6 }
 0x198   : > { %745 = vrot.lane.b32.xlu0 %v2827_v46, %s3119_s5  ;;  %2945 = vmatpush1.bf16.xpose.msk.msra.mxu0 %vm3586_vm9, %v2943_v8  ;;  %v1386_v46 = vsel %vm1370_vm1, %v1357_v33, %v616_v14 }
 0x199   : > { %v1174_v57 = vpop.permute.xlu1 %1173  ;;  %2946 = vmatprep.subr.bf16.mxu0 %v3126_v44  ;;  %v1415_v43 = vsel %vm1399_vm2, %v1386_v46, %v728_v22 }
 0x19a   : > { %v952_v59 = vpop.permute.xlu0 %951  ;;  %v1530_v52 = vsel %vm1515_vm6, %v1501_v26, %v1174_v57  ;;  %v1444_v55 = vsel %vm1428_vm3, %v1415_v43, %v840_v37  ;;  %v2856_v37 = vld [vmem:[%s3211_s30 + $0xd9] sm:$0x3f] }
 0x19b   : > { %743 = vrot.lane.b32.xlu1 %v2744_v45, %s3119_s5  ;;  %v1473_v34 = vsel %vm1457_vm4, %v1444_v55, %v952_v59  ;;  %v2884_v26 = vld [vmem:[%s3211_s30 + $0xda] sm:$0x3f] }
 0x19c   : > { %857 = vrot.lane.b32.xlu0 %v2855_v58, %s3121_s7  ;;  %v2746_v43 = vld [vmem:[%s3211_s30 + $0xd8] sm:$0x3f] }
 0x19d   : > { %v1286_v41 = vpop.permute.xlu1 %1285 }
 0x19e   : > { %v1559_v10 = vsel %vm1544_vm7, %v1530_v52, %v1286_v41  ;;  %v1064_v3 = vpop.permute.xlu0 %1063 }
 0x19f   : > { %855 = vrot.lane.b32.xlu1 %v2772_v0, %s3121_s7  ;;  %v1832_v38 = vcombine.high %v1559_v10, %v1559_v10  ;;  %v1839_v48 = vrot.slane %v1559_v10, %v3528_v11  ;;  %v1502_v14 = vsel %vm1486_vm5, %v1473_v34, %v1064_v3 }
 0x1a0   : > { %969 = vrot.lane.b32.xlu0 %v3948_v63, %s3122_s8 }
 0x1a1   : > { %v3985_v54 = vpop.permute.xlu1 %617  ;;  %v1846_v58 = vrot.slane %v1832_v38, %v3528_v11  ;;  %v1847_v62 = vcombine.high %v1839_v48, %v1839_v48  ;;  %v2274_v1 = vcombine.low %v1830_v7, %v1839_v48  ;;  %v268_v38 = vld [vmem:[%s3211_s30 + $0xca] sm:$0x3f] }
 0x1a2   : > { %v1176_v47 = vpop.permute.xlu0 %1175 }
 0x1a3   : > { %967 = vrot.lane.b32.xlu1 %v2800_v53, %s3122_s8  ;;  %v1531_v4 = vsel %vm1515_vm6, %v1502_v14, %v1176_v47  ;;  %v2275_v22 = vcombine.low %v1847_v62, %v1846_v58  ;;  %v1848_v15 = vcombine.high %v1846_v58, %v1846_v58  ;;  %v2282_v17 = vrot.slane %v2274_v1, %v3528_v11  ;;  %v2831_v58 = vld [vmem:[%s3211_s30 + $0xf0] sm:$0xff]  ;;  %v2774_v14 = vld [vmem:[%s3211_s30 + $0xd9] sm:$0x3f] }
 0x1a4   : > { %1081 = vrot.lane.b32.xlu0 %v2829_v30, %s3123_s9  ;;  %v2859_v1 = vld [vmem:[%s3211_s30 + $0xf1] sm:$0xff] }
 0x1a5   : > { %v730_v23 = vpop.permute.xlu1 %729  ;;  %v2289_v59 = vrot.slane %v2275_v22, %v3528_v11  ;;  %v2748_v22 = vld [vmem:[%s3211_s30 + $0xe8] sm:$0x3f] }
 0x1a6   : > { %v1288_v16 = vpop.permute.xlu0 %1287 }
 0x1a7   : > { %v1560_v51 = vsel %vm1544_vm7, %v1531_v4, %v1288_v16  ;;  %1079 = vrot.lane.b32.xlu1 %v2828_v50, %s3123_s9  ;;  %v2290_v3 = vcombine.low %v2282_v17, %v2289_v59 }
 0x1a8   : > { %v1849_v19 = vcombine.high %v1560_v51, %v1560_v51  ;;  %v1856_v6 = vrot.slane %v1560_v51, %v3528_v11  ;;  %1193 = vrot.lane.b32.xlu0 %v2857_v60, %s3124_s10 }
 0x1a9   : > { %v842_v8 = vpop.permute.xlu1 %841 }
 0x1aa   : > { %v1863_v45 = vrot.slane %v1849_v19, %v3528_v11  ;;  %v1864_v13 = vcombine.high %v1856_v6, %v1856_v6  ;;  %v2291_v57 = vcombine.low %v1848_v15, %v1856_v6  ;;  %v620_v56 = vpop.permute.xlu0 %619 }
 0x1ab   : > { %1191 = vrot.lane.b32.xlu1 %v2856_v37, %s3124_s10  ;;  %v2776_v37 = vld [vmem:[%s3211_s30 + $0xe9] sm:$0x3f] }
 0x1ac   : > { %v2292_v20 = vcombine.low %v1864_v13, %v1863_v45  ;;  %1305 = vrot.lane.b32.xlu0 %v2885_v2, %s3125_s11  ;;  %v2299_v52 = vrot.slane %v2291_v57, %v3528_v11 }
 0x1ad   : > { %v954_v0 = vpop.permute.xlu1 %953 }
 0x1ae   : > { %v2306_v41 = vrot.slane %v2292_v20, %v3528_v11  ;;  %v732_v10 = vpop.permute.xlu0 %731 }
 0x1af   : > { %1303 = vrot.lane.b32.xlu1 %v2884_v26, %s3125_s11 }
 0x1b0   : > { %v2307_v33 = vcombine.low %v2299_v52, %v2306_v41  ;;  %637 = vrot.lane.b32.xlu0 %v3948_v63, %s3120_s6  ;;  %v270_v63 = vld [vmem:[%s3211_s30 + $0xda] sm:$0x3f] }
 0x1b1   : > { %v844_v48 = vpop.permute.xlu1 %843 }
 0x1b2   : > { %v4019_v53 = vpop.permute.xlu0 %621  ;;  %v2947_v46 = vpack.c.bf16 %v2307_v33, %v2290_v3  ;;  %v1360_v3 = vsel %vm1341_vm0, %v3686_v61, %v3438_v25 }
 0x1b3   : > { %635 = vrot.lane.b32.xlu1 %v268_v38, %s3120_s6 }
 0x1b4   : > { %749 = vrot.lane.b32.xlu0 %v2829_v30, %s3119_s5  ;;  %2949 = vmatpush1.bf16.xpose.msk.msra.mxu0 %vm3586_vm9, %v2947_v46  ;;  %v1358_v30 = vsel %vm1341_vm0, %v3621_v5, %v3429_v21  ;;  %v2802_v21 = vld [vmem:[%s3211_s30 + $0xda] sm:$0x3f]  ;;  %v204_v5 = vld [vmem:[%s3211_s30 + $0x88] sm:$0x3f]  ;;  %v1389_v46 = vsel %vm1370_vm1, %v1360_v3, %v4019_v53 }
 0x1b5   : > { %v734_v47 = vpop.permute.xlu1 %733  ;;  %2950 = vmatprep.subr.bf16.mxu0 %v3126_v44  ;;  %v1387_v62 = vsel %vm1370_vm1, %v1358_v30, %v3985_v54  ;;  %v1359_v6 = vsel %vm1341_vm0, %v204_v5, %v3427_v9  ;;  %v2887_v9 = vld [vmem:[%s3211_s30 + $0xf2] sm:$0xff]  ;;  %v2886_v53 = vld [vmem:[%s3211_s30 + $0xea] sm:$0x3f] }
 0x1b6   : > { %v1066_v18 = vpop.permute.xlu0 %1065 }
 0x1b7   : > { %747 = vrot.lane.b32.xlu1 %v2746_v43, %s3119_s5 }
 0x1b8   : > { %861 = vrot.lane.b32.xlu0 %v2857_v60, %s3121_s7  ;;  %v1416_v60 = vsel %vm1399_vm2, %v1387_v62, %v730_v23 }
 0x1b9   : > { %v1178_v55 = vpop.permute.xlu1 %1177  ;;  %v1445_v16 = vsel %vm1428_vm3, %v1416_v60, %v842_v8  ;;  %v1388_v8 = vsel %vm1370_vm1, %v1359_v6, %v620_v56 }
 0x1ba   : > { %v956_v34 = vpop.permute.xlu0 %955  ;;  %v1474_v7 = vsel %vm1457_vm4, %v1445_v16, %v954_v0  ;;  %v1417_v45 = vsel %vm1399_vm2, %v1388_v8, %v732_v10  ;;  %v2830_v0 = vld [vmem:[%s3211_s30 + $0xe8] sm:$0x3f] }
 0x1bb   : > { %639 = vrot.lane.b32.xlu1 %v270_v63, %s3120_s6  ;;  %v1503_v51 = vsel %vm1486_vm5, %v1474_v7, %v1066_v18  ;;  %v1446_v59 = vsel %vm1428_vm3, %v1417_v45, %v844_v48  ;;  %v2858_v48 = vld [vmem:[%s3211_s30 + $0xe9] sm:$0x3f]  ;;  %v1418_v63 = vsel %vm1399_vm2, %v1389_v46, %v734_v47  ;;  %v2832_v47 = vld [vmem:[%s3211_s30 + $0xf8] sm:$0x3f]  ;;  %v3128_v45 = vmov 0.0   ;;  %s4264_s6 = scalar_lea.hbm %s4314_s3, %s2921_s28 }
 0x1bc   : > { %973 = vrot.lane.b32.xlu0 %v2885_v2, %s3122_s8  ;;  %v1532_v15 = vsel %vm1515_vm6, %v1503_v51, %v1178_v55  ;;  %v1475_v20 = vsel %vm1457_vm4, %v1446_v59, %v956_v34  ;;  %v2804_v18 = vld [vmem:[%s3211_s30 + $0xea] sm:$0x3f]  ;;  %2604 = vmatprep.mubr.f32.mxu0 %v3128_v45 }
 0x1bd   : > { %v1068_v50 = vpop.permute.xlu1 %1067 }
 0x1be   : > { %v846_v4 = vpop.permute.xlu0 %845  ;;  %v1504_v26 = vsel %vm1486_vm5, %v1475_v20, %v1068_v50 }
 0x1bf   : > { %1085 = vrot.lane.b32.xlu1 %v2831_v58, %s3123_s9  ;;  %v1447_v25 = vsel %vm1428_vm3, %v1418_v63, %v846_v4 }
 0x1c0   : > { %859 = vrot.lane.b32.xlu0 %v2774_v14, %s3121_s7 }
 0x1c1   : > { %v958_v54 = vpop.permute.xlu1 %957 }
 0x1c2   : > { %v1290_v23 = vpop.permute.xlu0 %1289  ;;  %v1476_v61 = vsel %vm1457_vm4, %v1447_v25, %v958_v54 }
 0x1c3   : > { %v1561_v19 = vsel %vm1544_vm7, %v1532_v15, %v1290_v23  ;;  %971 = vrot.lane.b32.xlu1 %v2802_v21, %s3122_s8  ;;  %v2860_v23 = vld [vmem:[%s3211_s30 + $0xf9] sm:$0x3f] }
 0x1c4   : > { %751 = vrot.lane.b32.xlu0 %v2748_v22, %s3119_s5  ;;  %v1865_v13 = vcombine.high %v1561_v19, %v1561_v19  ;;  %v1872_v33 = vrot.slane %v1561_v19, %v3528_v11  ;;  %v2888_v22 = vld [vmem:[%s3211_s30 + $0xfa] sm:$0x3f] }
 0x1c5   : > { %v1070_v2 = vpop.permute.xlu1 %1069 }
 0x1c6   : > { %v1180_v57 = vpop.permute.xlu0 %1179  ;;  %v1879_v17 = vrot.slane %v1865_v13, %v3528_v11  ;;  %v1880_v30 = vcombine.high %v1872_v33, %v1872_v33  ;;  %v1505_v50 = vsel %vm1486_vm5, %v1476_v61, %v1070_v2 }
 0x1c7   : > { %863 = vrot.lane.b32.xlu1 %v2776_v37, %s3121_s7  ;;  %v1533_v52 = vsel %vm1515_vm6, %v1504_v26, %v1180_v57  ;;  %s2617_s7 = scalar_lea.sflag [#allocation3], %s175_s26 }
 0x1c8   : > { %1197 = vrot.lane.b32.xlu0 %v2859_v1, %s3124_s10  ;;  %v1881_v55 = vcombine.high %v1879_v17, %v1879_v17  ;;  %v2308_v21 = vcombine.low %v1872_v33, %v1880_v30 }
 0x1c9   : > { %v1182_v56 = vpop.permute.xlu1 %1181 }
 0x1ca   : > { %v1292_v41 = vpop.permute.xlu0 %1291  ;;  %v2309_v60 = vcombine.low %v1879_v17, %v1881_v55  ;;  %v1534_v16 = vsel %vm1515_vm6, %v1505_v50, %v1182_v56  ;;  %v2316_v8 = vrot.slane %v2308_v21, %v3528_v11 }
 0x1cb   : > { %v1562_v10 = vsel %vm1544_vm7, %v1533_v52, %v1292_v41  ;;  %1309 = vrot.lane.b32.xlu1 %v2887_v9, %s3125_s11  ;;  %v206_v9 = vld [vmem:[%s3211_s30 + $0x98] sm:$0x3f] }
 0x1cc   : > { %v1889_v38 = vrot.slane %v1562_v10, %v3528_v11  ;;  %1083 = vrot.lane.b32.xlu0 %v2830_v0, %s3123_s9  ;;  %v1882_v58 = vcombine.high %v1562_v10, %v1562_v10  ;;  %v2323_v19 = vrot.slane %v2309_v60, %v3528_v11  ;;  %v1361_v17 = vsel %vm1341_vm0, %v206_v9, %v3436_v24 }
 0x1cd   : > { %v4078_v43 = vpop.permute.xlu1 %625  ;;  %v1362_v24 = vsel %vm1341_vm0, %v3769_v28, %v3445_v29 }
 0x1ce   : > { %v624_v34 = vpop.permute.xlu0 %623  ;;  %v1897_v62 = vcombine.high %v1889_v38, %v1889_v38  ;;  %v1896_v5 = vrot.slane %v1882_v58, %v3528_v11  ;;  %v2324_v57 = vcombine.low %v2316_v8, %v2323_v19  ;;  %v1391_v55 = vsel %vm1370_vm1, %v1362_v24, %v4078_v43 }
 0x1cf   : > { %1195 = vrot.lane.b32.xlu1 %v2858_v48, %s3124_s10  ;;  %v1390_v52 = vsel %vm1370_vm1, %v1361_v17, %v624_v34  ;;  %v2064_v48 = vld [vmem:[%s4313_s2] sm:$0xff] }
 0x1d0   : > { %975 = vrot.lane.b32.xlu0 %v2804_v18, %s3122_s8  ;;  %v2325_v51 = vcombine.low %v1889_v38, %v1897_v62  ;;  %v3129_v18 = vmov 0   ;;  %s3130_s8 = smov [#allocation2]  }
 0x1d1   : > { %v736_v14 = vpop.permute.xlu1 %735  ;;  %3037 = vset.pattern.permute.xlu0 %v3129_v18 }
 0x1d2   : > { %v1294_v4 = vpop.permute.xlu0 %1293  ;;  %v2333_v2 = vrot.slane %v2325_v51, %v3528_v11  ;;  %v1419_v41 = vsel %vm1399_vm2, %v1390_v52, %v736_v14 }
 0x1d3   : > { %v1563_v7 = vsel %vm1544_vm7, %v1534_v16, %v1294_v4  ;;  %1307 = vrot.lane.b32.xlu1 %v2886_v53, %s3125_s11 }
 0x1d4   : > { %v4094_v54 = vrot.slane %v1563_v7, %v3528_v11  ;;  %1087 = vrot.lane.b32.xlu0 %v2832_v47, %s3123_s9  ;;  %v1898_v3 = vcombine.high %v1563_v7, %v1563_v7  ;;  %s3042_s9 = sshll.u32 %s3130_s8, 4  ;;  %s3043_s9 = int_to_ptr.vmem [resolvable:$false] %s3042_s9 }
 0x1d5   : > { %v848_v15 = vpop.permute.xlu1 %847 }
 0x1d6   : > { %v2326_v6 = vcombine.low %v1896_v5, %v4094_v54  ;;  %v738_v37 = vpop.permute.xlu0 %737  ;;  %v1448_v33 = vsel %vm1428_vm3, %v1419_v41, %v848_v15  ;;  %v1912_v61 = vrot.slane %v1898_v3, %v3528_v11  ;;  %v1913_v43 = vcombine.high %v4094_v54, %v4094_v54  ;;  %v208_v41 = vld [vmem:[%s3211_s30 + $0xa8] sm:$0x3f] }
 0x1d7   : > { %1311 = vrot.lane.b32.xlu1 %v2888_v22, %s3125_s11  ;;  %v1420_v30 = vsel %vm1399_vm2, %v1391_v55, %v738_v37 }
 0x1d8   : > { %v2340_v1 = vrot.slane %v2326_v6, %v3528_v11  ;;  %1199 = vrot.lane.b32.xlu0 %v2860_v23, %s3124_s10  ;;  %v1914_v60 = vcombine.high %v1912_v61, %v1912_v61  ;;  %v2342_v23 = vcombine.low %v1913_v43, %v1912_v61  ;;  %s3044_s10 = scalar_lea.vmem %s3043_s9, 512 }
 0x1d9   : > { %v960_v13 = vpop.permute.xlu1 %959 }
 0x1da   : > { %v2341_v59 = vcombine.low %v2333_v2, %v2340_v1  ;;  %v850_v20 = vpop.permute.xlu0 %849  ;;  %v1477_v46 = vsel %vm1457_vm4, %v1448_v33, %v960_v13  ;;  %v2350_v1 = vrot.slane %v2342_v23, %v3528_v11 }
 0x1db   : > { %v1449_v53 = vsel %vm1428_vm3, %v1420_v30, %v850_v20 }
 0x1dc   : > { %v2951_v26 = vpack.c.bf16 %v2341_v59, %v2324_v57  ;;  %2067 = vperm.xlu0 %3037, %v2064_v48   ;;  %v1363_v48 = vsel %vm1341_vm0, %v208_v41, %v3443_v27  ;;  %v1366_v41 = vsel %vm1341_vm0, %v3867_v49, %v3460_v36 }
 0x1dd   : > { %v1072_v56 = vpop.permute.xlu1 %1071 }
 0x1de   : > { %v962_v0 = vpop.permute.xlu0 %961  ;;  %2953 = vmatpush1.bf16.xpose.msk.msra.mxu0 %vm3586_vm9, %v2951_v26  ;;  %v1506_v63 = vsel %vm1486_vm5, %v1477_v46, %v1072_v56 }
 0x1df   : > { %2954 = vmatprep.subr.bf16.mxu0 %v3126_v44  ;;  %v1478_v28 = vsel %vm1457_vm4, %v1449_v53, %v962_v0 }
 0x1e1   : > { %v1184_v10 = vpop.permute.xlu1 %1183 }
 0x1e2   : > { %v1074_v38 = vpop.permute.xlu0 %1073  ;;  %v1535_v34 = vsel %vm1515_vm6, %v1506_v63, %v1184_v10 }
 0x1e3   : > { %v1507_v14 = vsel %vm1486_vm5, %v1478_v28, %v1074_v38  ;;  %v1364_v38 = vsel %vm1341_vm0, %v3801_v42, %v3452_v32 }
 0x1e5   : > { %v1296_v25 = vpop.permute.xlu1 %1295 }
 0x1e6   : > { %v1564_v58 = vsel %vm1544_vm7, %v1535_v34, %v1296_v25  ;;  %v1186_v62 = vpop.permute.xlu0 %1185 }
 0x1e7   : > { %v1915_v50 = vcombine.high %v1564_v58, %v1564_v58  ;;  %v1922_v29 = vrot.slane %v1564_v58, %v3528_v11  ;;  %v1536_v7 = vsel %vm1515_vm6, %v1507_v14, %v1186_v62 }
 0x1e9   : > { %v628_v47 = vpop.permute.xlu1 %627  ;;  %v1929_v16 = vrot.slane %v1915_v50, %v3528_v11  ;;  %v1930_v4 = vcombine.high %v1922_v29, %v1922_v29  ;;  %v2343_v51 = vcombine.low %v1914_v60, %v1922_v29 }
 0x1ea   : > { %v1298_v21 = vpop.permute.xlu0 %1297  ;;  %v1392_v18 = vsel %vm1370_vm1, %v1363_v48, %v628_v47 }
 0x1eb   : > { %v1565_v5 = vsel %vm1544_vm7, %v1536_v7, %v1298_v21  ;;  %v2359_v19 = vcombine.low %v1930_v4, %v1929_v16  ;;  %v2357_v37 = vrot.slane %v2343_v51, %v3528_v11 }
 0x1ec   : > { %v1938_v22 = vrot.slane %v1565_v5, %v3528_v11  ;;  %v1931_v3 = vcombine.high %v1565_v5, %v1565_v5 }
 0x1ed   : > { %v740_v15 = vpop.permute.xlu1 %739  ;;  %v2367_v13 = vrot.slane %v2359_v19, %v3528_v11  ;;  %v2358_v20 = vcombine.low %v2350_v1, %v2357_v37 }
 0x1ee   : > { %v1946_v6 = vcombine.high %v1938_v22, %v1938_v22  ;;  %v630_v54 = vpop.permute.xlu0 %629  ;;  %v1945_v55 = vrot.slane %v1931_v3, %v3528_v11  ;;  %v1421_v34 = vsel %vm1399_vm2, %v1392_v18, %v740_v15 }
 0x1ef   : > { %v1393_v46 = vsel %vm1370_vm1, %v1364_v38, %v630_v54 }
 0x1f0   : > { %v2360_v8 = vcombine.low %v1938_v22, %v1946_v6  ;;  %v1947_v50 = vcombine.high %v1945_v55, %v1945_v55 }
 0x1f1   : > { %v852_v2 = vpop.permute.xlu1 %851 }
 0x1f2   : > { %v2374_v57 = vrot.slane %v2360_v8, %v3528_v11  ;;  %v742_v59 = vpop.permute.xlu0 %741  ;;  %v1450_v30 = vsel %vm1428_vm3, %v1421_v34, %v852_v2  ;;  %v2376_v51 = vcombine.low %v1945_v55, %v1947_v50 }
 0x1f3   : > { %v1422_v24 = vsel %vm1399_vm2, %v1393_v46, %v742_v59 }
 0x1f4   : > { %v2375_v9 = vcombine.low %v2367_v13, %v2374_v57  ;;  %v2384_v2 = vrot.slane %v2376_v51, %v3528_v11 }
 0x1f5   : > { %v964_v26 = vpop.permute.xlu1 %963 }
 0x1f6   : > { %v854_v56 = vpop.permute.xlu0 %853  ;;  %v2955_v0 = vpack.c.bf16 %v2375_v9, %v2358_v20  ;;  %v1479_v27 = vsel %vm1457_vm4, %v1450_v30, %v964_v26 }
 0x1f7   : > { %v1451_v25 = vsel %vm1428_vm3, %v1422_v24, %v854_v56 }
 0x1f8   : > { %2957 = vmatpush1.bf16.xpose.msk.msra.mxu0 %vm3586_vm9, %v2955_v0 }
 0x1f9   : > { %v1076_v17 = vpop.permute.xlu1 %1075  ;;  %2958 = vmatprep.subr.bf16.mxu0 %v3126_v44 }
 0x1fa   : > { %v966_v52 = vpop.permute.xlu0 %965  ;;  %v1508_v58 = vsel %vm1486_vm5, %v1479_v27, %v1076_v17 }
 0x1fb   : > { %v1480_v32 = vsel %vm1457_vm4, %v1451_v25, %v966_v52  ;;  %v210_v52 = vld [vmem:[%s3211_s30 + $0xb8] sm:$0x3f] }
 0x1fc   : > { %v1365_v48 = vsel %vm1341_vm0, %v210_v52, %v3450_v31 }
 0x1fd   : > { %v1188_v10 = vpop.permute.xlu1 %1187 }
 0x1fe   : > { %v1078_v33 = vpop.permute.xlu0 %1077  ;;  %v1537_v29 = vsel %vm1515_vm6, %v1508_v58, %v1188_v10 }
 0x1ff   : > { %v1509_v42 = vsel %vm1486_vm5, %v1480_v32, %v1078_v33 }
 0x201   : > { %v634_v63 = vpop.permute.xlu1 %633 }
 0x202   : > { %v1190_v61 = vpop.permute.xlu0 %1189  ;;  %v1395_v10 = vsel %vm1370_vm1, %v1366_v41, %v634_v63 }
 0x203   : > { %v1538_v62 = vsel %vm1515_vm6, %v1509_v42, %v1190_v61 }
 0x205   : > { %v1302_v53 = vpop.permute.xlu1 %1301 }
 0x206   : > { %v1567_v28 = vsel %vm1544_vm7, %v1538_v62, %v1302_v53  ;;  %v1300_v43 = vpop.permute.xlu0 %1299 }
 0x207   : > { %v1964_v14 = vcombine.high %v1567_v28, %v1567_v28  ;;  %v1971_v47 = vrot.slane %v1567_v28, %v3528_v11  ;;  %v1566_v60 = vsel %vm1544_vm7, %v1537_v29, %v1300_v43 }
 0x208   : > { %v1948_v16 = vcombine.high %v1566_v60, %v1566_v60  ;;  %v1955_v4 = vrot.slane %v1566_v60, %v3528_v11 }
 0x209   : > { %v1978_v7 = vrot.slane %v1964_v14, %v3528_v11  ;;  %v1979_v21 = vcombine.high %v1971_v47, %v1971_v47  ;;  %v632_v5 = vpop.permute.xlu1 %631 }
 0x20a   : > { %v1962_v22 = vrot.slane %v1948_v16, %v3528_v11  ;;  %v1963_v15 = vcombine.high %v1955_v4, %v1955_v4  ;;  %v746_v23 = vpop.permute.xlu0 %745  ;;  %v1394_v18 = vsel %vm1370_vm1, %v1365_v48, %v632_v5 }
 0x20b   : > { %v2394_v19 = vcombine.low %v1979_v21, %v1978_v7  ;;  %v1424_v33 = vsel %vm1399_vm2, %v1395_v10, %v746_v23  ;;  %v1980_v28 = vcombine.high %v1978_v7, %v1978_v7  ;;  %v212_v10 = vld [vmem:[%s3211_s30 + $0xc8] sm:$0x3f] }
 0x20c   : > { %v2377_v6 = vcombine.low %v1955_v4, %v1963_v15  ;;  %v2393_v54 = vcombine.low %v1962_v22, %v1971_v47 }
 0x20d   : > { %v2408_v37 = vrot.slane %v2394_v19, %v3528_v11  ;;  %v744_v8 = vpop.permute.xlu1 %743 }
 0x20e   : > { %v2391_v1 = vrot.slane %v2377_v6, %v3528_v11  ;;  %v2401_v13 = vrot.slane %v2393_v54, %v3528_v11  ;;  %v858_v57 = vpop.permute.xlu0 %857  ;;  %v1423_v55 = vsel %vm1399_vm2, %v1394_v18, %v744_v8 }
 0x20f   : > { %v1453_v46 = vsel %vm1428_vm3, %v1424_v33, %v858_v57 }
 0x210   : > { %v2392_v59 = vcombine.low %v2384_v2, %v2391_v1  ;;  %v2409_v20 = vcombine.low %v2401_v13, %v2408_v37 }
 0x211   : > { %v856_v9 = vpop.permute.xlu1 %855 }
 0x212   : > { %v970_v26 = vpop.permute.xlu0 %969  ;;  %v2959_v56 = vpack.c.bf16 %v2409_v20, %v2392_v59  ;;  %v1452_v49 = vsel %vm1428_vm3, %v1423_v55, %v856_v9 }
 0x213   : > { %v1482_v24 = vsel %vm1457_vm4, %v1453_v46, %v970_v26  ;;  %v1367_v46 = vsel %vm1341_vm0, %v212_v10, %v3458_v35 }
 0x214   : > { %2961 = vmatpush1.bf16.xpose.msk.msra.mxu0 %vm3586_vm9, %v2959_v56  ;;  %v213_v56 = vld [vmem:[%s3211_s30 + $0xd0] sm:$0xff] }
 0x215   : > { %v968_v0 = vpop.permute.xlu1 %967  ;;  %2962 = vmatprep.subr.bf16.mxu0 %v3126_v44 }
 0x216   : > { %v1082_v17 = vpop.permute.xlu0 %1081  ;;  %v1481_v61 = vsel %vm1457_vm4, %v1452_v49, %v968_v0  ;;  %v214_v49 = vld [vmem:[%s3211_s30 + $0xd8] sm:$0x3f]  ;;  %s2633_s30 = sshll.u32 %s177_s29, 4  ;;  %s4266_s30 = int_to_ptr.vmem [resolvable:$true] %s2633_s30 }
 0x217   : > { %v1511_v34 = vsel %vm1486_vm5, %v1482_v24, %v1082_v17  ;;  %v1368_v17 = vsel %vm1341_vm0, %v213_v56, %v3467_v40  ;;  %s3038_s15 = scalar_lea.vmem %s4266_s30, 256  ;;  %p3045_p1 = scmp.lt.s32.totalorder %s4266_s30, %s3043_s9 }
 0x218   : > { %p3039_p12 = scmp.ne.s32.totalorder %s4266_s30, %s3038_s15  ;;  %p3046_p2 = scmp.lt.s32.totalorder %s3044_s10, %s3038_s15 }
 0x219   : > { %v1080_v3 = vpop.permute.xlu1 %1079 }
 0x21a   : > { %v1194_v38 = vpop.permute.xlu0 %1193  ;;  %v1510_v30 = vsel %vm1486_vm5, %v1481_v61, %v1080_v3  ;;  %p3040_p13 = pnand %p3039_p12, %p3191_p4  ;;  %p3047_p3 = por %p3046_p2, %p3045_p1 }
 0x21b   : > { %v1540_v63 = vsel %vm1515_vm6, %v1511_v34, %v1194_v38 }
 0x21c   : > { %p3041_p0 = pneg %p3040_p13 }
 0x21d   : > { %v1192_v36 = vpop.permute.xlu1 %1191 }
 0x21e   : > { %v1306_v25 = vpop.permute.xlu0 %1305  ;;  %v1539_v42 = vsel %vm1515_vm6, %v1510_v30, %v1192_v36  ;;  %v1369_v30 = vsel %vm1341_vm0, %v214_v49, %v3465_v39  ;;  %p3048_p5 = pnand %p3047_p3, %p3041_p0 }
 0x21f   : > { %v1569_v31 = vsel %vm1544_vm7, %v1540_v63, %v1306_v25 }
 0x220   : > { %v1997_v32 = vcombine.high %v1569_v31, %v1569_v31  ;;  %v2004_v27 = vrot.slane %v1569_v31, %v3528_v11 }
 0x221   : > { %v1304_v58 = vpop.permute.xlu1 %1303 }
 0x222   : > { %v2011_v62 = vrot.slane %v1997_v32, %v3528_v11  ;;  %v2012_v53 = vcombine.high %v2004_v27, %v2004_v27  ;;  %v1568_v50 = vsel %vm1544_vm7, %v1539_v42, %v1304_v58  ;;  %v638_v29 = vpop.permute.xlu0 %637 }
 0x223   : > { %v1981_v43 = vcombine.high %v1568_v50, %v1568_v50  ;;  %v1988_v14 = vrot.slane %v1568_v50, %v3528_v11  ;;  %v1397_v41 = vsel %vm1370_vm1, %v1368_v17, %v638_v29  ;;  %v2063_v17 = vld [vmem:[%s4312_s1] sm:$0xff] }
 0x224   : > { %v2013_v47 = vcombine.high %v2011_v62, %v2011_v62  ;;  %v2427_v60 = vcombine.low %v2004_v27, %v2012_v53 }
 0x225   : > { %v1995_v16 = vrot.slane %v1981_v43, %v3528_v11  ;;  %v1996_v4 = vcombine.high %v1988_v14, %v1988_v14  ;;  %v2410_v21 = vcombine.low %v1980_v28, %v1988_v14  ;;  %v636_v5 = vpop.permute.xlu1 %635 }
 0x226   : > { %v2428_v51 = vcombine.low %v2011_v62, %v2013_v47  ;;  %v750_v22 = vpop.permute.xlu0 %749  ;;  %v2435_v19 = vrot.slane %v2427_v60, %v3528_v11  ;;  %v1396_v40 = vsel %vm1370_vm1, %v1367_v46, %v636_v5 }
 0x227   : > { %v2411_v15 = vcombine.low %v1996_v4, %v1995_v16  ;;  %v2418_v7 = vrot.slane %v2410_v21, %v3528_v11  ;;  %v1426_v3 = vsel %vm1399_vm2, %v1397_v41, %v750_v22 }
 0x228   : > { %v2442_v23 = vrot.slane %v2428_v51, %v3528_v11 }
 0x229   : > { %v2425_v6 = vrot.slane %v2411_v15, %v3528_v11  ;;  %v748_v54 = vpop.permute.xlu1 %747 }
 0x22a   : > { %v862_v37 = vpop.permute.xlu0 %861  ;;  %v2443_v8 = vcombine.low %v2435_v19, %v2442_v23  ;;  %v1425_v55 = vsel %vm1399_vm2, %v1396_v40, %v748_v54 }
 0x22b   : > { %v2426_v2 = vcombine.low %v2418_v7, %v2425_v6  ;;  %v1455_v33 = vsel %vm1428_vm3, %v1426_v3, %v862_v37 }
 0x22d   : > { %v640_v1 = vpop.permute.xlu1 %639  ;;  %v2963_v13 = vpack.c.bf16 %v2443_v8, %v2426_v2 }
 0x22e   : > { %v974_v57 = vpop.permute.xlu0 %973  ;;  %v1398_v58 = vsel %vm1370_vm1, %v1369_v30, %v640_v1 }
 0x22f   : > { %2965 = vmatpush1.bf16.xpose.msk.msra.mxu0 %vm3586_vm9, %v2963_v13 }
 0x230   : > { %2966 = vmatprep.subr.bf16.mxu0 %v3126_v44  ;;  %v1484_v44 = vsel %vm1457_vm4, %v1455_v33, %v974_v57 }
 0x231   : > { %v1086_v59 = vpop.permute.xlu1 %1085 }
 0x232   : > { %v860_v20 = vpop.permute.xlu0 %859  ;;  %v1513_v18 = vsel %vm1486_vm5, %v1484_v44, %v1086_v59 }
 0x233   : > { %v1454_v63 = vsel %vm1428_vm3, %v1425_v55, %v860_v20 }
 0x235   : > { %v972_v9 = vpop.permute.xlu1 %971 }
 0x236   : > { %v752_v26 = vpop.permute.xlu0 %751  ;;  %v1483_v61 = vsel %vm1457_vm4, %v1454_v63, %v972_v9 }
 0x237   : > { %v1427_v50 = vsel %vm1399_vm2, %v1398_v58, %v752_v26 }
 0x239   : > { %v864_v0 = vpop.permute.xlu1 %863 }
 0x23a   : > { %v1198_v52 = vpop.permute.xlu0 %1197  ;;  %v1456_v43 = vsel %vm1428_vm3, %v1427_v50, %v864_v0 }
 0x23b   : > { %v1542_v24 = vsel %vm1515_vm6, %v1513_v18, %v1198_v52 }
 0x23d   : > { %v1310_v38 = vpop.permute.xlu1 %1309 }
 0x23e   : > { %v1084_v48 = vpop.permute.xlu0 %1083  ;;  %v1571_v34 = vsel %vm1544_vm7, %v1542_v24, %v1310_v38 }
 0x23f   : > { %v2030_v31 = vcombine.high %v1571_v34, %v1571_v34  ;;  %v1512_v35 = vsel %vm1486_vm5, %v1483_v61, %v1084_v48  ;;  %v2037_v32 = vrot.slane %v1571_v34, %v3528_v11 }
 0x241   : > { %v1196_v36 = vpop.permute.xlu1 %1195  ;;  %v2044_v14 = vrot.slane %v2030_v31, %v3528_v11  ;;  %v2045_v39 = vcombine.high %v2037_v32, %v2037_v32 }
 0x242   : > { %v976_v25 = vpop.permute.xlu0 %975  ;;  %v1541_v27 = vsel %vm1515_vm6, %v1512_v35, %v1196_v36 }
 0x243   : > { %v1485_v47 = vsel %vm1457_vm4, %v1456_v43, %v976_v25  ;;  %v2461_v19 = vcombine.low %v2045_v39, %v2044_v14  ;;  %v2046_v7 = vcombine.high %v2044_v14, %v2044_v14 }
 0x245   : > { %v1308_v42 = vpop.permute.xlu1 %1307  ;;  %v2469_v2 = vrot.slane %v2461_v19, %v3528_v11 }
 0x246   : > { %v1570_v62 = vsel %vm1544_vm7, %v1541_v27, %v1308_v42  ;;  %v1088_v53 = vpop.permute.xlu0 %1087 }
 0x247   : > { %v2014_v29 = vcombine.high %v1570_v62, %v1570_v62  ;;  %v2021_v28 = vrot.slane %v1570_v62, %v3528_v11  ;;  %v1514_v21 = vsel %vm1486_vm5, %v1485_v47, %v1088_v53 }
 0x249   : > { %v2028_v60 = vrot.slane %v2014_v29, %v3528_v11  ;;  %v2029_v16 = vcombine.high %v2021_v28, %v2021_v28  ;;  %v1312_v4 = vpop.permute.xlu1 %1311 }
 0x24a   : > { %v1200_v5 = vpop.permute.xlu0 %1199 }
 0x24b   : > { %v2444_v51 = vcombine.low %v2021_v28, %v2029_v16  ;;  %v2445_v22 = vcombine.low %v2028_v60, %v2037_v32  ;;  %v1543_v15 = vsel %vm1515_vm6, %v1514_v21, %v1200_v5 }
 0x24c   : > { %v1572_v23 = vsel %vm1544_vm7, %v1543_v15, %v1312_v4 }
 0x24d   : > { %v2054_v6 = vrot.slane %v1572_v23, %v3528_v11  ;;  %v2452_v54 = vrot.slane %v2444_v51, %v3528_v11  ;;  %v2459_v37 = vrot.slane %v2445_v22, %v3528_v11  ;;  %v2047_v1 = vcombine.high %v1572_v23, %v1572_v23 }
 0x24f   : > { %v2462_v8 = vcombine.low %v2046_v7, %v2054_v6  ;;  %v2460_v57 = vcombine.low %v2452_v54, %v2459_v37  ;;  %v2061_v20 = vrot.slane %v2047_v1, %v3528_v11  ;;  %v2062_v9 = vcombine.high %v2054_v6, %v2054_v6 }
 0x251   : > { %v2476_v13 = vrot.slane %v2462_v8, %v3528_v11  ;;  %v2478_v56 = vcombine.low %v2062_v9, %v2061_v20 }
 0x253   : > { %v2477_v59 = vcombine.low %v2469_v2, %v2476_v13  ;;  %v2485_v0 = vrot.slane %v2478_v56, %v3528_v11 }
 0x255   : > { %v2967_v26 = vpack.c.bf16 %v2477_v59, %v2460_v57 }
 0x257   : > { %2969 = vmatpush1.bf16.xpose.msk.msra.mxu0 %vm3586_vm9, %v2967_v26 }
 0x258   : > { %2588 = vmatprep.subr.mxu0 %v3128_v45 }
 0x25b   : > { %v2068_v52 = vpop.permute.xlu0 %2067 }
 0x25f   : > { %2913 = vmatpush1.xpose.msk.msra.mxu0 %vm2486_vm8, %v2485_v0 }
 0x262   : > { %2914 = vmatmul.mubr.msk.f32.vlgmr.msra.gmra.mrb[0].mxu0 %vm2486_vm8, %v2063_v17 }
 0x335   : > { %v2606_v41 = vpop.f32.mrb[0].mxu0 }
 0x336   : > { %v2607_v10 = vadd.f32 %v2606_v41, %v2068_v52  ;;  %v2608_v12 = vpop.f32.mrb[1].mxu0 }
 0x337   : > { %v2609_v45 = vadd.f32 %v2608_v12, %v2068_v52 }
 0x338   : > { %v2611_v11 = vmax.f32 %v2607_v10, 0.0 }
 0x339   : > { %v2612_v3 = vmax.f32 %v2609_v45, 0.0 }
 0x33a   : > { %2613 = vst [vmem:[%s177_s29] sm:$0xff] %v2611_v11 }
 0x33b   : > { %2615 = vst.msk [vmem:[%s177_s29 + $0x8] sm:$0xff] %vm2614_vm10, %v2612_v3 }
 0x33c   : > { %3051 = shalt.err (!%p3048_p5)
}
 0x33d   : > { %s3052_s11 = scalar_lea.hbm %s4264_s6, 256  ;;  %s3056_s21 = scalar_lea.hbm %s4314_s3, 512 }
 0x33e   : > { %p3053_p6 = scmp.ne.s32.totalorder %s4264_s6, %s3052_s11  ;;  %p3057_p10 = scmp.lt.u32.totalorder %s4264_s6, %s4314_s3 }
 0x33f   : > { %p3058_p11 = scmp.lt.u32.totalorder %s3056_s21, %s3052_s11  ;;  %p3060_p13 = scmp.lt.u32.totalorder %s3052_s11, %s4264_s6 }
 0x340   : > { %p3054_p7 = pnand %p3053_p6, %p3191_p4 }
 0x341   : > { %p3059_p12 = por %p3058_p11, %p3057_p10 }
 0x342   : > { %p3055_p9 = pneg %p3054_p7 }
 0x343   : > { %p3061_p0 = por %p3060_p13, %p3059_p12 }
 0x345   : > { %p3062_p1 = pnand %p3061_p0, %p3055_p9 }
 0x347   : > { %3065 = shalt.err (!%p3062_p1)
}
 0x348   : > { %2970 = dma.vmem_to_hbm [thread:$0]  (%p3191_p4), %s4266_s30, 256, %s4264_s6, %s2617_s7  }
 0x349 PF: > { %p2976_p2 = scmp.ge.s32.totalorder %s3116_s17, 2  ;;  %s2645_s27 = sand.u32 1, %s3096_s12  }
 0x34a   : > { %s2646_s28 = scalar_lea.sflag [#allocation3], %s2645_s27 }
 0x34b   : > { %p2973_p3 = pnand %p2976_p2, %p3198_p8 }
 0x34d   : > { %3091 = dma.done.wait (!%p2973_p3), %s2646_s28, 256  }
 0x34e   : > { %3093 = vsyncadd (!%p2973_p3), %s2646_s28, 4294967040  ;;  %s16_s17 = sadd.s32 1, %s3116_s17   ;;  %s4319_s12 = smov %s3100_s13 }
 0x34f   : > { %p13_p5 = scmp.ge.s32.totalorder %s16_s17, 4   ;;  %s4320_s13 = smov %s3104_s14 }
 0x350   : > { %s4321_s14 = smov %s3204_s25  ;;  %s4322_s15 = smov %s3112_s16 }
 0x351   : > { %s4323_s16 = smov %s4325_s20  ;;  %15 = sbr.rel (!%p13_p5) target bundleno = 4 (0x4), region = 70 }
 0x358   :  { %2651 = vsyncpa [#allocation3], 1 }
 0x359   :  { %2653 = vsyncpa [#allocation3 + $0x1], 1 }

</bundles_post_ra>
